<compile_context>
chip_gen: v7x
topology: tpu7x:2x2x1
jax: 0.10.0
libtpu: 0.0.40
codegen_flags: <defaults>
</compile_context>

<pallas_src>
import functools

import jax
import jax.numpy as jnp
from jax.experimental import pallas as pl
from jax.experimental.pallas import tpu as pltpu


def _round_up(x, m):
    return (x + m - 1) // m * m


# ----------------------------- Pallas kernel ------------------------------- #

def _conv_bn_act_kernel(a_ref, halo_ref, w_ref, ss_ref, o_ref, stage_ref, cat_ref,
                        *, act, wpf, kh_dim, kw_dim, tm, cin_p):
    # Stage the tm-row activation tile plus its halo rows once in f32 so every
    # (kh, kw) shifted view is a cheap *static* 32-bit sublane slice.
    stage_ref[0:tm, :] = a_ref[...].astype(jnp.float32)
    stage_ref[tm:, :] = halo_ref[...].astype(jnp.float32)

    # In-VMEM im2col of this tile: concatenate the KH*KW shifted slices into one
    # (tm, KH*KW*cin_p) bf16 operand, then ONE big-K MXU matmul.  No per-tap
    # (tm, tn) f32 accumulator load/store round trips, no zero-init.
    for kh in range(kh_dim):
        for kw in range(kw_dim):
            off = kh * wpf + kw                          # static flat-row shift
            q = kh * kw_dim + kw                         # column slab index
            cat_ref[:, q * cin_p:(q + 1) * cin_p] = (
                stage_ref[off:off + tm, :].astype(jnp.bfloat16))

    y = jnp.dot(cat_ref[...], w_ref[...], preferred_element_type=jnp.float32)

    # Fused BatchNorm (eval mode, folded) + activation epilogue in f32.
    y = y * ss_ref[0:1, :] + ss_ref[1:2, :]
    if act == "relu":
        y = jnp.maximum(y, 0.0)
    elif act == "silu":
        y = y * jax.nn.sigmoid(y)
    elif act == "gelu":
        y = jax.nn.gelu(y, approximate=False)            # match torch exact GELU
    elif act == "leaky_relu":
        y = jnp.where(y >= 0.0, y, 0.01 * y)             # torch default slope 0.01
    elif act is not None:
        raise ValueError(f"unsupported act: {act}")
    o_ref[...] = y.astype(o_ref.dtype)


# ------------------------------- JAX glue ----------------------------------- #

def conv_norm_layer(x_nchw, params, *, kernel_size, stride, padding=None,
                    act=None, eps=1e-5, tm=512, tn=256, out_dtype=None):
    """Forward of ConvNormLayer. x_nchw: (N, Cin, H, W) -> (N, Cout, Ho, Wo)."""
    k = int(kernel_size)
    s = int(stride)
    pad = (k - 1) // 2 if padding is None else int(padding)

    w = params["conv_w"]                                  # (KH, KW, Cin, Cout)
    KH, KW, Cin, Cout = w.shape
    N, cin_x, H, W_ = x_nchw.shape
    assert cin_x == Cin, (cin_x, Cin)
    Ho = (H + 2 * pad - KH) // s + 1
    Wo = (W_ + 2 * pad - KW) // s + 1
    out_dtype = x_nchw.dtype if out_dtype is None else out_dtype

    # Fold BatchNorm (eval mode) into per-channel scale/shift.
    scale = (params["bn_gamma"] / jnp.sqrt(params["bn_var"] + eps)).astype(jnp.float32)
    shift = (params["bn_beta"] - params["bn_mean"] * scale).astype(jnp.float32)

    # --- layout / padding ----------------------------------------------------
    cin_p = _round_up(Cin, 128)                    # lane-dense contraction dim
    cout_p = _round_up(Cout, 128)                  # lane-dense output channels
    tn = _round_up(min(tn, cout_p), 128)
    cout_p = _round_up(cout_p, tn)
    num_n = cout_p // tn

    Hp = H + 2 * pad
    Wp = W_ + 2 * pad
    wpf = _round_up(Wp, 8)        # flat row width; kh shifts land on f32 sublanes

    # Max flat-row shift over the (kh, kw) window.  Keep the halo block minimal
    # and make tm a multiple of it (decoupled: no "halo == full second tile").
    halo = (KH - 1) * wpf + (KW - 1)
    halo_pad = _round_up(max(halo, 16), 16)
    tm = _round_up(max(int(tm), halo_pad), halo_pad)

    L = Hp * wpf                  # flat positions per image (valid ones sliced later)
    M = N * L
    num_m = pl.cdiv(M, tm)
    m_out = num_m * tm
    m_in = m_out + tm             # extra rows so the trailing halo block is in-bounds

    # NCHW -> NHWC once, zero-pad spatial + channels, flatten to (rows, Cin_p) bf16.
    x = jnp.transpose(x_nchw, (0, 2, 3, 1))
    x = jnp.pad(x, ((0, 0), (pad, pad), (pad, pad + (wpf - Wp)), (0, cin_p - Cin)))
    a = x.reshape(N * L, cin_p)
    a = jnp.pad(a, ((0, m_in - N * L), (0, 0))).astype(jnp.bfloat16)

    # Weights: (KH, KW, Cin, Cout) -> stacked (KH*KW*Cin_p, Cout_p) bf16.
    w3 = w.reshape(KH * KW, Cin, Cout)
    w3 = jnp.pad(w3, ((0, 0), (0, cin_p - Cin), (0, cout_p - Cout)))
    w2 = w3.reshape(KH * KW * cin_p, cout_p).astype(jnp.bfloat16)

    # Folded BN scale/shift in a single (2, Cout_p) f32 array.
    ss = jnp.pad(jnp.stack([scale, shift]), ((0, 0), (0, cout_p - Cout)))
    ss = ss.astype(jnp.float32)

    # Grid order: keep the LARGER block resident on the inner (fastest) axis.
    # With 3x3 kernels the weight slab >> the activation tile, so the Cout-tile
    # axis goes OUTER; the weight slab is then DMA'd once per Cout tile.
    weights_outer = (KH * KW * tn) >= tm
    if weights_outer:
        grid = (num_n, num_m)
        i_of = lambda g0, g1: g1          # M-tile index
        j_of = lambda g0, g1: g0          # Cout-tile index
    else:
        grid = (num_m, num_n)
        i_of = lambda g0, g1: g0
        j_of = lambda g0, g1: g1

    kernel = functools.partial(
        _conv_bn_act_kernel, act=act, wpf=wpf, kh_dim=KH, kw_dim=KW,
        tm=tm, cin_p=cin_p)

    out_itemsize = jnp.dtype(out_dtype).itemsize
    a_bytes = a.size * a.dtype.itemsize
    w_bytes = w2.size * w2.dtype.itemsize
    o_bytes = m_out * cout_p * out_itemsize
    if weights_outer:
        bytes_accessed = num_n * a_bytes + w_bytes + o_bytes
    else:
        bytes_accessed = a_bytes + num_m * w_bytes + o_bytes
    cost = pl.CostEstimate(
        flops=2 * m_out * KH * KW * cin_p * cout_p,
        transcendentals=m_out * cout_p if act in ("silu", "gelu") else 0,
        bytes_accessed=int(bytes_accessed))

    # VMEM budget from actual footprint: double-buffered blocks + scratch + margin.
    block_bytes = 2 * (tm * cin_p * 2                       # activation tile (bf16)
                       + halo_pad * cin_p * 2               # halo block (bf16)
                       + KH * KW * cin_p * tn * 2           # weight slab (bf16)
                       + 2 * tn * 4                         # scale/shift
                       + tm * tn * out_itemsize)            # output tile
    scratch_bytes = (tm + halo_pad) * cin_p * 4 + tm * KH * KW * cin_p * 2
    vmem_limit = int(max(block_bytes + scratch_bytes + (4 << 20), 16 << 20))

    out = pl.pallas_call(
        kernel,
        out_shape=jax.ShapeDtypeStruct((m_out, cout_p), out_dtype),
        grid=grid,
        in_specs=[
            # Main tm-row activation tile.
            pl.BlockSpec((tm, cin_p), lambda g0, g1: (i_of(g0, g1), 0)),
            # Halo rows just past the tile (needed by the (kh,kw) shifted views).
            pl.BlockSpec((halo_pad, cin_p),
                         lambda g0, g1: ((i_of(g0, g1) + 1) * (tm // halo_pad), 0)),
            # All (kh,kw) weight slabs for this Cout tile.
            pl.BlockSpec((KH * KW * cin_p, tn), lambda g0, g1: (0, j_of(g0, g1))),
            # Folded BN scale/shift.
            pl.BlockSpec((2, tn), lambda g0, g1: (0, j_of(g0, g1))),
        ],
        out_specs=pl.BlockSpec((tm, tn),
                               lambda g0, g1: (i_of(g0, g1), j_of(g0, g1))),
        scratch_shapes=[
            pltpu.VMEM((tm + halo_pad, cin_p), jnp.float32),     # staged tile+halo
            pltpu.VMEM((tm, KH * KW * cin_p), jnp.bfloat16),     # in-VMEM im2col
        ],
        compiler_params=pltpu.CompilerParams(
            dimension_semantics=("parallel", "parallel"),
            vmem_limit_bytes=vmem_limit),
        cost_estimate=cost,
    )(a, a, w2, ss)

    # Valid output positions: flat p = (oy*s)*wpf + ox*s for oy<Ho, ox<Wo.
    out = out[:M].reshape(N, Hp, wpf, cout_p)
    out = out[:, 0:Ho * s:s, 0:Wo * s:s, :Cout]
    return jnp.transpose(out, (0, 3, 1, 2))        # NHWC -> NCHW


# ------------------------------ Reference ----------------------------------- #

def _reference(x_nchw, params, *, kernel_size, stride, padding=None, act=None,
               eps=1e-5):
    k = kernel_size
    pad = (k - 1) // 2 if padding is None else padding
    # Quantize inputs to bf16 (like the kernel's MXU operands), accumulate f32.
    x = x_nchw.astype(jnp.bfloat16).astype(jnp.float32)
    wf = jnp.transpose(params["conv_w"], (3, 2, 0, 1))          # OIHW
    wf = wf.astype(jnp.bfloat16).astype(jnp.float32)
    y = jax.lax.conv_general_dilated(
        x, wf, window_strides=(stride, stride),
        padding=[(pad, pad), (pad, pad)],
        dimension_numbers=("NCHW", "OIHW", "NCHW"),
        precision=jax.lax.Precision.HIGHEST)
    scale = params["bn_gamma"] / jnp.sqrt(params["bn_var"] + eps)
    shift = params["bn_beta"] - params["bn_mean"] * scale
    y = y * scale[None, :, None, None] + shift[None, :, None, None]
    if act == "relu":
        y = jnp.maximum(y, 0.0)
    elif act == "silu":
        y = y * jax.nn.sigmoid(y)
    elif act == "gelu":
        y = jax.nn.gelu(y, approximate=False)
    elif act == "leaky_relu":
        y = jnp.where(y >= 0.0, y, 0.01 * y)
    return y


# --------------------------------- Main ------------------------------------- #

if __name__ == "__main__":
    key = jax.random.PRNGKey(0)
    k_x, k_w, k_g, k_b, k_m, k_v = jax.random.split(key, 6)

    N, Cin, H, W = 2, 4, 16, 16
    Cout, kernel_size = 8, 3

    x = jax.random.normal(k_x, (N, Cin, H, W), dtype=jnp.float32)
    params = {
        # Conv2d weight (bias=False), stored as (KH, KW, Cin, Cout).
        "conv_w": 0.1 * jax.random.normal(
            k_w, (kernel_size, kernel_size, Cin, Cout), dtype=jnp.float32),
        # BatchNorm2d params / running stats (eval-mode semantics).
        "bn_gamma": 1.0 + 0.1 * jax.random.normal(k_g, (Cout,), dtype=jnp.float32),
        "bn_beta": 0.1 * jax.random.normal(k_b, (Cout,), dtype=jnp.float32),
        "bn_mean": 0.1 * jax.random.normal(k_m, (Cout,), dtype=jnp.float32),
        "bn_var": jnp.abs(jax.random.normal(k_v, (Cout,), dtype=jnp.float32)) + 0.5,
    }

    for stride, act in [(1, "relu"), (2, "silu")]:
        out = conv_norm_layer(x, params, kernel_size=kernel_size,
                              stride=stride, act=act)
        out = jax.block_until_ready(out)
        ref = _reference(x, params, kernel_size=kernel_size,
                         stride=stride, act=act)
        ref = jax.block_until_ready(ref)

        pad = (kernel_size - 1) // 2
        Ho = (H + 2 * pad - kernel_size) // stride + 1
        Wo = (W + 2 * pad - kernel_size) // stride + 1
        assert out.shape == (N, Cout, Ho, Wo), (out.shape, stride)
        err = float(jnp.max(jnp.abs(out - ref)))
        assert err < 2e-3, (stride, act, err)

    print("KERNEL_OK")
</pallas_src>

<mosaic_0001>
module attributes {stable_mosaic.version = 11 : i64} {
  func.func @_conv_bn_act_kernel(%arg0: i32, %arg1: i32, %arg2: memref<512x128xbf16, #tpu.memory_space<vmem>>, %arg3: memref<64x128xbf16, #tpu.memory_space<vmem>>, %arg4: memref<1152x128xbf16, #tpu.memory_space<vmem>>, %arg5: memref<2x128xf32, #tpu.memory_space<vmem>>, %arg6: memref<512x128xf32, #tpu.memory_space<vmem>>, %arg7: memref<576x128xf32, #tpu.memory_space<vmem>>, %arg8: memref<512x1152xbf16, #tpu.memory_space<vmem>>) attributes {dimension_semantics = [#tpu.dimension_semantics<parallel>, #tpu.dimension_semantics<parallel>], iteration_bounds = array<i64: 1, 2>, scalar_prefetch = 0 : i64, scratch_operands = 2 : i64, tpu.core_type = #tpu.core_type<tc>, window_params = [{transform_indices = @transform_0, window_bounds = array<i64: 512, 128>}, {transform_indices = @transform_1, window_bounds = array<i64: 64, 128>}, {transform_indices = @transform_2, window_bounds = array<i64: 1152, 128>}, {transform_indices = @transform_3, window_bounds = array<i64: 2, 128>}, {transform_indices = @transform_4, window_bounds = array<i64: 512, 128>}]} {
    %c0 = arith.constant 0 : index
    %c0_0 = arith.constant 0 : index
    %0 = vector.load %arg2[%c0, %c0_0] : memref<512x128xbf16, #tpu.memory_space<vmem>>, vector<512x128xbf16>
    %1 = arith.extf %0 : vector<512x128xbf16> to vector<512x128xf32>
    %c0_1 = arith.constant 0 : index
    %c0_2 = arith.constant 0 : index
    %2 = vector.load %arg7[%c0_1, %c0_2] : memref<576x128xf32, #tpu.memory_space<vmem>>, vector<512x128xf32>
    tpu.vector_store %arg7[%c0_1, %c0_2], %1 {strides = array<i32>} : memref<576x128xf32, #tpu.memory_space<vmem>>, vector<512x128xf32>,
    %c0_3 = arith.constant 0 : index
    %c0_4 = arith.constant 0 : index
    %3 = vector.load %arg3[%c0_3, %c0_4] : memref<64x128xbf16, #tpu.memory_space<vmem>>, vector<64x128xbf16>
    %4 = arith.extf %3 : vector<64x128xbf16> to vector<64x128xf32>
    %c512 = arith.constant 512 : index
    %c0_5 = arith.constant 0 : index
    %5 = vector.load %arg7[%c512, %c0_5] : memref<576x128xf32, #tpu.memory_space<vmem>>, vector<64x128xf32>
    tpu.vector_store %arg7[%c512, %c0_5], %4 {strides = array<i32>} : memref<576x128xf32, #tpu.memory_space<vmem>>, vector<64x128xf32>,
    %c0_6 = arith.constant 0 : index
    %c0_7 = arith.constant 0 : index
    %6 = vector.load %arg7[%c0_6, %c0_7] : memref<576x128xf32, #tpu.memory_space<vmem>>, vector<512x128xf32>
    %7 = arith.truncf %6 : vector<512x128xf32> to vector<512x128xbf16>
    %c0_8 = arith.constant 0 : index
    %c0_9 = arith.constant 0 : index
    %8 = vector.load %arg8[%c0_8, %c0_9] : memref<512x1152xbf16, #tpu.memory_space<vmem>>, vector<512x128xbf16>
    tpu.vector_store %arg8[%c0_8, %c0_9], %7 {strides = array<i32>} : memref<512x1152xbf16, #tpu.memory_space<vmem>>, vector<512x128xbf16>,
    %c1 = arith.constant 1 : index
    %c0_10 = arith.constant 0 : index
    %9 = vector.load %arg7[%c1, %c0_10] : memref<576x128xf32, #tpu.memory_space<vmem>>, vector<512x128xf32>
    %10 = arith.truncf %9 : vector<512x128xf32> to vector<512x128xbf16>
    %c0_11 = arith.constant 0 : index
    %c128 = arith.constant 128 : index
    %11 = vector.load %arg8[%c0_11, %c128] : memref<512x1152xbf16, #tpu.memory_space<vmem>>, vector<512x128xbf16>
    tpu.vector_store %arg8[%c0_11, %c128], %10 {strides = array<i32>} : memref<512x1152xbf16, #tpu.memory_space<vmem>>, vector<512x128xbf16>,
    %c2 = arith.constant 2 : index
    %c0_12 = arith.constant 0 : index
    %12 = vector.load %arg7[%c2, %c0_12] : memref<576x128xf32, #tpu.memory_space<vmem>>, vector<512x128xf32>
    %13 = arith.truncf %12 : vector<512x128xf32> to vector<512x128xbf16>
    %c0_13 = arith.constant 0 : index
    %c256 = arith.constant 256 : index
    %14 = vector.load %arg8[%c0_13, %c256] : memref<512x1152xbf16, #tpu.memory_space<vmem>>, vector<512x128xbf16>
    tpu.vector_store %arg8[%c0_13, %c256], %13 {strides = array<i32>} : memref<512x1152xbf16, #tpu.memory_space<vmem>>, vector<512x128xbf16>,
    %c24 = arith.constant 24 : index
    %c0_14 = arith.constant 0 : index
    %15 = vector.load %arg7[%c24, %c0_14] : memref<576x128xf32, #tpu.memory_space<vmem>>, vector<512x128xf32>
    %16 = arith.truncf %15 : vector<512x128xf32> to vector<512x128xbf16>
    %c0_15 = arith.constant 0 : index
    %c384 = arith.constant 384 : index
    %17 = vector.load %arg8[%c0_15, %c384] : memref<512x1152xbf16, #tpu.memory_space<vmem>>, vector<512x128xbf16>
    tpu.vector_store %arg8[%c0_15, %c384], %16 {strides = array<i32>} : memref<512x1152xbf16, #tpu.memory_space<vmem>>, vector<512x128xbf16>,
    %c25 = arith.constant 25 : index
    %c0_16 = arith.constant 0 : index
    %18 = vector.load %arg7[%c25, %c0_16] : memref<576x128xf32, #tpu.memory_space<vmem>>, vector<512x128xf32>
    %19 = arith.truncf %18 : vector<512x128xf32> to vector<512x128xbf16>
    %c0_17 = arith.constant 0 : index
    %c512_18 = arith.constant 512 : index
    %20 = vector.load %arg8[%c0_17, %c512_18] : memref<512x1152xbf16, #tpu.memory_space<vmem>>, vector<512x128xbf16>
    tpu.vector_store %arg8[%c0_17, %c512_18], %19 {strides = array<i32>} : memref<512x1152xbf16, #tpu.memory_space<vmem>>, vector<512x128xbf16>,
    %c26 = arith.constant 26 : index
    %c0_19 = arith.constant 0 : index
    %21 = vector.load %arg7[%c26, %c0_19] : memref<576x128xf32, #tpu.memory_space<vmem>>, vector<512x128xf32>
    %22 = arith.truncf %21 : vector<512x128xf32> to vector<512x128xbf16>
    %c0_20 = arith.constant 0 : index
    %c640 = arith.constant 640 : index
    %23 = vector.load %arg8[%c0_20, %c640] : memref<512x1152xbf16, #tpu.memory_space<vmem>>, vector<512x128xbf16>
    tpu.vector_store %arg8[%c0_20, %c640], %22 {strides = array<i32>} : memref<512x1152xbf16, #tpu.memory_space<vmem>>, vector<512x128xbf16>,
    %c48 = arith.constant 48 : index
    %c0_21 = arith.constant 0 : index
    %24 = vector.load %arg7[%c48, %c0_21] : memref<576x128xf32, #tpu.memory_space<vmem>>, vector<512x128xf32>
    %25 = arith.truncf %24 : vector<512x128xf32> to vector<512x128xbf16>
    %c0_22 = arith.constant 0 : index
    %c768 = arith.constant 768 : index
    %26 = vector.load %arg8[%c0_22, %c768] : memref<512x1152xbf16, #tpu.memory_space<vmem>>, vector<512x128xbf16>
    tpu.vector_store %arg8[%c0_22, %c768], %25 {strides = array<i32>} : memref<512x1152xbf16, #tpu.memory_space<vmem>>, vector<512x128xbf16>,
    %c49 = arith.constant 49 : index
    %c0_23 = arith.constant 0 : index
    %27 = vector.load %arg7[%c49, %c0_23] : memref<576x128xf32, #tpu.memory_space<vmem>>, vector<512x128xf32>
    %28 = arith.truncf %27 : vector<512x128xf32> to vector<512x128xbf16>
    %c0_24 = arith.constant 0 : index
    %c896 = arith.constant 896 : index
    %29 = vector.load %arg8[%c0_24, %c896] : memref<512x1152xbf16, #tpu.memory_space<vmem>>, vector<512x128xbf16>
    tpu.vector_store %arg8[%c0_24, %c896], %28 {strides = array<i32>} : memref<512x1152xbf16, #tpu.memory_space<vmem>>, vector<512x128xbf16>,
    %c50 = arith.constant 50 : index
    %c0_25 = arith.constant 0 : index
    %30 = vector.load %arg7[%c50, %c0_25] : memref<576x128xf32, #tpu.memory_space<vmem>>, vector<512x128xf32>
    %31 = arith.truncf %30 : vector<512x128xf32> to vector<512x128xbf16>
    %c0_26 = arith.constant 0 : index
    %c1024 = arith.constant 1024 : index
    %32 = vector.load %arg8[%c0_26, %c1024] : memref<512x1152xbf16, #tpu.memory_space<vmem>>, vector<512x128xbf16>
    tpu.vector_store %arg8[%c0_26, %c1024], %31 {strides = array<i32>} : memref<512x1152xbf16, #tpu.memory_space<vmem>>, vector<512x128xbf16>,
    %c0_27 = arith.constant 0 : index
    %c0_28 = arith.constant 0 : index
    %33 = vector.load %arg8[%c0_27, %c0_28] : memref<512x1152xbf16, #tpu.memory_space<vmem>>, vector<512x1152xbf16>
    %c0_29 = arith.constant 0 : index
    %c0_30 = arith.constant 0 : index
    %34 = vector.load %arg4[%c0_29, %c0_30] : memref<1152x128xbf16, #tpu.memory_space<vmem>>, vector<1152x128xbf16>
    %cst = arith.constant dense<0.000000e+00> : vector<512x128xf32>
    %35 = tpu.matmul %33, %34, %cst {dimension_numbers = #tpu.dot_dimension_numbers<[1], [0], [0], [1], [0, 0, 1, 1], [], []>} : vector<512x1152xbf16>, vector<1152x128xbf16>, vector<512x128xf32> -> vector<512x128xf32>
    %c0_31 = arith.constant 0 : index
    %c0_32 = arith.constant 0 : index
    %36 = vector.load %arg5[%c0_31, %c0_32] : memref<2x128xf32, #tpu.memory_space<vmem>>, vector<1x128xf32>
    %37 = vector.broadcast %36 : vector<1x128xf32> to vector<512x128xf32>
    %38 = arith.mulf %35, %37 : vector<512x128xf32>
    %c1_33 = arith.constant 1 : index
    %c0_34 = arith.constant 0 : index
    %39 = vector.load %arg5[%c1_33, %c0_34] : memref<2x128xf32, #tpu.memory_space<vmem>>, vector<1x128xf32>
    %40 = vector.broadcast %39 : vector<1x128xf32> to vector<512x128xf32>
    %41 = arith.addf %38, %40 : vector<512x128xf32>
    %cst_35 = arith.constant 0.000000e+00 : f32
    %42 = vector.broadcast %cst_35 : f32 to vector<512x128xf32>
    %43 = arith.maximumf %41, %42 : vector<512x128xf32>
    %c0_36 = arith.constant 0 : index
    %c0_37 = arith.constant 0 : index
    %44 = vector.load %arg6[%c0_36, %c0_37] : memref<512x128xf32, #tpu.memory_space<vmem>>, vector<512x128xf32>
    tpu.vector_store %arg6[%c0_36, %c0_37], %43 {strides = array<i32>} : memref<512x128xf32, #tpu.memory_space<vmem>>, vector<512x128xf32>,
    return
  }
  func.func @transform_0(%arg0: i32, %arg1: i32) -> (i32, i32) {
    %c0_i32 = arith.constant 0 : i32
    %c0_i32_0 = arith.constant 0 : i32
    return %arg1, %c0_i32 : i32, i32
  }
  func.func @transform_1(%arg0: i32, %arg1: i32) -> (i32, i32) {
    %c1_i32 = arith.constant 1 : i32
    %0 = arith.addi %arg1, %c1_i32 : i32
    %c8_i32 = arith.constant 8 : i32
    %1 = arith.muli %0, %c8_i32 : i32
    %c0_i32 = arith.constant 0 : i32
    %c0_i32_0 = arith.constant 0 : i32
    return %1, %c0_i32 : i32, i32
  }
  func.func @transform_2(%arg0: i32, %arg1: i32) -> (i32, i32) {
    %c0_i32 = arith.constant 0 : i32
    %c0_i32_0 = arith.constant 0 : i32
    return %c0_i32, %arg0 : i32, i32
  }
  func.func @transform_3(%arg0: i32, %arg1: i32) -> (i32, i32) {
    %c0_i32 = arith.constant 0 : i32
    %c0_i32_0 = arith.constant 0 : i32
    return %c0_i32, %arg0 : i32, i32
  }
  func.func @transform_4(%arg0: i32, %arg1: i32) -> (i32, i32) {
    %c0_i32 = arith.constant 0 : i32
    return %arg1, %arg0 : i32, i32
  }
}

</mosaic_0001>

<bundles_post_ra>
// kernel: tpu_custom_call.1
= control target key start
LH: loop header
LB: loop body
LE: loop exit
PB: predicated region body
PF: predicated region fallthrough
CT: control target
= control target key end

     0   :  { %s7365_s0 = inlined_call_operand.hbm [shape: bf16[1536,128], index: 0, kind: input, shape index: {}]   ;;  %s7366_s1 = inlined_call_operand.hbm [shape: bf16[1536,128], index: 1, kind: input, shape index: {}]   ;;  %s7367_s2 = inlined_call_operand.hbm [shape: bf16[1152,128], index: 2, kind: input, shape index: {}]   ;;  %s7368_s3 = inlined_call_operand.vmem [shape: f32[2,128], index: 3, kind: input, shape index: {}]   ;;  %s7369_s4 = inlined_call_operand.hbm [shape: f32[1024,128], index: 4, kind: output, shape index: {}]  }
   0x1   :  { %7388 = sst [smem:[#allocation39_spill]] %s7365_s0 }
   0x2   :  { %7389 = sst [smem:[#allocation40_spill]] %s7367_s2 }
   0x3   :  { %9 = vsyncpa [#allocation5], 0 }
   0x4   :  { %11 = vsyncpa [#allocation5 + $0x1], 0 }
   0x5   :  { %12 = vsyncpa [#allocation8], 0 }
   0x6   :  { %14 = vsyncpa [#allocation8 + $0x1], 0 }
   0x7   :  { %15 = vsyncpa [#allocation6], 0 }
   0x8   :  { %17 = vsyncpa [#allocation6 + $0x1], 0  ;;  %s5632_s15 = smov 0   ;;  %s5634_s16 = smov 0  }
   0x9   :  { %s5636_s17 = smov 0   ;;  %s5638_s18 = smov 0  }
   0xa   :  { %s5640_s19 = smov 0   ;;  %s5642_s20 = smov 0  }
   0xb   :  { %s5644_s21 = smov 0   ;;  %s5646_s22 = smov 0  }
   0xc   :  { %s5648_s23 = smov 0  }
   0xd LB: > { %7390 = sst [smem:[#allocation15_spill]] %s5584_s20  ;;  %s5676_s24 = sadd.s32 4294967295, %s5596_s23   ;;  %s5596_s23 = sphi %s5648_s23, %s23_s23   ;;  %s5592_s22 = sphi %s5646_s22, %s7493_s22   ;;  %s5588_s21 = sphi %s5644_s21, %s7492_s21   ;;  %s5584_s20 = sphi %s5642_s20, %s7491_s20   ;;  %s5580_s19 = sphi %s5640_s19, %s7498_s19   ;;  %s5576_s18 = sphi %s5638_s18, %s7497_s18   ;;  %s5572_s17 = sphi %s5636_s17, %s7496_s17   ;;  %s5568_s16 = sphi %s5634_s16, %s7495_s16   ;;  %s5564_s15 = sphi %s5632_s15, %s7494_s15  }
   0xe   : > { %7391 = sst [smem:[#allocation16_spill]] %s5592_s22  ;;  %s4412_s25 = sadd.s32 4294967294, %s5596_s23  }
   0xf   : > { %p55_p0 = scmp.ne.s32.totalorder %s5580_s19, %s5576_s18  ;;  %p7370_p1 = scmp.eq.s32.totalorder %s5676_s24, 0 }
  0x10   : > { %p85_p2 = scmp.ne.s32.totalorder %s5568_s16, %s5564_s15  ;;  %p169_p4 = scmp.eq.s32.totalorder %s4412_s25, 1 }
  0x11   : > { %p5685_p3 = por %p7370_p1, %p55_p0  ;;  %p4415_p6 = scmp.ge.s32.totalorder %s5596_s23, 1 }
  0x12   : > { %p5691_p5 = por %p85_p2, %p7370_p1  ;;  %p5696_p7 = por %p169_p4, %p55_p0 }
  0x13   : > { %s7392_s26 = scalar_select %p5685_p3, 1, 0 }
  0x14   : > { %s7393_s27 = scalar_select %p5691_p5, 1, 0 }
  0x15   : > { %s7394_s28 = scalar_select %p5696_p7, 1, 0 }
  0x16   : > { %p176_p8 = scmp.lt.s32.totalorder %s5596_s23, 3  ;;  %s5598_s30 = smov [#allocation9]  }
  0x17   : > { %s190_s5 = sshll.u32 %s5598_s30, 4  ;;  %s32_s7 = sadd.s32 1, %s5592_s22  ;;  %s191_s5 = int_to_ptr.vmem [resolvable:$true] %s190_s5 }
  0x18   : > { %p5701_p9 = pnand %p4415_p6, %p176_p8  ;;  %s7397_s2 = sld [smem:[#allocation40_spill]] }
  0x1a   : > { %s7395_s29 = scalar_select %p5701_p9, 1, 0 }
  0x1b   : > { %p5174_p10 = pneg %p5701_p9 }
  0x1d   : > { %p5710_p12 = pnand %p5174_p10, %p7370_p1 }
  0x1e   : > { %s5393_s10 = scalar_lea.hbm %s7397_s2, 9216 }
  0x1f   : > { %p5394_p13 = scmp.ne.s32.totalorder %s7397_s2, %s5393_s10  ;;  %p5395_p0 = pneg %p5710_p12 }
  0x20   : > { %p5400_p6 = scmp.lt.u32.totalorder %s5393_s10, %s7397_s2 }
  0x21   : > { %p5396_p2 = pnand %p5395_p0, %p5394_p13 }
  0x23   : > { %p5397_p4 = pneg %p5396_p2 }
  0x25   : > { %p5402_p8 = pnand %p5400_p6, %p5397_p4 }
  0x27   : > { %5405 = shalt.err (!%p5402_p8)
}
  0x28   : > { %s5406_s15 = scalar_lea.vmem %s191_s5, 9216  ;;  %p5414_p7 = scmp.lt.s32.totalorder %s191_s5, %s191_s5 }
  0x29   : > { %p5407_p10 = scmp.ne.s32.totalorder %s191_s5, %s5406_s15  ;;  %p5415_p5 = scmp.lt.s32.totalorder %s5406_s15, %s5406_s15 }
  0x2b   : > { %p5409_p11 = pnand %p5407_p10, %p5395_p0  ;;  %p5416_p3 = por %p5415_p5, %p5414_p7 }
  0x2d   : > { %p5410_p1 = pneg %p5409_p11 }
  0x2f   : > { %p5417_p9 = pnand %p5416_p3, %p5410_p1 }
  0x31   : > { %5420 = shalt.err (!%p5417_p9)
}
  0x32   : > { %s7374_s25 = smov 64   ;;  %s7376_s30 = smov 4  }
  0x33   : > { %5177 = dma.hbm_to_vmem [thread:$0]  (!%p5710_p12), %s7397_s2, 9216, %s191_s5, [#allocation8], %s7374_s25, %s7374_s25, %s7376_s30  }
  0x34   : > { %p163_p1 = scmp.eq.s32.totalorder %s5676_s24, 1  ;;  %p33_p3 = scmp.ge.s32.totalorder %s32_s7, 2 }
  0x35   : > { %s42_s10 = sadd.s32 1, %s5584_s20  ;;  %p49_p5 = scmp.ne.s32.totalorder %s5584_s20, %s5580_s19 }
  0x36   : > { %s7500_s7 = smov (%p33_p3, %s32_s7), 0  ;;  %p7381_p7 = scmp.eq.s32.totalorder %s5596_s23, 0 }
  0x37   : > { %7398 = sst [smem:[#allocation17_spill]] %s7500_s7  ;;  %s4508_s6 = sshll.u32 %s5592_s22, 3 }
  0x38   : > { %s39_s11 = ssub.s32 %s5592_s22, %s7500_s7  ;;  %s4509_s12 = sadd.s32 8, %s4508_s6 }
  0x39   : > { %p40_p9 = scmp.eq.s32.totalorder %s39_s11, 0  ;;  %s4510_s13 = sshll.u32 %s7500_s7, 3 }
  0x3a   : > { %s4511_s5 = sadd.s32 8, %s4510_s13  ;;  %p5745_p11 = por %p163_p1, %p49_p5 }
  0x3b   : > { %s5750_s15 = scalar_select %p40_p9, %s5584_s20, %s42_s10  }
  0x3c   : > { %s7399_s14 = scalar_select %p5745_p11, 1, 0 }
  0x3d   : > { %7400 = sst [smem:[#allocation18_spill]] %s5750_s15  ;;  %p51_p12 = por %p7381_p7, %p49_p5 }
  0x3e   : > { %s69_s8 = ssub.s32 %s4509_s12, %s4511_s5  ;;  %p7380_p13 = scmp.lt.s32.totalorder %s5596_s23, 2 }
  0x3f   : > { %s211_s9 = sand.u32 1, %s5584_s20   ;;  %s7378_s30 = sshll.u32 %s5592_s22, 12 }
  0x40   : > { %s4419_s25 = sshll.u32 %s211_s9, 8  ;;  %s7401_s0 = sld [smem:[#allocation39_spill]] }
  0x41   : > { %s215_s13 = scalar_lea.vmem [#allocation4], %s4419_s25  ;;  %p5768_p0 = pnand %p7380_p13, %p51_p12 }
  0x42   : > { %s222_s10 = sshll.u32 %s215_s13, 4  ;;  %p5772_p2 = scmp.eq.s32.totalorder %s69_s8, 0  ;;  %s5764_s10 = int_to_ptr.vmem [resolvable:$true] %s222_s10 }
  0x43   : > { %s5776_s2 = scalar_lea.sflag [#allocation5], %s211_s9  ;;  %p5423_p6 = pneg %p5768_p0 }
  0x46   : > { %s5762_s11 = scalar_lea.hbm %s7401_s0, %s7378_s30  ;;  %s5426_s30 = scalar_lea.hbm %s7401_s0, 12288 }
  0x47   : > { %s5421_s6 = scalar_lea.hbm %s5762_s11, 4096  ;;  %p5427_p1 = scmp.lt.u32.totalorder %s5762_s11, %s7401_s0 }
  0x48   : > { %p5422_p4 = scmp.ne.s32.totalorder %s5762_s11, %s5421_s6  ;;  %p5428_p3 = scmp.lt.u32.totalorder %s5426_s30, %s5421_s6 }
  0x49   : > { %p5430_p9 = scmp.lt.u32.totalorder %s5421_s6, %s5762_s11 }
  0x4a   : > { %p5424_p8 = pnand %p5423_p6, %p5422_p4  ;;  %p5429_p5 = por %p5428_p3, %p5427_p1 }
  0x4c   : > { %p5425_p10 = pneg %p5424_p8  ;;  %p5431_p12 = por %p5430_p9, %p5429_p5 }
  0x4e   : > { %p5432_p13 = pnand %p5431_p12, %p5425_p10 }
  0x50   : > { %5435 = shalt.err (!%p5432_p13)
}
  0x51   : > { %s5436_s8 = scalar_lea.vmem %s5764_s10, 4096  ;;  %s5601_s9 = smov [#allocation4]  }
  0x52   : > { %p5437_p4 = scmp.ne.s32.totalorder %s5764_s10, %s5436_s8  ;;  %s5441_s25 = sshll.u32 %s5601_s9, 4  ;;  %s5442_s25 = int_to_ptr.vmem [resolvable:$false] %s5441_s25 }
  0x53   : > { %s5443_s7 = scalar_lea.vmem %s5442_s25, 8192  ;;  %p5444_p11 = scmp.lt.s32.totalorder %s5764_s10, %s5442_s25 }
  0x54   : > { %p5439_p8 = pnand %p5437_p4, %p5423_p6  ;;  %p5445_p1 = scmp.lt.s32.totalorder %s5443_s7, %s5436_s8 }
  0x56   : > { %p5440_p7 = pneg %p5439_p8  ;;  %p5446_p3 = por %p5445_p1, %p5444_p11 }
  0x58   : > { %p5447_p5 = pnand %p5446_p3, %p5440_p7 }
  0x5a   : > { %5450 = shalt.err (!%p5447_p5)
}
  0x5b   : > { %s7404_s30 = smov 4   ;;  %s7405_s15 = smov 64  }
  0x5c   : > { %5181 = dma.hbm_to_vmem [thread:$0]  (!%p5768_p0), %s5762_s11, 4096, %s5764_s10, %s5776_s2, %s7405_s15, %s7405_s15, %s7404_s30  }
  0x5d   : > { %s7406_s6 = sshll.u32 %s5592_s22, 12  ;;  %s72_s9 = sadd.s32 1, %s5572_s17 }
  0x5e   : > { %s4321_s8 = scalar_lea.hbm %s7366_s1, %s7406_s6  ;;  %p79_p7 = scmp.ne.s32.totalorder %s5572_s17, %s5568_s16 }
  0x5f   : > { %s5818_s25 = scalar_select %p5772_p2, %s5572_s17, %s72_s9  }
  0x60   : > { %p7408_p11 = scmp.eq.s32.totalorder %s5596_s23, 0  ;;  %s232_s7 = sand.u32 1, %s5596_s23  }
  0x61   : > { %7407 = sst [smem:[#allocation19_spill]] %s5818_s25  ;;  %s5823_s0 = scalar_lea.hbm %s4321_s8, 4096 }
  0x62   : > { %p81_p13 = por %p79_p7, %p7408_p11  ;;  %s234_s20 = sand.u32 1, %s5572_s17  }
  0x63   : > { %s4422_s11 = sshll.u32 %s234_s20, 5  ;;  %p7409_p0 = scmp.lt.s32.totalorder %s5596_s23, 2 }
  0x64   : > { %s236_s5 = scalar_lea.vmem [#allocation7], %s4422_s11  ;;  %s5834_s6 = scalar_lea.sflag [#allocation8], %s232_s7 }
  0x65   : > { %p5828_p6 = pnand %p7409_p0, %p81_p13  ;;  %s245_s2 = sshll.u32 %s236_s5, 4  ;;  %s5832_s2 = int_to_ptr.vmem [resolvable:$true] %s245_s2 }
  0x66   : > { %s5481_s13 = scalar_lea.hbm %s4321_s8, 4608  ;;  %s5456_s9 = scalar_lea.hbm %s7366_s1, 12288 }
  0x67   : > { %p5452_p2 = scmp.ne.s32.totalorder %s5823_s0, %s5481_s13  ;;  %p5453_p10 = pneg %p5828_p6 }
  0x68   : > { %p5457_p4 = scmp.lt.u32.totalorder %s5823_s0, %s7366_s1  ;;  %p5458_p8 = scmp.lt.u32.totalorder %s5456_s9, %s5481_s13 }
  0x69   : > { %p5454_p9 = pnand %p5453_p10, %p5452_p2  ;;  %p5460_p3 = scmp.lt.u32.totalorder %s5481_s13, %s5823_s0 }
  0x6a   : > { %p5459_p1 = por %p5458_p8, %p5457_p4 }
  0x6b   : > { %p5455_p12 = pneg %p5454_p9 }
  0x6c   : > { %p5461_p5 = por %p5460_p3, %p5459_p1 }
  0x6e   : > { %p5462_p7 = pnand %p5461_p5, %p5455_p12 }
  0x70   : > { %5465 = shalt.err (!%p5462_p7)
}
  0x71   : > { %s5466_s8 = scalar_lea.vmem %s5832_s2, 512  ;;  %s5602_s7 = smov [#allocation7]  }
  0x72   : > { %p5467_p11 = scmp.ne.s32.totalorder %s5832_s2, %s5466_s8  ;;  %s5471_s11 = sshll.u32 %s5602_s7, 4  ;;  %s5472_s11 = int_to_ptr.vmem [resolvable:$false] %s5471_s11 }
  0x73   : > { %s5473_s22 = scalar_lea.vmem %s5472_s11, 1024  ;;  %p5474_p2 = scmp.lt.s32.totalorder %s5832_s2, %s5472_s11 }
  0x74   : > { %p5469_p13 = pnand %p5467_p11, %p5453_p10  ;;  %p5475_p9 = scmp.lt.s32.totalorder %s5473_s22, %s5466_s8 }
  0x76   : > { %p5470_p0 = pneg %p5469_p13  ;;  %p5476_p4 = por %p5475_p9, %p5474_p2 }
  0x78   : > { %p5477_p8 = pnand %p5476_p4, %p5470_p0 }
  0x7a   : > { %5480 = shalt.err (!%p5477_p8)
}
  0x7b   : > { %5184 = dma.hbm_to_vmem [thread:$0]  (!%p5828_p6), %s5823_s0, 512, %s5832_s2, %s5834_s6, %s7405_s15, %s7405_s15, %s7404_s30  }
  0x7c   : > { %p7411_p10 = scmp.ne.s32.totalorder %s7395_s29, 0 }
  0x7e   : > { %257 = sbr.rel (%p7411_p10) target bundleno = 1018 (0x3fa), region = 36 }
  0x85   : > { %s5867_s25 = sand.u32 1, %s5580_s19   ;;  %p7412_p12 = scmp.ne.s32.totalorder %s7392_s26, 0 }
  0x86   : > { %s4425_s5 = sshll.u32 %s5867_s25, 8  ;;  %s260_s13 = scalar_lea.sflag [#allocation5], %s5867_s25 }
  0x87   : > { %s5871_s20 = scalar_lea.vmem [#allocation4], %s4425_s5 }
  0x88   : > { %5547 = dma.done.wait (%p7412_p12), %s260_s13, 4096  }
  0x89   : > { %5549 = vsyncadd (%p7412_p12), %s260_s13, 4294963200  ;;  %s268_s0 = sand.u32 1, %s5676_s24   ;;  %s270_s29 = sand.u32 1, %s5568_s16  }
  0x8a   : > { %s4426_s30 = sshll.u32 %s270_s29, 5  ;;  %s269_s15 = scalar_lea.sflag [#allocation8], %s268_s0 }
  0x8b   : > { %s5879_s10 = scalar_lea.vmem [#allocation7], %s4426_s30  ;;  %p7413_p6 = scmp.ne.s32.totalorder %s7393_s27, 0 }
  0x8d   : > { %5551 = dma.done.wait (%p7413_p6), %s269_s15, 512  }
  0x8e   : > { %5553 = vsyncadd (%p7413_p6), %s269_s15, 4294966784  ;;  %p7414_p1 = scmp.eq.s32.totalorder %s5676_s24, 0 }
  0x90   : > { %5555 = dma.done.wait (%p7414_p1), [#allocation8], 9216   ;;  %p7415_p3 = pmov %p7414_p1 }
  0x91   : > { %v5603_v0 = vmov 0   ;;  %v5271_v1 = vld [vmem:[#allocation9] sm:$0xff]   ;;  %v5273_v3 = vld [vmem:[#allocation9 + $0x8] sm:$0xff]   ;;  %v5275_v5 = vld [vmem:[#allocation9 + $0x10] sm:$0xff]   ;;  %s4428_s6 = sshll.u32 %s5867_s25, 9  ;;  %s4513_s9 = sshll.u32 %s5588_s21, 13 }
  0x92   : > { %5557 = vsyncadd (%p7415_p3), [#allocation8], 4294958080  ;;  %2552 = vmatprep.subr.bf16.mxu1 %v5603_v0  ;;  %2841 = vmatprep.subr.bf16.mxu0 %v5603_v0  ;;  %v5891_v2 = vld [vmem:[#allocation9 + $0x80] sm:$0xff]   ;;  %v5895_v4 = vld [vmem:[#allocation9 + $0x88] sm:$0xff]   ;;  %s6994_s12 = scalar_lea.vmem [#allocation10], %s4428_s6  ;;  %s7302_s22 = scalar_lea.hbm %s7369_s4, %s4513_s9 }
  0x93   : > { %2553 = vmatpush1.bf16.msra.mxu1 %v5271_v1  ;;  %2842 = vmatpush1.bf16.msra.mxu0 %v5891_v2  ;;  %v5900_v6 = vld [vmem:[#allocation9 + $0x90] sm:$0xff]   ;;  %v5277_v7 = vld [vmem:[#allocation9 + $0x18] sm:$0xff]   ;;  %v5279_v9 = vld [vmem:[#allocation9 + $0x20] sm:$0xff]   ;;  %s4278_s8 = sshll.u32 %s6994_s12, 4  ;;  %s4264_s21 = scalar_lea.sflag [#allocation6], %s5867_s25  ;;  %s7304_s8 = int_to_ptr.vmem [resolvable:$true] %s4278_s8 }
  0x94   : > { %2554 = vmatprep.subr.bf16.mxu1 %v5603_v0  ;;  %2843 = vmatprep.subr.bf16.mxu0 %v5603_v0  ;;  %v5905_v8 = vld [vmem:[#allocation9 + $0x98] sm:$0xff]   ;;  %v5910_v10 = vld [vmem:[#allocation9 + $0xa0] sm:$0xff]   ;;  %v5281_v11 = vld [vmem:[#allocation9 + $0x28] sm:$0xff]   ;;  %s5482_s5 = scalar_lea.vmem %s7304_s8, 8192  ;;  %p7486_p7 = scmp.ne.s32.totalorder %s7399_s14, 0 }
  0x95   : > { %v5915_v12 = vld [vmem:[#allocation9 + $0xa8] sm:$0xff]   ;;  %v5283_v13 = vld [vmem:[#allocation9 + $0x30] sm:$0xff]   ;;  %v5285_v15 = vld [vmem:[#allocation9 + $0x38] sm:$0xff]   ;;  %p5483_p5 = scmp.ne.s32.totalorder %s7304_s8, %s5482_s5  ;;  %s5604_s13 = smov [#allocation10]  }
  0x96   : > { %v5920_v14 = vld [vmem:[#allocation9 + $0xb0] sm:$0xff]   ;;  %v5925_v16 = vld [vmem:[#allocation9 + $0xb8] sm:$0xff]   ;;  %v5287_v17 = vld [vmem:[#allocation9 + $0x40] sm:$0xff]  }
  0x97   : > { %2555 = vmatpush1.bf16.msra.mxu1 %v5273_v3  ;;  %2844 = vmatpush1.bf16.msra.mxu0 %v5895_v4  ;;  %v5930_v18 = vld [vmem:[#allocation9 + $0xc0] sm:$0xff]   ;;  %v4658_v20 = vld [vmem:[%s5871_s20 + $0x8] sm:$0xff]   ;;  %v4659_v21 = vld [vmem:[%s5871_s20 + $0x10] sm:$0xff]   ;;  %p5484_p11 = pnand %p5483_p5, %p7486_p7 }
  0x98   : > { %2556 = vmatprep.subr.bf16.mxu1 %v5603_v0  ;;  %2845 = vmatprep.subr.bf16.mxu0 %v5603_v0  ;;  %v4515_v19 = vld [vmem:[%s5871_s20] sm:$0xff]   ;;  %v4520_v24 = vunpack.c.l.bf16 %v4658_v20  ;;  %v4521_v25 = vunpack.c.h.bf16 %v4658_v20  ;;  %v5303_v26 = vld [vmem:[%s5871_s20 + $0xc] ss:$4 sps:$4 sm:$0xff]   ;;  %v4524_v28 = vunpack.c.l.bf16 %v4659_v21  ;;  %v4525_v29 = vunpack.c.h.bf16 %v4659_v21  ;;  %v4660_v31 = vld [vmem:[%s5871_s20 + $0x18] sm:$0xff]  }
  0x99   : > { %v4516_v22 = vunpack.c.l.bf16 %v4515_v19  ;;  %v4517_v23 = vunpack.c.h.bf16 %v4515_v19  ;;  %v5289_v27 = vld [vmem:[#allocation9 + $0x48] sm:$0xff]   ;;  %2873 = vmatprep.mubr.bf16.mxu0 %v5303_v26  ;;  %v4528_v32 = vunpack.c.l.bf16 %v4660_v31  ;;  %v4529_v33 = vunpack.c.h.bf16 %v4660_v31  ;;  %v5291_v34 = vld [vmem:[#allocation9 + $0x50] sm:$0xff]   ;;  %v4661_v35 = vld [vmem:[%s5871_s20 + $0x20] sm:$0xff]   ;;  %p5485_p13 = pneg %p5484_p11 }
  0x9a   : > { %v5939_v30 = vld [vmem:[#allocation9 + $0xc8] sm:$0xff]   ;;  %450 = vst [vmem:[#allocation2 + $0x10] sm:$0xff] %v4520_v24  ;;  %451 = vst [vmem:[#allocation2 + $0x18] sm:$0xff] %v4521_v25  ;;  %v5946_v36 = vld [vmem:[#allocation9 + $0xd0] sm:$0xff]   ;;  %v4532_v37 = vunpack.c.l.bf16 %v4661_v35  ;;  %v4533_v38 = vunpack.c.h.bf16 %v4661_v35 }
  0x9b   : > { %2557 = vmatpush1.bf16.msra.mxu1 %v5275_v5  ;;  %2846 = vmatpush1.bf16.msra.mxu0 %v5900_v6  ;;  %448 = vst [vmem:[#allocation2] sm:$0xff] %v4516_v22  ;;  %449 = vst [vmem:[#allocation2 + $0x8] sm:$0xff] %v4517_v23  ;;  %v4662_v39 = vld [vmem:[%s5871_s20 + $0x28] sm:$0xff]   ;;  %v5293_v40 = vld [vmem:[#allocation9 + $0x58] sm:$0xff]  }
  0x9c   : > { %2558 = vmatprep.subr.bf16.mxu1 %v5603_v0  ;;  %2847 = vmatprep.subr.bf16.mxu0 %v5603_v0  ;;  %452 = vst [vmem:[#allocation2 + $0x20] sm:$0xff] %v4524_v28  ;;  %453 = vst [vmem:[#allocation2 + $0x28] sm:$0xff] %v4525_v29  ;;  %v4536_v43 = vunpack.c.l.bf16 %v4662_v39  ;;  %v4537_v44 = vunpack.c.h.bf16 %v4662_v39  ;;  %v5952_v45 = vld [vmem:[#allocation9 + $0xd8] sm:$0xff]   ;;  %v5295_v47 = vld [vmem:[#allocation9 + $0x60] sm:$0xff]  }
  0x9d   : > { %454 = vst [vmem:[#allocation2 + $0x30] sm:$0xff] %v4528_v32  ;;  %455 = vst [vmem:[#allocation2 + $0x38] sm:$0xff] %v4529_v33  ;;  %v5957_v48 = vld [vmem:[#allocation9 + $0xe0] sm:$0xff]   ;;  %v5297_v49 = vld [vmem:[#allocation9 + $0x68] sm:$0xff]  }
  0x9e   : > { %456 = vst [vmem:[#allocation2 + $0x40] sm:$0xff] %v4532_v37  ;;  %457 = vst [vmem:[#allocation2 + $0x48] sm:$0xff] %v4533_v38  ;;  %v4663_v50 = vld [vmem:[%s5871_s20 + $0x30] sm:$0xff]   ;;  %v5963_v51 = vld [vmem:[#allocation9 + $0xe8] sm:$0xff]  }
  0x9f   : > { %2559 = vmatpush1.bf16.msra.mxu1 %v5277_v7  ;;  %2848 = vmatpush1.bf16.msra.mxu0 %v5905_v8  ;;  %458 = vst [vmem:[#allocation2 + $0x50] sm:$0xff] %v4536_v43  ;;  %459 = vst [vmem:[#allocation2 + $0x58] sm:$0xff] %v4537_v44  ;;  %v4540_v52 = vunpack.c.l.bf16 %v4663_v50  ;;  %v4541_v53 = vunpack.c.h.bf16 %v4663_v50  ;;  %v5299_v54 = vld [vmem:[#allocation9 + $0x70] sm:$0xff]   ;;  %v4664_v55 = vld [vmem:[%s5871_s20 + $0x38] sm:$0xff]  }
  0xa0   : > { %2560 = vmatprep.subr.bf16.mxu1 %v5603_v0  ;;  %2849 = vmatprep.subr.bf16.mxu0 %v5603_v0  ;;  %v5969_v56 = vld [vmem:[#allocation9 + $0xf0] sm:$0xff]   ;;  %v4544_v57 = vunpack.c.l.bf16 %v4664_v55  ;;  %v4545_v58 = vunpack.c.h.bf16 %v4664_v55  ;;  %v5301_v59 = vld [vmem:[#allocation9 + $0x78] sm:$0xff]   ;;  %v4665_v62 = vld [vmem:[%s5871_s20 + $0x40] sm:$0xff]  }
  0xa1   : > { %460 = vst [vmem:[#allocation2 + $0x60] sm:$0xff] %v4540_v52  ;;  %461 = vst [vmem:[#allocation2 + $0x68] sm:$0xff] %v4541_v53  ;;  %v5972_v60 = vld [vmem:[#allocation9 + $0xf8] sm:$0xff]   ;;  %v4548_v1 = vunpack.c.l.bf16 %v4665_v62  ;;  %v4549_v3 = vunpack.c.h.bf16 %v4665_v62  ;;  %v5306_v26 = vld [vmem:[#allocation9 + $0x108] sm:$0xff]  }
  0xa2   : > { %v664_v41 = vld [vmem:[#allocation2 + $0x1] sm:$0xff]  ;;  %v665_v42 = vld [vmem:[#allocation2 + $0x9] sm:$0xff]  ;;  %462 = vst [vmem:[#allocation2 + $0x70] sm:$0xff] %v4544_v57  ;;  %463 = vst [vmem:[#allocation2 + $0x78] sm:$0xff] %v4545_v58 }
  0xa3   : > { %2561 = vmatpush1.bf16.msra.mxu1 %v5279_v9  ;;  %2850 = vmatpush1.bf16.msra.mxu0 %v5910_v10  ;;  %v728_v46 = vpack.c.bf16 %v665_v42, %v664_v41  ;;  %v792_v61 = vld [vmem:[#allocation2 + $0x2] sm:$0xff]  ;;  %v793_v63 = vld [vmem:[#allocation2 + $0xa] sm:$0xff]  ;;  %v5978_v7 = vld [vmem:[#allocation2 + $0x19] sm:$0xff]  ;;  %464 = vst [vmem:[#allocation2 + $0x80] sm:$0xff] %v4548_v1 }
  0xa4   : > { %2562 = vmatprep.subr.bf16.mxu1 %v5603_v0  ;;  %2851 = vmatprep.subr.bf16.mxu0 %v5603_v0  ;;  %v666_v5 = vld [vmem:[#allocation2 + $0x11] sm:$0xff]  ;;  %v5304_v9 = vld [vmem:[%s5871_s20] sm:$0xff]  ;;  %465 = vst [vmem:[#allocation2 + $0x88] sm:$0xff] %v4549_v3  ;;  %v5992_v25 = vld [vmem:[#allocation2 + $0x29] sm:$0xff] }
  0xa5   : > { %2584 = vmatprep.mubr.bf16.mxu1 %v728_v46  ;;  %v5307_v21 = vld [vmem:[%s5871_s20 + $0x14] ss:$4 sps:$4 sm:$0xff]   ;;  %v5990_v24 = vld [vmem:[#allocation2 + $0x21] sm:$0xff] }
  0xa6   : > { %v794_v22 = vld [vmem:[#allocation2 + $0x12] sm:$0xff]  ;;  %v5987_v23 = vld [vmem:[#allocation2 + $0x1a] sm:$0xff]  ;;  %v730_v29 = vpack.c.bf16 %v5992_v25, %v5990_v24  ;;  %v4670_v41 = vld [vmem:[%s5871_s20 + $0x68] sm:$0xff]  }
  0xa7   : > { %2563 = vmatpush1.bf16.msra.mxu1 %v5281_v11  ;;  %2852 = vmatpush1.bf16.msra.mxu0 %v5915_v12  ;;  %v856_v11 = vpack.c.bf16 %v793_v63, %v792_v61  ;;  %v857_v28 = vpack.c.bf16 %v5987_v23, %v794_v22  ;;  %v4668_v31 = vld [vmem:[%s5871_s20 + $0x58] sm:$0xff]   ;;  %v5309_v37 = vld [vmem:[#allocation9 + $0x110] sm:$0xff]   ;;  %v4669_v39 = vld [vmem:[%s5871_s20 + $0x60] sm:$0xff]   ;;  %v4568_v43 = vunpack.c.l.bf16 %v4670_v41  ;;  %v4569_v44 = vunpack.c.h.bf16 %v4670_v41 }
  0xa8   : > { %2564 = vmatprep.subr.bf16.mxu1 %v5603_v0  ;;  %2853 = vmatprep.subr.bf16.mxu0 %v5603_v0  ;;  %v4561_v35 = vunpack.c.h.bf16 %v4668_v31  ;;  %v5311_v38 = vld [vmem:[%s5871_s20 + $0x1c] ss:$4 sps:$4 sm:$0xff]   ;;  %v6013_v50 = vld [vmem:[#allocation2 + $0x31] sm:$0xff]  ;;  %v4678_v41 = vld [vmem:[%s5871_s20 + $0xa8] sm:$0xff]  }
  0xa9   : > { %v5310_v42 = vld [vmem:[#allocation9 + $0x118] sm:$0xff]   ;;  %v6008_v46 = vld [vmem:[#allocation2 + $0x22] sm:$0xff]  ;;  %474 = vst [vmem:[#allocation2 + $0xd0] sm:$0xff] %v4568_v43  ;;  %475 = vst [vmem:[#allocation2 + $0xd8] sm:$0xff] %v4569_v44  ;;  %v4600_v43 = vunpack.c.l.bf16 %v4678_v41 }
  0xaa   : > { %471 = vst [vmem:[#allocation2 + $0xb8] sm:$0xff] %v4561_v35  ;;  %v6015_v52 = vld [vmem:[#allocation2 + $0x39] sm:$0xff] }
  0xab   : > { %2565 = vmatpush1.bf16.msra.mxu1 %v5283_v13  ;;  %2854 = vmatpush1.bf16.msra.mxu0 %v5920_v14  ;;  %v4666_v13 = vld [vmem:[%s5871_s20 + $0x48] sm:$0xff]   ;;  %v4672_v55 = vld [vmem:[%s5871_s20 + $0x78] sm:$0xff]   ;;  %v4673_v61 = vld [vmem:[%s5871_s20 + $0x80] sm:$0xff]   ;;  %v731_v63 = vpack.c.bf16 %v6015_v52, %v6013_v50  ;;  %490 = vst [vmem:[#allocation2 + $0x150] sm:$0xff] %v4600_v43 }
  0xac   : > { %2566 = vmatprep.subr.bf16.mxu1 %v5603_v0  ;;  %2855 = vmatprep.subr.bf16.mxu0 %v5603_v0  ;;  %v4552_v19 = vunpack.c.l.bf16 %v4666_v13  ;;  %v4553_v20 = vunpack.c.h.bf16 %v4666_v13  ;;  %v4576_v57 = vunpack.c.l.bf16 %v4672_v55  ;;  %v4577_v58 = vunpack.c.h.bf16 %v4672_v55  ;;  %v5318_v35 = vld [vmem:[#allocation9 + $0x138] sm:$0xff]   ;;  %v5321_v44 = vld [vmem:[#allocation9 + $0x140] sm:$0xff]  }
  0xad   : > { %v4580_v1 = vunpack.c.l.bf16 %v4673_v61  ;;  %v4581_v3 = vunpack.c.h.bf16 %v4673_v61  ;;  %v6079_v61 = vld [vmem:[#allocation2 + $0x5a] sm:$0xff] }
  0xae   : > { %466 = vst [vmem:[#allocation2 + $0x90] sm:$0xff] %v4552_v19  ;;  %467 = vst [vmem:[#allocation2 + $0x98] sm:$0xff] %v4553_v20  ;;  %v6034_v19 = vld [vmem:[#allocation2 + $0x3a] sm:$0xff]  ;;  %v6038_v20 = vld [vmem:[#allocation2 + $0x49] sm:$0xff] }
  0xaf   : > { %2567 = vmatpush1.bf16.msra.mxu1 %v5285_v15  ;;  %2856 = vmatpush1.bf16.msra.mxu0 %v5925_v16  ;;  %v5305_v15 = vld [vmem:[#allocation9 + $0x100] sm:$0xff]   ;;  %478 = vst [vmem:[#allocation2 + $0xf0] sm:$0xff] %v4576_v57  ;;  %479 = vst [vmem:[#allocation2 + $0xf8] sm:$0xff] %v4577_v58 }
  0xb0   : > { %2568 = vmatprep.subr.bf16.mxu1 %v5603_v0  ;;  %2857 = vmatprep.subr.bf16.mxu0 %v5603_v0  ;;  %480 = vst [vmem:[#allocation2 + $0x100] sm:$0xff] %v4580_v1  ;;  %481 = vst [vmem:[#allocation2 + $0x108] sm:$0xff] %v4581_v3  ;;  %v5324_v1 = vld [vmem:[%s5871_s20 + $0x28] sm:$0xff] }
  0xb3   : > { %2569 = vmatpush1.bf16.msra.mxu1 %v5287_v17  ;;  %2858 = vmatpush1.bf16.msra.mxu0 %v5930_v18  ;;  %v729_v17 = vpack.c.bf16 %v5978_v7, %v666_v5  ;;  %v5313_v5 = vld [vmem:[#allocation9 + $0x120] sm:$0xff]  }
  0xb4   : > { %2570 = vmatprep.subr.bf16.mxu1 %v5603_v0  ;;  %2859 = vmatprep.subr.bf16.mxu0 %v5603_v0 }
  0xb7   : > { %2571 = vmatpush1.bf16.msra.mxu1 %v5289_v27  ;;  %2860 = vmatpush1.bf16.msra.mxu0 %v5939_v30  ;;  %v5308_v27 = vld [vmem:[%s5871_s20 + $0x8] sm:$0xff] }
  0xb8   : > { %2572 = vmatprep.subr.bf16.mxu1 %v5603_v0  ;;  %2861 = vmatprep.subr.bf16.mxu0 %v5603_v0 }
  0xbb   : > { %2573 = vmatpush1.bf16.msra.mxu1 %v5291_v34  ;;  %2862 = vmatpush1.bf16.msra.mxu0 %v5946_v36  ;;  %v4560_v34 = vunpack.c.l.bf16 %v4668_v31  ;;  %v5317_v31 = vld [vmem:[#allocation9 + $0x130] sm:$0xff]  }
  0xbc   : > { %2574 = vmatprep.subr.bf16.mxu1 %v5603_v0  ;;  %2863 = vmatprep.subr.bf16.mxu0 %v5603_v0 }
  0xbd   : > { %470 = vst [vmem:[#allocation2 + $0xb0] sm:$0xff] %v4560_v34  ;;  %v4677_v34 = vld [vmem:[%s5871_s20 + $0xa0] sm:$0xff]  }
  0xbf   : > { %2575 = vmatpush1.bf16.msra.mxu1 %v5293_v40  ;;  %2864 = vmatpush1.bf16.msra.mxu0 %v5952_v45  ;;  %v4564_v40 = vunpack.c.l.bf16 %v4669_v39 }
  0xc0   : > { %2576 = vmatprep.subr.bf16.mxu1 %v5603_v0  ;;  %2865 = vmatprep.subr.bf16.mxu0 %v5603_v0 }
  0xc1   : > { %472 = vst [vmem:[#allocation2 + $0xc0] sm:$0xff] %v4564_v40  ;;  %v4597_v40 = vunpack.c.h.bf16 %v4677_v34 }
  0xc3   : > { %2577 = vmatpush1.bf16.msra.mxu1 %v5295_v47  ;;  %2866 = vmatpush1.bf16.msra.mxu0 %v5957_v48  ;;  %v6010_v47 = vld [vmem:[#allocation2 + $0x2a] sm:$0xff]  ;;  %489 = vst [vmem:[#allocation2 + $0x148] sm:$0xff] %v4597_v40 }
  0xc4   : > { %2578 = vmatprep.subr.bf16.mxu1 %v5603_v0  ;;  %2867 = vmatprep.subr.bf16.mxu0 %v5603_v0  ;;  %v858_v62 = vpack.c.bf16 %v6010_v47, %v6008_v46  ;;  %v4682_v40 = vld [vmem:[%s5871_s20 + $0xc8] sm:$0xff]  }
  0xc7   : > { %2579 = vmatpush1.bf16.msra.mxu1 %v5297_v49  ;;  %2868 = vmatpush1.bf16.msra.mxu0 %v5963_v51  ;;  %v4671_v49 = vld [vmem:[%s5871_s20 + $0x70] sm:$0xff]  }
  0xc8   : > { %2580 = vmatprep.subr.bf16.mxu1 %v5603_v0  ;;  %2869 = vmatprep.subr.bf16.mxu0 %v5603_v0  ;;  %v4572_v53 = vunpack.c.l.bf16 %v4671_v49 }
  0xca   : > { %476 = vst [vmem:[#allocation2 + $0xe0] sm:$0xff] %v4572_v53  ;;  %v4601_v53 = vunpack.c.h.bf16 %v4678_v41 }
  0xcb   : > { %2581 = vmatpush1.bf16.msra.mxu1 %v5299_v54  ;;  %2870 = vmatpush1.bf16.msra.mxu0 %v5969_v56  ;;  %v4573_v54 = vunpack.c.h.bf16 %v4671_v49  ;;  %v5323_v49 = vld [vmem:[%s5871_s20 + $0x34] ss:$4 sps:$4 sm:$0xff]  }
  0xcc   : > { %2582 = vmatprep.subr.bf16.mxu1 %v5603_v0  ;;  %2871 = vmatprep.subr.bf16.mxu0 %v5603_v0  ;;  %491 = vst [vmem:[#allocation2 + $0x158] sm:$0xff] %v4601_v53  ;;  %v1240_v53 = vpack.c.bf16 %v6008_v46, %v5987_v23  ;;  %v4683_v23 = vld [vmem:[%s5871_s20 + $0xd0] sm:$0xff]   ;;  %v5335_v46 = vld [vmem:[%s5871_s20 + $0x40] sm:$0xff] }
  0xcd   : > { %477 = vst [vmem:[#allocation2 + $0xe8] sm:$0xff] %v4573_v54  ;;  %v4679_v54 = vld [vmem:[%s5871_s20 + $0xb0] sm:$0xff]  }
  0xce   : > { %v4604_v58 = vunpack.c.l.bf16 %v4679_v54  ;;  %v4605_v3 = vunpack.c.h.bf16 %v4679_v54  ;;  %v6141_v54 = vld [vmem:[#allocation2 + $0x91] sm:$0xff] }
  0xcf   : > { %2583 = vmatpush1.bf16.msra.mxu1 %v5301_v59  ;;  %2872 = vmatpush1.bf16.msra.mxu0 %v5972_v60  ;;  %v5312_v59 = vld [vmem:[%s5871_s20 + $0x10] sm:$0xff] }
  0xd0   : > { %4812 = vmatprep.subr.bf16.mxu1 %v5603_v0  ;;  %3130 = vmatprep.subr.bf16.mxu0 %v5603_v0  ;;  %492 = vst [vmem:[#allocation2 + $0x160] sm:$0xff] %v4604_v58  ;;  %493 = vst [vmem:[#allocation2 + $0x168] sm:$0xff] %v4605_v3  ;;  %v1112_v58 = vpack.c.bf16 %v5990_v24, %v5978_v7  ;;  %v5339_v24 = vld [vmem:[#allocation9 + $0x188] sm:$0xff]   ;;  %v4684_v3 = vld [vmem:[%s5871_s20 + $0xd8] sm:$0xff]  }
  0xd2   : > { %2585 = vmatmul.mubr.bf16.vlgmr.msra.gmra.mrb[0].mxu1 %v5304_v9  ;;  %2874 = vmatmul.mubr.bf16.vlgmr.msra.gmra.mrb[0].mxu0 %v856_v11  ;;  %v5315_v9 = vld [vmem:[%s5871_s20 + $0x24] ss:$4 sps:$4 sm:$0xff]  }
  0xd3   : > { %4828 = vmatpush1.bf16.msra.mxu1 %v5891_v2  ;;  %3131 = vmatpush1.bf16.msra.mxu0 %v5305_v15  ;;  %v4667_v2 = vld [vmem:[%s5871_s20 + $0x50] sm:$0xff]   ;;  %v5314_v15 = vld [vmem:[#allocation9 + $0x128] sm:$0xff]  }
  0xd4   : > { %2592 = vmatprep.mubr.bf16.mxu1 %v729_v17  ;;  %3132 = vmatprep.subr.bf16.mxu0 %v5603_v0  ;;  %v4556_v32 = vunpack.c.l.bf16 %v4667_v2  ;;  %v4557_v33 = vunpack.c.h.bf16 %v4667_v2  ;;  %v6032_v17 = vld [vmem:[#allocation2 + $0x32] sm:$0xff] }
  0xd5   : > { %2881 = vmatprep.mubr.bf16.mxu0 %v5307_v21  ;;  %4813 = vmatprep.subr.bf16.mxu1 %v5603_v0  ;;  %v4675_v21 = vld [vmem:[%s5871_s20 + $0x90] sm:$0xff]   ;;  %v4676_v2 = vld [vmem:[%s5871_s20 + $0x98] sm:$0xff]  }
  0xd6   : > { %468 = vst [vmem:[#allocation2 + $0xa0] sm:$0xff] %v4556_v32  ;;  %469 = vst [vmem:[#allocation2 + $0xa8] sm:$0xff] %v4557_v33  ;;  %v4588_v22 = vunpack.c.l.bf16 %v4675_v21  ;;  %v5319_v32 = vld [vmem:[%s5871_s20 + $0x2c] ss:$4 sps:$4 sm:$0xff]   ;;  %v4592_v33 = vunpack.c.l.bf16 %v4676_v2 }
  0xd7   : > { %4829 = vmatpush1.bf16.msra.mxu1 %v5895_v4  ;;  %3133 = vmatpush1.bf16.msra.mxu0 %v5306_v26  ;;  %v4565_v4 = vunpack.c.h.bf16 %v4669_v39  ;;  %v4589_v26 = vunpack.c.h.bf16 %v4675_v21  ;;  %v4596_v39 = vunpack.c.l.bf16 %v4677_v34  ;;  %v6100_v21 = vld [vmem:[#allocation2 + $0x6a] sm:$0xff]  ;;  %v6121_v34 = vld [vmem:[#allocation2 + $0x7a] sm:$0xff] }
  0xd8   : > { %4814 = vmatprep.subr.bf16.mxu1 %v5603_v0  ;;  %3134 = vmatprep.subr.bf16.mxu0 %v5603_v0  ;;  %484 = vst [vmem:[#allocation2 + $0x120] sm:$0xff] %v4588_v22  ;;  %486 = vst [vmem:[#allocation2 + $0x130] sm:$0xff] %v4592_v33  ;;  %v6102_v22 = vld [vmem:[#allocation2 + $0x71] sm:$0xff]  ;;  %v5331_v33 = vld [vmem:[%s5871_s20 + $0x44] ss:$4 sps:$4 sm:$0xff]  }
  0xd9   : > { %473 = vst [vmem:[#allocation2 + $0xc8] sm:$0xff] %v4565_v4  ;;  %485 = vst [vmem:[#allocation2 + $0x128] sm:$0xff] %v4589_v26  ;;  %v6061_v4 = vld [vmem:[#allocation2 + $0x59] sm:$0xff]  ;;  %v5328_v26 = vld [vmem:[%s5871_s20 + $0x30] sm:$0xff] }
  0xda   : > { %2593 = vmatmul.mubr.bf16.gmra.mrb[4].mxu1 %v5308_v27  ;;  %2882 = vmatmul.mubr.bf16.gmra.mrb[4].mxu0 %v857_v28  ;;  %v5316_v27 = vld [vmem:[%s5871_s20 + $0x18] sm:$0xff]  ;;  %v859_v28 = vpack.c.bf16 %v6034_v19, %v6032_v17  ;;  %488 = vst [vmem:[#allocation2 + $0x140] sm:$0xff] %v4596_v39  ;;  %v6125_v39 = vld [vmem:[#allocation2 + $0x89] sm:$0xff] }
  0xdb   : > { %2600 = vmatprep.mubr.bf16.mxu1 %v730_v29  ;;  %3135 = vmatpush1.bf16.msra.mxu0 %v5309_v37  ;;  %v6055_v37 = vld [vmem:[#allocation2 + $0x42] sm:$0xff] }
  0xdc   : > { %2889 = vmatprep.mubr.bf16.mxu0 %v5311_v38  ;;  %3136 = vmatprep.subr.bf16.mxu0 %v5603_v0  ;;  %v6057_v38 = vld [vmem:[#allocation2 + $0x4a] sm:$0xff] }
  0xdd   : > { %4830 = vmatpush1.bf16.msra.mxu1 %v5900_v6  ;;  %v4674_v6 = vld [vmem:[%s5871_s20 + $0x88] sm:$0xff]   ;;  %v860_v55 = vpack.c.bf16 %v6057_v38, %v6055_v37 }
  0xde   : > { %4815 = vmatprep.subr.bf16.mxu1 %v5603_v0  ;;  %v4584_v11 = vunpack.c.l.bf16 %v4674_v6  ;;  %v4585_v13 = vunpack.c.h.bf16 %v4674_v6  ;;  %v6160_v7 = vld [vmem:[#allocation2 + $0xa9] sm:$0xff] }
  0xdf   : > { %3137 = vmatpush1.bf16.msra.mxu0 %v5310_v42  ;;  %v5320_v42 = vld [vmem:[%s5871_s20 + $0x20] sm:$0xff] }
  0xe0   : > { %3138 = vmatprep.subr.bf16.mxu0 %v5603_v0  ;;  %482 = vst [vmem:[#allocation2 + $0x110] sm:$0xff] %v4584_v11  ;;  %483 = vst [vmem:[#allocation2 + $0x118] sm:$0xff] %v4585_v13  ;;  %v5327_v13 = vld [vmem:[%s5871_s20 + $0x3c] ss:$4 sps:$4 sm:$0xff]  }
  0xe1   : > { %4831 = vmatpush1.bf16.msra.mxu1 %v5905_v8  ;;  %v6036_v8 = vld [vmem:[#allocation2 + $0x41] sm:$0xff] }
  0xe2   : > { %2601 = vmatmul.mubr.bf16.gmra.mrb[8].mxu1 %v5312_v59  ;;  %4816 = vmatprep.subr.bf16.mxu1 %v5603_v0  ;;  %v732_v29 = vpack.c.bf16 %v6038_v20, %v6036_v8  ;;  %v6077_v59 = vld [vmem:[#allocation2 + $0x52] sm:$0xff] }
  0xe3   : > { %2890 = vmatmul.mubr.bf16.gmra.mrb[8].mxu0 %v858_v62  ;;  %2608 = vmatprep.mubr.bf16.mxu1 %v731_v63  ;;  %v6081_v62 = vld [vmem:[#allocation2 + $0x61] sm:$0xff]  ;;  %v6083_v63 = vld [vmem:[#allocation2 + $0x69] sm:$0xff] }
  0xe4   : > { %3139 = vmatpush1.bf16.msra.mxu0 %v5313_v5  ;;  %2897 = vmatprep.mubr.bf16.mxu0 %v5315_v9  ;;  %v861_v5 = vpack.c.bf16 %v6079_v61, %v6077_v59  ;;  %v5325_v9 = vld [vmem:[#allocation9 + $0x150] sm:$0xff]   ;;  %v734_v11 = vpack.c.bf16 %v6083_v63, %v6081_v62 }
  0xe5   : > { %3140 = vmatprep.subr.bf16.mxu0 %v5603_v0  ;;  %4832 = vmatpush1.bf16.msra.mxu1 %v5910_v10  ;;  %v4593_v10 = vunpack.c.h.bf16 %v4676_v2 }
  0xe6   : > { %4817 = vmatprep.subr.bf16.mxu1 %v5603_v0 }
  0xe7   : > { %487 = vst [vmem:[#allocation2 + $0x138] sm:$0xff] %v4593_v10  ;;  %v6119_v10 = vld [vmem:[#allocation2 + $0x72] sm:$0xff] }
  0xe8   : > { %3141 = vmatpush1.bf16.msra.mxu0 %v5314_v15  ;;  %v6097_v15 = vld [vmem:[#allocation2 + $0x62] sm:$0xff]  ;;  %v863_v43 = vpack.c.bf16 %v6121_v34, %v6119_v10 }
  0xe9   : > { %3142 = vmatprep.subr.bf16.mxu0 %v5603_v0  ;;  %4833 = vmatpush1.bf16.msra.mxu1 %v5915_v12  ;;  %v6059_v12 = vld [vmem:[#allocation2 + $0x51] sm:$0xff]  ;;  %v862_v2 = vpack.c.bf16 %v6100_v21, %v6097_v15 }
  0xea   : > { %2609 = vmatmul.mubr.bf16.gmra.mrb[12].mxu1 %v5316_v27  ;;  %4818 = vmatprep.subr.bf16.mxu1 %v5603_v0  ;;  %v733_v57 = vpack.c.bf16 %v6061_v4, %v6059_v12  ;;  %v6105_v27 = vld [vmem:[#allocation2 + $0x79] sm:$0xff] }
  0xeb   : > { %2898 = vmatmul.mubr.bf16.gmra.mrb[12].mxu0 %v859_v28  ;;  %2616 = vmatprep.mubr.bf16.mxu1 %v732_v29 }
  0xec   : > { %3143 = vmatpush1.bf16.msra.mxu0 %v5317_v31  ;;  %2905 = vmatprep.mubr.bf16.mxu0 %v5319_v32  ;;  %v735_v31 = vpack.c.bf16 %v6105_v27, %v6102_v22  ;;  %v5329_v32 = vld [vmem:[#allocation9 + $0x160] sm:$0xff]  }
  0xed   : > { %3144 = vmatprep.subr.bf16.mxu0 %v5603_v0  ;;  %4834 = vmatpush1.bf16.msra.mxu1 %v5920_v14  ;;  %v5322_v14 = vld [vmem:[#allocation9 + $0x148] sm:$0xff]  }
  0xee   : > { %4819 = vmatprep.subr.bf16.mxu1 %v5603_v0 }
  0xf0   : > { %3145 = vmatpush1.bf16.msra.mxu0 %v5318_v35  ;;  %v6123_v35 = vld [vmem:[#allocation2 + $0x81] sm:$0xff] }
  0xf1   : > { %3146 = vmatprep.subr.bf16.mxu0 %v5603_v0  ;;  %4835 = vmatpush1.bf16.msra.mxu1 %v5925_v16  ;;  %v4680_v16 = vld [vmem:[%s5871_s20 + $0xb8] sm:$0xff]  }
  0xf2   : > { %2617 = vmatmul.mubr.bf16.gmra.mrb[16].mxu1 %v5320_v42  ;;  %4820 = vmatprep.subr.bf16.mxu1 %v5603_v0  ;;  %v4608_v6 = vunpack.c.l.bf16 %v4680_v16  ;;  %v4609_v28 = vunpack.c.h.bf16 %v4680_v16  ;;  %v4616_v42 = vunpack.c.l.bf16 %v4682_v40  ;;  %v5336_v16 = vld [vmem:[#allocation9 + $0x180] sm:$0xff]  }
  0xf3   : > { %2906 = vmatmul.mubr.bf16.gmra.mrb[16].mxu0 %v860_v55  ;;  %2624 = vmatprep.mubr.bf16.mxu1 %v733_v57  ;;  %v6143_v55 = vld [vmem:[#allocation2 + $0x99] sm:$0xff]  ;;  %v4617_v57 = vunpack.c.h.bf16 %v4682_v40 }
  0xf4   : > { %3147 = vmatpush1.bf16.msra.mxu0 %v5321_v44  ;;  %2913 = vmatprep.mubr.bf16.mxu0 %v5323_v49  ;;  %494 = vst [vmem:[#allocation2 + $0x170] sm:$0xff] %v4608_v6  ;;  %495 = vst [vmem:[#allocation2 + $0x178] sm:$0xff] %v4609_v28  ;;  %v736_v44 = vpack.c.bf16 %v6125_v39, %v6123_v35  ;;  %v5333_v49 = vld [vmem:[#allocation9 + $0x170] sm:$0xff]   ;;  %v4624_v6 = vunpack.c.l.bf16 %v4684_v3 }
  0xf5   : > { %3148 = vmatprep.subr.bf16.mxu0 %v5603_v0  ;;  %4836 = vmatpush1.bf16.msra.mxu1 %v5930_v18  ;;  %v5326_v18 = vld [vmem:[#allocation9 + $0x158] sm:$0xff]   ;;  %498 = vst [vmem:[#allocation2 + $0x190] sm:$0xff] %v4616_v42  ;;  %499 = vst [vmem:[#allocation2 + $0x198] sm:$0xff] %v4617_v57  ;;  %v6218_v57 = vld [vmem:[#allocation2 + $0x82] sm:$0xff] }
  0xf6   : > { %4821 = vmatprep.subr.bf16.mxu1 %v5603_v0  ;;  %502 = vst [vmem:[#allocation2 + $0x1b0] sm:$0xff] %v4624_v6  ;;  %v6200_v42 = vld [vmem:[#allocation2 + $0xd1] sm:$0xff] }
  0xf8   : > { %3149 = vmatpush1.bf16.msra.mxu0 %v5322_v14  ;;  %v737_v14 = vpack.c.bf16 %v6143_v55, %v6141_v54 }
  0xf9   : > { %3150 = vmatprep.subr.bf16.mxu0 %v5603_v0  ;;  %4837 = vmatpush1.bf16.msra.mxu1 %v5939_v30  ;;  %v4681_v30 = vld [vmem:[%s5871_s20 + $0xc0] sm:$0xff]  }
  0xfa   : > { %2625 = vmatmul.mubr.bf16.gmra.mrb[20].mxu1 %v5324_v1  ;;  %4822 = vmatprep.subr.bf16.mxu1 %v5603_v0  ;;  %v4612_v29 = vunpack.c.l.bf16 %v4681_v30  ;;  %v4613_v41 = vunpack.c.h.bf16 %v4681_v30  ;;  %v1241_v1 = vpack.c.bf16 %v6032_v17, %v6010_v47  ;;  %v5337_v47 = vld [vmem:[%s5871_s20 + $0x48] sm:$0xff]  ;;  %v4621_v17 = vunpack.c.h.bf16 %v4683_v23 }
  0xfb   : > { %2914 = vmatmul.mubr.bf16.gmra.mrb[20].mxu0 %v861_v5  ;;  %2632 = vmatprep.mubr.bf16.mxu1 %v734_v11  ;;  %v1113_v5 = vpack.c.bf16 %v6013_v50, %v5992_v25  ;;  %v5342_v11 = vld [vmem:[#allocation9 + $0x190] sm:$0xff]   ;;  %v6174_v25 = vld [vmem:[#allocation2 + $0xb9] sm:$0xff]  ;;  %v1114_v30 = vpack.c.bf16 %v6036_v8, %v6015_v52  ;;  %v5351_v8 = vld [vmem:[#allocation9 + $0x1a8] sm:$0xff]  }
  0xfc   : > { %3151 = vmatpush1.bf16.msra.mxu0 %v5325_v9  ;;  %2921 = vmatprep.mubr.bf16.mxu0 %v5327_v13  ;;  %496 = vst [vmem:[#allocation2 + $0x180] sm:$0xff] %v4612_v29  ;;  %497 = vst [vmem:[#allocation2 + $0x188] sm:$0xff] %v4613_v41  ;;  %v1242_v9 = vpack.c.bf16 %v6055_v37, %v6034_v19  ;;  %v6172_v13 = vld [vmem:[#allocation2 + $0xb1] sm:$0xff]  ;;  %v4685_v19 = vld [vmem:[%s5871_s20 + $0xe0] sm:$0xff]   ;;  %v1243_v29 = vpack.c.bf16 %v6077_v59, %v6057_v38 }
  0xfd   : > { %3152 = vmatprep.subr.bf16.mxu0 %v5603_v0  ;;  %4838 = vmatpush1.bf16.msra.mxu1 %v5946_v36  ;;  %v5330_v36 = vld [vmem:[#allocation9 + $0x168] sm:$0xff]   ;;  %501 = vst [vmem:[#allocation2 + $0x1a8] sm:$0xff] %v4621_v17  ;;  %v5345_v50 = vld [vmem:[#allocation9 + $0x198] sm:$0xff]   ;;  %v5338_v37 = vld [vmem:[%s5871_s20 + $0x50] sm:$0xff]  ;;  %v739_v28 = vpack.c.bf16 %v6174_v25, %v6172_v13 }
  0xfe   : > { %4823 = vmatprep.subr.bf16.mxu1 %v5603_v0  ;;  %v6188_v52 = vld [vmem:[#allocation2 + $0xc9] sm:$0xff]  ;;  %v5340_v59 = vld [vmem:[%s5871_s20 + $0x58] sm:$0xff] }
  0xff   : > { %v4686_v38 = vld [vmem:[%s5871_s20 + $0xe8] sm:$0xff]   ;;  %v5354_v41 = vld [vmem:[#allocation9 + $0x1b0] sm:$0xff]  }
 0x100   : > { %3153 = vmatpush1.bf16.msra.mxu0 %v5326_v18  ;;  %v4625_v18 = vunpack.c.h.bf16 %v4684_v3  ;;  %v6230_v3 = vld [vmem:[#allocation2 + $0xf1] sm:$0xff] }
 0x101   : > { %3154 = vmatprep.subr.bf16.mxu0 %v5603_v0  ;;  %4839 = vmatpush1.bf16.msra.mxu1 %v5952_v45  ;;  %v5332_v45 = vld [vmem:[%s5871_s20 + $0x38] sm:$0xff]  ;;  %v5344_v17 = vld [vmem:[%s5871_s20 + $0x70] sm:$0xff] }
 0x102   : > { %2633 = vmatmul.mubr.bf16.gmra.mrb[24].mxu1 %v5328_v26  ;;  %4824 = vmatprep.subr.bf16.mxu1 %v5603_v0  ;;  %v4628_v26 = vunpack.c.l.bf16 %v4685_v19  ;;  %503 = vst [vmem:[#allocation2 + $0x1b8] sm:$0xff] %v4625_v18  ;;  %v6254_v18 = vld [vmem:[#allocation2 + $0x9a] sm:$0xff] }
 0x103   : > { %2922 = vmatmul.mubr.bf16.gmra.mrb[24].mxu0 %v862_v2  ;;  %2640 = vmatprep.mubr.bf16.mxu1 %v735_v31  ;;  %v5348_v2 = vld [vmem:[#allocation9 + $0x1a0] sm:$0xff]  }
 0x104   : > { %3155 = vmatpush1.bf16.msra.mxu0 %v5329_v32  ;;  %2929 = vmatprep.mubr.bf16.mxu0 %v5331_v33  ;;  %504 = vst [vmem:[#allocation2 + $0x1c0] sm:$0xff] %v4628_v26  ;;  %v6186_v31 = vld [vmem:[#allocation2 + $0xc1] sm:$0xff]  ;;  %v4629_v32 = vunpack.c.h.bf16 %v4685_v19  ;;  %v4632_v33 = vunpack.c.l.bf16 %v4686_v38  ;;  %v1119_v26 = vpack.c.bf16 %v6141_v54, %v6125_v39 }
 0x105   : > { %3156 = vmatprep.subr.bf16.mxu0 %v5603_v0  ;;  %4840 = vmatpush1.bf16.msra.mxu1 %v5957_v48  ;;  %v5334_v48 = vld [vmem:[#allocation9 + $0x178] sm:$0xff]   ;;  %v740_v40 = vpack.c.bf16 %v6188_v52, %v6186_v31  ;;  %v6250_v19 = vld [vmem:[#allocation2 + $0x101] sm:$0xff] }
 0x106   : > { %4825 = vmatprep.subr.bf16.mxu1 %v5603_v0  ;;  %505 = vst [vmem:[#allocation2 + $0x1c8] sm:$0xff] %v4629_v32  ;;  %506 = vst [vmem:[#allocation2 + $0x1d0] sm:$0xff] %v4632_v33  ;;  %v5371_v33 = vld [vmem:[#allocation9 + $0x1e0] sm:$0xff]  }
 0x108   : > { %3157 = vmatpush1.bf16.msra.mxu0 %v5330_v36  ;;  %v1115_v36 = vpack.c.bf16 %v6059_v12, %v6038_v20  ;;  %v6202_v20 = vld [vmem:[#allocation2 + $0xd9] sm:$0xff] }
 0x109   : > { %3158 = vmatprep.subr.bf16.mxu0 %v5603_v0  ;;  %4841 = vmatpush1.bf16.msra.mxu1 %v5963_v51  ;;  %v4620_v51 = vunpack.c.l.bf16 %v4683_v23  ;;  %v5357_v12 = vld [vmem:[#allocation9 + $0x1b8] sm:$0xff]   ;;  %v5360_v23 = vld [vmem:[#allocation9 + $0x1c0] sm:$0xff]  }
 0x10a   : > { %2641 = vmatmul.mubr.bf16.gmra.mrb[28].mxu1 %v5332_v45  ;;  %4826 = vmatprep.subr.bf16.mxu1 %v5603_v0  ;;  %v1244_v45 = vpack.c.bf16 %v6097_v15, %v6079_v61  ;;  %v4687_v61 = vld [vmem:[%s5871_s20 + $0xf0] sm:$0xff]   ;;  %v5341_v15 = vld [vmem:[%s5871_s20 + $0x60] sm:$0xff] }
 0x10b   : > { %2930 = vmatmul.mubr.bf16.gmra.mrb[28].mxu0 %v863_v43  ;;  %2648 = vmatprep.mubr.bf16.mxu1 %v736_v44  ;;  %500 = vst [vmem:[#allocation2 + $0x1a0] sm:$0xff] %v4620_v51  ;;  %v4633_v43 = vunpack.c.h.bf16 %v4686_v38  ;;  %v4636_v44 = vunpack.c.l.bf16 %v4687_v61  ;;  %v4637_v51 = vunpack.c.h.bf16 %v4687_v61  ;;  %v6272_v38 = vld [vmem:[#allocation2 + $0xb2] sm:$0xff] }
 0x10c   : > { %3159 = vmatpush1.bf16.msra.mxu0 %v5333_v49  ;;  %3162 = vmatprep.mubr.bf16.mxu0 %v1240_v53  ;;  %v1116_v49 = vpack.c.bf16 %v6081_v62, %v6061_v4  ;;  %v741_v53 = vpack.c.bf16 %v6202_v20, %v6200_v42  ;;  %v6216_v4 = vld [vmem:[#allocation2 + $0xe9] sm:$0xff] }
 0x10d   : > { %3160 = vmatprep.subr.bf16.mxu0 %v5603_v0  ;;  %4842 = vmatpush1.bf16.msra.mxu1 %v5969_v56  ;;  %v6158_v56 = vld [vmem:[#allocation2 + $0xa1] sm:$0xff]  ;;  %507 = vst [vmem:[#allocation2 + $0x1d8] sm:$0xff] %v4633_v43  ;;  %508 = vst [vmem:[#allocation2 + $0x1e0] sm:$0xff] %v4636_v44  ;;  %v6300_v43 = vld [vmem:[#allocation2 + $0x131] sm:$0xff] }
 0x10e   : > { %4827 = vmatprep.subr.bf16.mxu1 %v5603_v0  ;;  %v5363_v62 = vld [vmem:[#allocation9 + $0x1c8] sm:$0xff]   ;;  %509 = vst [vmem:[#allocation2 + $0x1e8] sm:$0xff] %v4637_v51  ;;  %v1120_v39 = vpack.c.bf16 %v6158_v56, %v6143_v55  ;;  %v6302_v44 = vld [vmem:[#allocation2 + $0x139] sm:$0xff] }
 0x10f   : > { %v6289_v55 = vld [vmem:[#allocation2 + $0xc2] sm:$0xff]  ;;  %v6319_v51 = vld [vmem:[#allocation2 + $0xda] sm:$0xff] }
 0x110   : > { %3161 = vmatpush1.bf16.msra.mxu0 %v5334_v48  ;;  %v1245_v48 = vpack.c.bf16 %v6119_v10, %v6100_v21  ;;  %v4688_v21 = vld [vmem:[%s5871_s20 + $0xf8] sm:$0xff]   ;;  %v5343_v10 = vld [vmem:[%s5871_s20 + $0x68] sm:$0xff] }
 0x111   : > { %3419 = vmatprep.subr.bf16.mxu0 %v5603_v0  ;;  %4843 = vmatpush1.bf16.msra.mxu1 %v5972_v60  ;;  %v738_v60 = vpack.c.bf16 %v6160_v7, %v6158_v56  ;;  %v4641_v6 = vunpack.c.h.bf16 %v4688_v21  ;;  %v5349_v56 = vld [vmem:[%s5871_s20 + $0x88] sm:$0xff] }
 0x112   : > { %2649 = vmatmul.mubr.bf16.gmra.mrb[32].mxu1 %v5335_v46  ;;  %v6214_v46 = vld [vmem:[#allocation2 + $0xe1] sm:$0xff] }
 0x113   : > { %3163 = vmatmul.mubr.bf16.vlgmr.msra.gmra.mrb[0].mxu0 %v1112_v58  ;;  %2656 = vmatprep.mubr.bf16.mxu1 %v737_v14  ;;  %v4640_v58 = vunpack.c.l.bf16 %v4688_v21  ;;  %v1117_v14 = vpack.c.bf16 %v6102_v22, %v6083_v63  ;;  %v6232_v63 = vld [vmem:[#allocation2 + $0xf9] sm:$0xff]  ;;  %v6234_v22 = vld [vmem:[#allocation2 + $0x8a] sm:$0xff]  ;;  %511 = vst [vmem:[#allocation2 + $0x1f8] sm:$0xff] %v4641_v6  ;;  %v6315_v21 = vld [vmem:[#allocation2 + $0x141] sm:$0xff] }
 0x114   : > { %3420 = vmatpush1.bf16.msra.mxu0 %v5336_v16  ;;  %3170 = vmatprep.mubr.bf16.mxu0 %v1241_v1  ;;  %v742_v16 = vpack.c.bf16 %v6216_v4, %v6214_v46  ;;  %v1246_v1 = vpack.c.bf16 %v6218_v57, %v6121_v34  ;;  %v6236_v34 = vld [vmem:[#allocation2 + $0x92] sm:$0xff] }
 0x115   : > { %3421 = vmatprep.subr.bf16.mxu0 %v5603_v0  ;;  %510 = vst [vmem:[#allocation2 + $0x1f0] sm:$0xff] %v4640_v58  ;;  %v6321_v58 = vld [vmem:[#allocation2 + $0xe2] sm:$0xff]  ;;  %v6337_v6 = vld [vmem:[#allocation2 + $0xf2] sm:$0xff] }
 0x118   : > { %3422 = vmatpush1.bf16.msra.mxu0 %v5339_v24  ;;  %v5366_v24 = vld [vmem:[#allocation9 + $0x1d0] sm:$0xff]  }
 0x119   : > { %3423 = vmatprep.subr.bf16.mxu0 %v5603_v0 }
 0x11a   : > { %2657 = vmatmul.mubr.bf16.gmra.mrb[36].mxu1 %v5337_v47  ;;  %v6240_v47 = vld [vmem:[%s5879_s10] sm:$0xff]  }
 0x11b   : > { %3171 = vmatmul.mubr.bf16.gmra.mrb[4].mxu0 %v1113_v5  ;;  %2664 = vmatprep.mubr.bf16.mxu1 %v738_v60  ;;  %v4644_v5 = vunpack.c.l.bf16 %v6240_v47  ;;  %v1118_v60 = vpack.c.bf16 %v6123_v35, %v6105_v27  ;;  %v6256_v27 = vld [vmem:[#allocation2 + $0xa2] sm:$0xff]  ;;  %v5346_v35 = vld [vmem:[%s5871_s20 + $0x78] sm:$0xff] }
 0x11c   : > { %3178 = vmatprep.mubr.bf16.mxu0 %v1242_v9  ;;  %3424 = vmatpush1.bf16.msra.mxu0 %v5342_v11  ;;  %v743_v9 = vpack.c.bf16 %v6232_v63, %v6230_v3  ;;  %v1247_v11 = vpack.c.bf16 %v6236_v34, %v6234_v22 }
 0x11d   : > { %3425 = vmatprep.subr.bf16.mxu0 %v5603_v0  ;;  %528 = vst [vmem:[#allocation2 + $0x200] sm:$0xff] %v4644_v5 }
 0x120   : > { %3426 = vmatpush1.bf16.msra.mxu0 %v5345_v50  ;;  %v5369_v50 = vld [vmem:[#allocation9 + $0x1d8] sm:$0xff]  }
 0x121   : > { %3427 = vmatprep.subr.bf16.mxu0 %v5603_v0 }
 0x122   : > { %2665 = vmatmul.mubr.bf16.gmra.mrb[40].mxu1 %v5338_v37  ;;  %v6252_v37 = vld [vmem:[#allocation2 + $0x109] sm:$0xff] }
 0x123   : > { %3179 = vmatmul.mubr.bf16.gmra.mrb[8].mxu0 %v1114_v30  ;;  %2672 = vmatprep.mubr.bf16.mxu1 %v739_v28  ;;  %v744_v30 = vpack.c.bf16 %v6252_v37, %v6250_v19  ;;  %v1248_v28 = vpack.c.bf16 %v6256_v27, %v6254_v18 }
 0x124   : > { %3186 = vmatprep.mubr.bf16.mxu0 %v1243_v29  ;;  %3428 = vmatpush1.bf16.msra.mxu0 %v5348_v2  ;;  %v6266_v29 = vld [vmem:[#allocation2 + $0x111] sm:$0xff]  ;;  %v6268_v2 = vld [vmem:[#allocation2 + $0x119] sm:$0xff] }
 0x125   : > { %3429 = vmatprep.subr.bf16.mxu0 %v5603_v0  ;;  %v745_v54 = vpack.c.bf16 %v6268_v2, %v6266_v29 }
 0x128   : > { %3430 = vmatpush1.bf16.msra.mxu0 %v5351_v8  ;;  %v6270_v8 = vld [vmem:[#allocation2 + $0xaa] sm:$0xff] }
 0x129   : > { %3431 = vmatprep.subr.bf16.mxu0 %v5603_v0  ;;  %v1249_v32 = vpack.c.bf16 %v6272_v38, %v6270_v8 }
 0x12a   : > { %2673 = vmatmul.mubr.bf16.gmra.mrb[44].mxu1 %v5340_v59  ;;  %v5347_v59 = vld [vmem:[%s5871_s20 + $0x80] sm:$0xff] }
 0x12b   : > { %3187 = vmatmul.mubr.bf16.gmra.mrb[12].mxu0 %v1115_v36  ;;  %2680 = vmatprep.mubr.bf16.mxu1 %v740_v40  ;;  %v6281_v36 = vld [vmem:[#allocation9 + $0x200] sm:$0xff]  }
 0x12c   : > { %3194 = vmatprep.mubr.bf16.mxu0 %v1244_v45  ;;  %3432 = vmatpush1.bf16.msra.mxu0 %v5354_v41  ;;  %v6283_v40 = vld [vmem:[#allocation2 + $0x121] sm:$0xff]  ;;  %v6285_v45 = vld [vmem:[#allocation2 + $0x129] sm:$0xff] }
 0x12d   : > { %3433 = vmatprep.subr.bf16.mxu0 %v5603_v0  ;;  %v6287_v41 = vld [vmem:[#allocation2 + $0xba] sm:$0xff]  ;;  %4732 = vmatprep.subr.bf16.mxu1 %v6281_v36  ;;  %v746_v61 = vpack.c.bf16 %v6285_v45, %v6283_v40 }
 0x130   : > { %3434 = vmatpush1.bf16.msra.mxu0 %v5357_v12  ;;  %v1121_v12 = vpack.c.bf16 %v6172_v13, %v6160_v7  ;;  %v5350_v7 = vld [vmem:[%s5871_s20 + $0x90] sm:$0xff]  ;;  %v1122_v13 = vpack.c.bf16 %v6186_v31, %v6174_v25  ;;  %v5352_v25 = vld [vmem:[%s5871_s20 + $0x98] sm:$0xff]  ;;  %v1123_v31 = vpack.c.bf16 %v6200_v42, %v6188_v52  ;;  %v5353_v52 = vld [vmem:[%s5871_s20 + $0xa0] sm:$0xff]  ;;  %v1124_v42 = vpack.c.bf16 %v6214_v46, %v6202_v20 }
 0x131   : > { %3435 = vmatprep.subr.bf16.mxu0 %v5603_v0  ;;  %v5355_v20 = vld [vmem:[%s5871_s20 + $0xa8] sm:$0xff]  ;;  %v4645_v46 = vunpack.c.h.bf16 %v6240_v47 }
 0x132   : > { %2681 = vmatmul.mubr.bf16.gmra.mrb[48].mxu1 %v5341_v15  ;;  %v1250_v15 = vpack.c.bf16 %v6289_v55, %v6287_v41  ;;  %v6367_v47 = vld [vmem:[#allocation2 + $0x10a] sm:$0xff] }
 0x133   : > { %3195 = vmatmul.mubr.bf16.gmra.mrb[16].mxu0 %v1116_v49  ;;  %2688 = vmatprep.mubr.bf16.mxu1 %v741_v53  ;;  %v6304_v49 = vld [vmem:[#allocation2 + $0xca] sm:$0xff]  ;;  %v6306_v53 = vld [vmem:[#allocation2 + $0xd2] sm:$0xff]  ;;  %529 = vst [vmem:[#allocation2 + $0x208] sm:$0xff] %v4645_v46  ;;  %v6415_v46 = vld [vmem:[#allocation2 + $0x142] sm:$0xff] }
 0x134   : > { %3202 = vmatprep.mubr.bf16.mxu0 %v1245_v48  ;;  %3436 = vmatpush1.bf16.msra.mxu0 %v5360_v23  ;;  %v747_v48 = vpack.c.bf16 %v6302_v44, %v6300_v43  ;;  %v1251_v23 = vpack.c.bf16 %v6306_v53, %v6304_v49 }
 0x135   : > { %3437 = vmatprep.subr.bf16.mxu0 %v5603_v0 }
 0x138   : > { %3438 = vmatpush1.bf16.msra.mxu0 %v5363_v62  ;;  %v5373_v62 = vld [vmem:[#allocation9 + $0x1e8] sm:$0xff]  }
 0x139   : > { %3439 = vmatprep.subr.bf16.mxu0 %v5603_v0 }
 0x13a   : > { %2689 = vmatmul.mubr.bf16.gmra.mrb[52].mxu1 %v5343_v10  ;;  %v6317_v10 = vld [vmem:[#allocation2 + $0x149] sm:$0xff] }
 0x13b   : > { %3203 = vmatmul.mubr.bf16.gmra.mrb[20].mxu0 %v1117_v14  ;;  %2696 = vmatprep.mubr.bf16.mxu1 %v742_v16  ;;  %v748_v14 = vpack.c.bf16 %v6317_v10, %v6315_v21  ;;  %v1252_v16 = vpack.c.bf16 %v6321_v58, %v6319_v51 }
 0x13c   : > { %3210 = vmatprep.mubr.bf16.mxu0 %v1246_v1  ;;  %3440 = vmatpush1.bf16.msra.mxu0 %v5366_v24  ;;  %v6331_v1 = vld [vmem:[#allocation2 + $0x151] sm:$0xff]  ;;  %v6333_v24 = vld [vmem:[#allocation2 + $0x159] sm:$0xff] }
 0x13d   : > { %3441 = vmatprep.subr.bf16.mxu0 %v5603_v0  ;;  %v749_v5 = vpack.c.bf16 %v6333_v24, %v6331_v1 }
 0x140   : > { %3442 = vmatpush1.bf16.msra.mxu0 %v5369_v50  ;;  %v6348_v50 = vld [vmem:[#allocation2 + $0x169] sm:$0xff] }
 0x141   : > { %3443 = vmatprep.subr.bf16.mxu0 %v5603_v0 }
 0x142   : > { %2697 = vmatmul.mubr.bf16.gmra.mrb[56].mxu1 %v5344_v17  ;;  %v6335_v17 = vld [vmem:[#allocation2 + $0xea] sm:$0xff] }
 0x143   : > { %3211 = vmatmul.mubr.bf16.gmra.mrb[24].mxu0 %v1118_v60  ;;  %2704 = vmatprep.mubr.bf16.mxu1 %v743_v9  ;;  %v1253_v60 = vpack.c.bf16 %v6337_v6, %v6335_v17  ;;  %v5375_v9 = vld [vmem:[#allocation9 + $0x1f0] sm:$0xff]  }
 0x144   : > { %3218 = vmatprep.mubr.bf16.mxu0 %v1247_v11  ;;  %3444 = vmatpush1.bf16.msra.mxu0 %v5371_v33  ;;  %v6346_v11 = vld [vmem:[#allocation2 + $0x161] sm:$0xff] }
 0x145   : > { %3445 = vmatprep.subr.bf16.mxu0 %v5603_v0 }
 0x148   : > { %3446 = vmatpush1.bf16.msra.mxu0 %v5373_v62 }
 0x149   : > { %3447 = vmatprep.subr.bf16.mxu0 %v5603_v0 }
 0x14a   : > { %2705 = vmatmul.mubr.bf16.gmra.mrb[60].mxu1 %v5346_v35  ;;  %v6350_v35 = vld [vmem:[#allocation2 + $0xfa] sm:$0xff] }
 0x14b   : > { %3219 = vmatmul.mubr.bf16.gmra.mrb[28].mxu0 %v1119_v26  ;;  %2712 = vmatprep.mubr.bf16.mxu1 %v744_v30  ;;  %v6352_v26 = vld [vmem:[#allocation2 + $0x102] sm:$0xff]  ;;  %v1125_v30 = vpack.c.bf16 %v6230_v3, %v6216_v4  ;;  %v5356_v3 = vld [vmem:[%s5871_s20 + $0xb0] sm:$0xff] }
 0x14c   : > { %3226 = vmatprep.mubr.bf16.mxu0 %v1248_v28  ;;  %3448 = vmatpush1.bf16.msra.mxu0 %v5375_v9  ;;  %v750_v28 = vpack.c.bf16 %v6348_v50, %v6346_v11  ;;  %v4689_v4 = vld [vmem:[%s5879_s10 + $0x8] sm:$0xff]  }
 0x14d   : > { %3449 = vmatprep.subr.bf16.mxu0 %v5603_v0  ;;  %v6369_v0 = vld [vmem:[#allocation2 + $0x112] sm:$0xff]  ;;  %v4649_v33 = vunpack.c.h.bf16 %v4689_v4  ;;  %v6411_v9 = vld [vmem:[#allocation2 + $0x1a9] sm:$0xff] }
 0x14f   : > { %531 = vst [vmem:[#allocation2 + $0x218] sm:$0xff] %v4649_v33 }
 0x152   : > { %2713 = vmatmul.mubr.bf16.gmra.mrb[64].mxu1 %v5347_v59  ;;  %v1254_v59 = vpack.c.bf16 %v6352_v26, %v6350_v35 }
 0x153   : > { %3227 = vmatmul.mubr.bf16.gmra.mrb[32].mxu0 %v1120_v39  ;;  %2720 = vmatprep.mubr.bf16.mxu1 %v745_v54  ;;  %v6363_v39 = vld [vmem:[#allocation2 + $0x171] sm:$0xff]  ;;  %v6365_v54 = vld [vmem:[#allocation2 + $0x179] sm:$0xff] }
 0x154   : > { %3234 = vmatprep.mubr.bf16.mxu0 %v1249_v32  ;;  %v4648_v32 = vunpack.c.l.bf16 %v4689_v4  ;;  %v6426_v4 = vld [vmem:[#allocation2 + $0x1b9] sm:$0xff] }
 0x156   : > { %530 = vst [vmem:[#allocation2 + $0x210] sm:$0xff] %v4648_v32  ;;  %v6430_v32 = vld [vmem:[#allocation2 + $0x152] sm:$0xff] }
 0x15a   : > { %2721 = vmatmul.mubr.bf16.gmra.mrb[68].mxu1 %v5349_v56  ;;  %v1126_v56 = vpack.c.bf16 %v6250_v19, %v6232_v63  ;;  %v6385_v63 = vld [vmem:[#allocation2 + $0x122] sm:$0xff]  ;;  %v5358_v19 = vld [vmem:[%s5871_s20 + $0xb8] sm:$0xff] }
 0x15b   : > { %3235 = vmatmul.mubr.bf16.gmra.mrb[36].mxu0 %v1121_v12  ;;  %2728 = vmatprep.mubr.bf16.mxu1 %v746_v61  ;;  %v751_v12 = vpack.c.bf16 %v6365_v54, %v6363_v39  ;;  %v1255_v61 = vpack.c.bf16 %v6369_v0, %v6367_v47 }
 0x15c   : > { %3242 = vmatprep.mubr.bf16.mxu0 %v1250_v15  ;;  %v5376_v15 = vld [vmem:[#allocation9 + $0x1f8] sm:$0xff]  }
 0x15d   : > { %3450 = vmatpush1.bf16.msra.mxu0 %v5376_v15 }
 0x162   : > { %2729 = vmatmul.mubr.bf16.gmra.mrb[72].mxu1 %v5350_v7  ;;  %v6379_v7 = vld [vmem:[#allocation2 + $0x181] sm:$0xff] }
 0x163   : > { %3243 = vmatmul.mubr.bf16.gmra.mrb[40].mxu0 %v1122_v13  ;;  %2736 = vmatprep.mubr.bf16.mxu1 %v747_v48  ;;  %v6381_v13 = vld [vmem:[#allocation2 + $0x189] sm:$0xff]  ;;  %v6383_v48 = vld [vmem:[#allocation2 + $0x11a] sm:$0xff] }
 0x164   : > { %3250 = vmatprep.mubr.bf16.mxu0 %v1251_v23  ;;  %v1127_v23 = vpack.c.bf16 %v6266_v29, %v6252_v37  ;;  %v752_v62 = vpack.c.bf16 %v6381_v13, %v6379_v7  ;;  %v5359_v37 = vld [vmem:[%s5871_s20 + $0xc0] sm:$0xff]  ;;  %v1128_v29 = vpack.c.bf16 %v6283_v40, %v6268_v2  ;;  %v5361_v2 = vld [vmem:[%s5871_s20 + $0xc8] sm:$0xff]  ;;  %v1129_v40 = vpack.c.bf16 %v6300_v43, %v6285_v45  ;;  %v5362_v45 = vld [vmem:[%s5871_s20 + $0xd0] sm:$0xff] }
 0x165   : > { %v1130_v43 = vpack.c.bf16 %v6315_v21, %v6302_v44  ;;  %v5364_v21 = vld [vmem:[%s5871_s20 + $0xd8] sm:$0xff] }
 0x16a   : > { %2737 = vmatmul.mubr.bf16.gmra.mrb[76].mxu1 %v5352_v25  ;;  %v1256_v25 = vpack.c.bf16 %v6385_v63, %v6383_v48 }
 0x16b   : > { %3251 = vmatmul.mubr.bf16.gmra.mrb[44].mxu0 %v1123_v31  ;;  %2744 = vmatprep.mubr.bf16.mxu1 %v748_v14  ;;  %v6394_v31 = vld [vmem:[#allocation2 + $0x191] sm:$0xff]  ;;  %v6396_v14 = vld [vmem:[#allocation2 + $0x199] sm:$0xff] }
 0x16c   : > { %3258 = vmatprep.mubr.bf16.mxu0 %v1252_v16  ;;  %v6398_v16 = vld [vmem:[#allocation2 + $0x12a] sm:$0xff] }
 0x172   : > { %2745 = vmatmul.mubr.bf16.gmra.mrb[80].mxu1 %v5353_v52  ;;  %v6400_v52 = vld [vmem:[#allocation2 + $0x132] sm:$0xff] }
 0x173   : > { %3259 = vmatmul.mubr.bf16.gmra.mrb[48].mxu0 %v1124_v42  ;;  %2752 = vmatprep.mubr.bf16.mxu1 %v749_v5  ;;  %v753_v42 = vpack.c.bf16 %v6396_v14, %v6394_v31  ;;  %v1257_v5 = vpack.c.bf16 %v6400_v52, %v6398_v16 }
 0x174   : > { %3266 = vmatprep.mubr.bf16.mxu0 %v1253_v60  ;;  %v6409_v60 = vld [vmem:[#allocation2 + $0x1a1] sm:$0xff] }
 0x17a   : > { %2753 = vmatmul.mubr.bf16.gmra.mrb[84].mxu1 %v5355_v20  ;;  %v6413_v20 = vld [vmem:[#allocation2 + $0x13a] sm:$0xff] }
 0x17b   : > { %3267 = vmatmul.mubr.bf16.gmra.mrb[52].mxu0 %v1125_v30  ;;  %2760 = vmatprep.mubr.bf16.mxu1 %v750_v28  ;;  %v754_v30 = vpack.c.bf16 %v6411_v9, %v6409_v60  ;;  %v1258_v28 = vpack.c.bf16 %v6415_v46, %v6413_v20 }
 0x17c   : > { %3274 = vmatprep.mubr.bf16.mxu0 %v1254_v59  ;;  %v6424_v59 = vld [vmem:[#allocation2 + $0x1b1] sm:$0xff] }
 0x17d   : > { %v755_v33 = vpack.c.bf16 %v6426_v4, %v6424_v59 }
 0x182   : > { %2761 = vmatmul.mubr.bf16.gmra.mrb[88].mxu1 %v5356_v3  ;;  %v6428_v3 = vld [vmem:[#allocation2 + $0x14a] sm:$0xff] }
 0x183   : > { %3275 = vmatmul.mubr.bf16.gmra.mrb[56].mxu0 %v1126_v56  ;;  %2768 = vmatprep.mubr.bf16.mxu1 %v751_v12  ;;  %v1259_v56 = vpack.c.bf16 %v6430_v32, %v6428_v3  ;;  %v6439_v12 = vld [vmem:[#allocation2 + $0x1c1] sm:$0xff] }
 0x184   : > { %3282 = vmatprep.mubr.bf16.mxu0 %v1255_v61  ;;  %v6441_v61 = vld [vmem:[#allocation2 + $0x1c9] sm:$0xff] }
 0x18a   : > { %2769 = vmatmul.mubr.bf16.gmra.mrb[92].mxu1 %v5358_v19  ;;  %v6445_v19 = vld [vmem:[#allocation2 + $0x15a] sm:$0xff] }
 0x18b   : > { %3283 = vmatmul.mubr.bf16.gmra.mrb[60].mxu0 %v1127_v23  ;;  %2776 = vmatprep.mubr.bf16.mxu1 %v752_v62  ;;  %v6447_v23 = vld [vmem:[#allocation2 + $0x162] sm:$0xff] }
 0x18c   : > { %3290 = vmatprep.mubr.bf16.mxu0 %v1256_v25  ;;  %v1131_v25 = vpack.c.bf16 %v6331_v1, %v6317_v10  ;;  %v6466_v10 = vld [vmem:[#allocation2 + $0x172] sm:$0xff] }
 0x192   : > { %2777 = vmatmul.mubr.bf16.gmra.mrb[96].mxu1 %v5359_v37  ;;  %v756_v37 = vpack.c.bf16 %v6441_v61, %v6439_v12 }
 0x193   : > { %3291 = vmatmul.mubr.bf16.gmra.mrb[64].mxu0 %v1128_v29  ;;  %2784 = vmatprep.mubr.bf16.mxu1 %v753_v42  ;;  %v1260_v42 = vpack.c.bf16 %v6447_v23, %v6445_v19 }
 0x194   : > { %3298 = vmatprep.mubr.bf16.mxu0 %v1257_v5  ;;  %v6458_v5 = vld [vmem:[#allocation2 + $0x1d1] sm:$0xff] }
 0x19a   : > { %2785 = vmatmul.mubr.bf16.gmra.mrb[100].mxu1 %v5361_v2  ;;  %v6460_v2 = vld [vmem:[#allocation2 + $0x1d9] sm:$0xff] }
 0x19b   : > { %3299 = vmatmul.mubr.bf16.gmra.mrb[68].mxu0 %v1129_v40  ;;  %2792 = vmatprep.mubr.bf16.mxu1 %v754_v30  ;;  %v6464_v30 = vld [vmem:[#allocation2 + $0x16a] sm:$0xff] }
 0x19c   : > { %3306 = vmatprep.mubr.bf16.mxu0 %v1258_v28  ;;  %v5365_v28 = vld [vmem:[%s5871_s20 + $0xe0] sm:$0xff] }
 0x1a2   : > { %2793 = vmatmul.mubr.bf16.gmra.mrb[104].mxu1 %v5362_v45 }
 0x1a3   : > { %3307 = vmatmul.mubr.bf16.gmra.mrb[72].mxu0 %v1130_v43  ;;  %2800 = vmatprep.mubr.bf16.mxu1 %v755_v33  ;;  %v1132_v43 = vpack.c.bf16 %v6346_v11, %v6333_v24  ;;  %v757_v33 = vpack.c.bf16 %v6460_v2, %v6458_v5  ;;  %v6485_v24 = vld [vmem:[#allocation2 + $0x182] sm:$0xff] }
 0x1a4   : > { %3314 = vmatprep.mubr.bf16.mxu0 %v1259_v56 }
 0x1a5   : > { %v6443_v15 = vpop.f32.mrb[0].mxu1 }
 0x1a6   : > { %7416 = vst [vmem:[#allocation20_spill] sm:$0xff] %v6443_v15  ;;  %v2588_v44 = vpop.f32.mrb[1].mxu1  ;;  %v6538_v15 = vld [vmem:[#allocation2 + $0xb0] sm:$0xff] }
 0x1a7   : > { %v6450_v62 = vpop.f32.mrb[2].mxu1  ;;  %v1261_v44 = vpack.c.bf16 %v6466_v10, %v6464_v30 }
 0x1a8   : > { %7417 = vst [vmem:[#allocation21_spill] sm:$0xff] %v6450_v62  ;;  %v2591_v29 = vpop.f32.mrb[3].mxu1  ;;  %v5370_v62 = vld [vmem:[%s5871_s20 + $0xf8] sm:$0xff] }
 0x1a9   : > { %v6483_v29 = vld [vmem:[#allocation2 + $0x17a] sm:$0xff] }
 0x1aa   : > { %2801 = vmatmul.mubr.bf16.gmra.mrb[108].mxu1 %v5364_v21  ;;  %v6477_v21 = vld [vmem:[#allocation2 + $0x1e1] sm:$0xff] }
 0x1ab   : > { %3315 = vmatmul.mubr.bf16.gmra.mrb[76].mxu0 %v1131_v25  ;;  %2808 = vmatprep.mubr.bf16.mxu1 %v756_v37  ;;  %v6479_v25 = vld [vmem:[#allocation2 + $0x1e9] sm:$0xff] }
 0x1ac   : > { %3322 = vmatprep.mubr.bf16.mxu0 %v1260_v42  ;;  %v5367_v42 = vld [vmem:[%s5871_s20 + $0xe8] sm:$0xff] }
 0x1ad   : > { %v6462_v40 = vpop.f32.mrb[4].mxu1 }
 0x1ae   : > { %7418 = vst [vmem:[#allocation22_spill] sm:$0xff] %v6462_v40  ;;  %v2596_v1 = vpop.f32.mrb[5].mxu1 }
 0x1af   : > { %v6469_v45 = vpop.f32.mrb[6].mxu1 }
 0x1b0   : > { %7419 = vst [vmem:[#allocation23_spill] sm:$0xff] %v6469_v45  ;;  %v2599_v56 = vpop.f32.mrb[7].mxu1  ;;  %v5368_v45 = vld [vmem:[%s5871_s20 + $0xf0] sm:$0xff] }
 0x1b1   : > { %v1262_v56 = vpack.c.bf16 %v6485_v24, %v6483_v29 }
 0x1b2   : > { %2809 = vmatmul.mubr.bf16.gmra.mrb[112].mxu1 %v5365_v28  ;;  %v1133_v28 = vpack.c.bf16 %v6363_v39, %v6348_v50  ;;  %v6504_v50 = vld [vmem:[#allocation2 + $0x192] sm:$0xff] }
 0x1b3   : > { %3323 = vmatmul.mubr.bf16.gmra.mrb[80].mxu0 %v1132_v43  ;;  %2816 = vmatprep.mubr.bf16.mxu1 %v757_v33  ;;  %v758_v43 = vpack.c.bf16 %v6479_v25, %v6477_v21  ;;  %7423 = vst [vmem:[#allocation27_spill] sm:$0xff] %v6504_v50 }
 0x1b4   : > { %3330 = vmatprep.mubr.bf16.mxu0 %v1261_v44  ;;  %v6496_v44 = vld [vmem:[#allocation2 + $0x1f1] sm:$0xff] }
 0x1b5   : > { %v6481_v37 = vpop.f32.mrb[8].mxu1 }
 0x1b6   : > { %7420 = vst [vmem:[#allocation24_spill] sm:$0xff] %v6481_v37  ;;  %v2604_v11 = vpop.f32.mrb[9].mxu1 }
 0x1b7   : > { %v6488_v1 = vpop.f32.mrb[10].mxu1  ;;  %v6498_v11 = vld [vmem:[#allocation2 + $0x1f9] sm:$0xff] }
 0x1b8   : > { %7421 = vst [vmem:[#allocation25_spill] sm:$0xff] %v6488_v1  ;;  %v2607_v33 = vpop.f32.mrb[11].mxu1  ;;  %v6502_v1 = vld [vmem:[#allocation2 + $0x18a] sm:$0xff] }
 0x1ba   : > { %2817 = vmatmul.mubr.bf16.gmra.mrb[116].mxu1 %v5367_v42  ;;  %v1134_v42 = vpack.c.bf16 %v6379_v7, %v6365_v54  ;;  %v6523_v54 = vld [vmem:[#allocation2 + $0x1a2] sm:$0xff] }
 0x1bb   : > { %3331 = vmatmul.mubr.bf16.gmra.mrb[84].mxu0 %v1133_v28  ;;  %2824 = vmatprep.mubr.bf16.mxu1 %v758_v43  ;;  %v759_v28 = vpack.c.bf16 %v6498_v11, %v6496_v44 }
 0x1bc   : > { %3338 = vmatprep.mubr.bf16.mxu0 %v1262_v56  ;;  %v1263_v56 = vpack.c.bf16 %v6504_v50, %v6502_v1 }
 0x1bd   : > { %v6500_v37 = vpop.f32.mrb[12].mxu1 }
 0x1be   : > { %7422 = vst [vmem:[#allocation26_spill] sm:$0xff] %v6500_v37  ;;  %v2612_v39 = vpop.f32.mrb[13].mxu1  ;;  %v6515_v37 = vld [vmem:[#allocation2 + $0x98] sm:$0xff] }
 0x1bf   : > { %v6507_v33 = vpop.f32.mrb[14].mxu1  ;;  %v6517_v39 = vld [vmem:[#allocation2 + $0xa0] sm:$0xff] }
 0x1c0   : > { %7424 = vst [vmem:[#allocation28_spill] sm:$0xff] %v6507_v33  ;;  %v2615_v43 = vpop.f32.mrb[15].mxu1  ;;  %v6521_v33 = vld [vmem:[#allocation2 + $0x19a] sm:$0xff] }
 0x1c2   : > { %2825 = vmatmul.mubr.bf16.gmra.mrb[120].mxu1 %v5368_v45  ;;  %v1135_v45 = vpack.c.bf16 %v6394_v31, %v6381_v13  ;;  %v6542_v13 = vld [vmem:[#allocation2 + $0x1b2] sm:$0xff] }
 0x1c3   : > { %3339 = vmatmul.mubr.bf16.gmra.mrb[88].mxu0 %v1134_v42  ;;  %2832 = vmatprep.mubr.bf16.mxu1 %v759_v28  ;;  %v992_v42 = vpack.c.bf16 %v6517_v39, %v6515_v37  ;;  %7428 = vst [vmem:[#allocation32_spill] sm:$0xff] %v6542_v13 }
 0x1c4   : > { %3346 = vmatprep.mubr.bf16.mxu0 %v1263_v56  ;;  %v1264_v56 = vpack.c.bf16 %v6523_v54, %v6521_v33 }
 0x1c5   : > { %v6519_v40 = vpop.f32.mrb[16].mxu1 }
 0x1c6   : > { %7425 = vst [vmem:[#allocation29_spill] sm:$0xff] %v6519_v40  ;;  %v2620_v7 = vpop.f32.mrb[17].mxu1  ;;  %v6534_v40 = vld [vmem:[#allocation2 + $0xa8] sm:$0xff] }
 0x1c7   : > { %v6526_v43 = vpop.f32.mrb[18].mxu1 }
 0x1c8   : > { %7426 = vst [vmem:[#allocation30_spill] sm:$0xff] %v6526_v43  ;;  %v2623_v28 = vpop.f32.mrb[19].mxu1  ;;  %v6540_v43 = vld [vmem:[#allocation2 + $0x1aa] sm:$0xff] }
 0x1c9   : > { %v864_v28 = vpack.c.bf16 %v6234_v22, %v6218_v57  ;;  %v6555_v57 = vld [vmem:[#allocation2 + $0xb8] sm:$0xff]  ;;  %v6557_v22 = vld [vmem:[#allocation2 + $0xc0] sm:$0xff] }
 0x1ca   : > { %2833 = vmatmul.mubr.bf16.gmra.mrb[124].mxu1 %v5370_v62  ;;  %v1136_v62 = vpack.c.bf16 %v6409_v60, %v6396_v14  ;;  %v6561_v60 = vld [vmem:[#allocation2 + $0x1ba] sm:$0xff] }
 0x1cb   : > { %3347 = vmatmul.mubr.bf16.gmra.mrb[92].mxu0 %v1135_v45  ;;  %2937 = vmatprep.mubr.bf16.mxu1 %v992_v42  ;;  %v993_v42 = vpack.c.bf16 %v6538_v15, %v6534_v40 }
 0x1cc   : > { %3354 = vmatprep.mubr.bf16.mxu0 %v1264_v56  ;;  %v1265_v56 = vpack.c.bf16 %v6542_v13, %v6540_v43  ;;  %v5378_v13 = vld [vmem:[#allocation9 + $0x218] sm:$0xff]  }
 0x1cd   : > { %v6536_v7 = vpop.f32.mrb[20].mxu1 }
 0x1ce   : > { %7427 = vst [vmem:[#allocation31_spill] sm:$0xff] %v6536_v7  ;;  %v2628_v31 = vpop.f32.mrb[21].mxu1  ;;  %v5374_v7 = vld [vmem:[#allocation9 + $0x208] sm:$0xff]  }
 0x1cf   : > { %v6546_v50 = vpop.f32.mrb[22].mxu1  ;;  %v5377_v31 = vld [vmem:[#allocation9 + $0x210] sm:$0xff]  }
 0x1d0   : > { %7429 = vst [vmem:[#allocation33_spill] sm:$0xff] %v6546_v50  ;;  %v2631_v45 = vpop.f32.mrb[23].mxu1 }
 0x1d1   : > { %v6563_v45 = vld [vmem:[#allocation2 + $0x1c2] sm:$0xff] }
 0x1d2   : > { %2938 = vmatmul.mubr.bf16.vlgmr.msra.gmra.mrb[32].mxu1 %v864_v28  ;;  %v865_v28 = vpack.c.bf16 %v6254_v18, %v6236_v34  ;;  %v6575_v34 = vld [vmem:[#allocation2 + $0xc8] sm:$0xff]  ;;  %v6577_v18 = vld [vmem:[#allocation2 + $0xd0] sm:$0xff] }
 0x1d3   : > { %3355 = vmatmul.mubr.bf16.gmra.mrb[96].mxu0 %v1136_v62  ;;  %4733 = vmatpush3.bf16.msra.mxu1 %v6281_v36  ;;  %v1137_v36 = vpack.c.bf16 %v6424_v59, %v6411_v9  ;;  %v6581_v59 = vld [vmem:[#allocation2 + $0x1ca] sm:$0xff] }
 0x1d4   : > { %2945 = vmatprep.mubr.bf16.mxu1 %v993_v42  ;;  %3362 = vmatprep.mubr.bf16.mxu0 %v1265_v56  ;;  %v994_v42 = vpack.c.bf16 %v6557_v22, %v6555_v57 }
 0x1d5   : > { %v6559_v14 = vpop.f32.mrb[24].mxu1  ;;  %4734 = vmatprep.subr.bf16.mxu1 %v5374_v7 }
 0x1d6   : > { %7430 = vst [vmem:[#allocation34_spill] sm:$0xff] %v6559_v14  ;;  %v2636_v50 = vpop.f32.mrb[25].mxu1  ;;  %v1266_v14 = vpack.c.bf16 %v6563_v45, %v6561_v60 }
 0x1d7   : > { %v6567_v62 = vpop.f32.mrb[26].mxu1  ;;  %4735 = vmatpush3.bf16.msra.mxu1 %v5374_v7  ;;  %v6583_v50 = vld [vmem:[#allocation2 + $0x1d2] sm:$0xff]  ;;  %v5379_v7 = vld [vmem:[#allocation9 + $0x220] sm:$0xff]  }
 0x1d8   : > { %7431 = vst [vmem:[#allocation35_spill] sm:$0xff] %v6567_v62  ;;  %v2639_v56 = vpop.f32.mrb[27].mxu1  ;;  %4736 = vmatprep.subr.bf16.mxu1 %v5377_v31  ;;  %v5380_v62 = vld [vmem:[#allocation9 + $0x228] sm:$0xff]  }
 0x1da   : > { %2946 = vmatmul.mubr.bf16.gmra.mrb[36].mxu1 %v865_v28  ;;  %v866_v28 = vpack.c.bf16 %v6270_v8, %v6256_v27  ;;  %v6595_v27 = vld [vmem:[#allocation2 + $0xd8] sm:$0xff]  ;;  %v6597_v8 = vld [vmem:[#allocation2 + $0xe0] sm:$0xff] }
 0x1db   : > { %3363 = vmatmul.mubr.bf16.gmra.mrb[100].mxu0 %v1137_v36  ;;  %2953 = vmatprep.mubr.bf16.mxu1 %v994_v42 }
 0x1dc   : > { %3370 = vmatprep.mubr.bf16.mxu0 %v1266_v14  ;;  %4737 = vmatpush3.bf16.msra.mxu1 %v5377_v31  ;;  %v1138_v14 = vpack.c.bf16 %v6439_v12, %v6426_v4  ;;  %v995_v31 = vpack.c.bf16 %v6577_v18, %v6575_v34  ;;  %v6599_v4 = vld [vmem:[#allocation2 + $0x1da] sm:$0xff]  ;;  %v6601_v12 = vld [vmem:[#allocation2 + $0x1e2] sm:$0xff] }
 0x1dd   : > { %v6579_v9 = vpop.f32.mrb[28].mxu1  ;;  %4738 = vmatprep.subr.bf16.mxu1 %v5378_v13 }
 0x1de   : > { %7432 = vst [vmem:[#allocation36_spill] sm:$0xff] %v6579_v9  ;;  %v2644_v56 = vpop.f32.mrb[29].mxu1  ;;  %v1267_v9 = vpack.c.bf16 %v6583_v50, %v6581_v59 }
 0x1df   : > { %v6587_v36 = vpop.f32.mrb[30].mxu1  ;;  %v5384_v56 = vld [vmem:[#allocation9 + $0x230] sm:$0xff]  }
 0x1e0   : > { %7433 = vst [vmem:[#allocation37_spill] sm:$0xff] %v6587_v36  ;;  %v2647_v42 = vpop.f32.mrb[31].mxu1  ;;  %4739 = vmatpush3.bf16.msra.mxu1 %v5378_v13  ;;  %v867_v13 = vpack.c.bf16 %v6287_v41, %v6272_v38  ;;  %v6615_v38 = vld [vmem:[#allocation2 + $0x1ea] sm:$0xff]  ;;  %v6617_v41 = vld [vmem:[#allocation2 + $0x1f2] sm:$0xff] }
 0x1e1   : > { %4740 = vmatprep.subr.bf16.mxu1 %v5379_v7  ;;  %v1269_v42 = vpack.c.bf16 %v6617_v41, %v6615_v38  ;;  %v1432_v36 = vld [vmem:[#allocation2 + $0x31] sm:$0xff] }
 0x1e2   : > { %2954 = vmatmul.mubr.bf16.gmra.mrb[40].mxu1 %v866_v28  ;;  %v1139_v28 = vpack.c.bf16 %v6458_v5, %v6441_v61  ;;  %v868_v61 = vpack.c.bf16 %v6304_v49, %v6289_v55  ;;  %v1140_v5 = vpack.c.bf16 %v6477_v21, %v6460_v2  ;;  %v1237_v55 = vld [vmem:[#allocation2 + $0x202] sm:$0xff]  ;;  %v869_v49 = vpack.c.bf16 %v6319_v51, %v6306_v53  ;;  %v1239_v53 = vld [vmem:[#allocation2 + $0x212] sm:$0xff] }
 0x1e3   : > { %3371 = vmatmul.mubr.bf16.gmra.mrb[104].mxu0 %v1138_v14  ;;  %2961 = vmatprep.mubr.bf16.mxu1 %v995_v31  ;;  %v1268_v14 = vpack.c.bf16 %v6601_v12, %v6599_v4  ;;  %v6613_v31 = vld [vmem:[#allocation2 + $0xf0] sm:$0xff]  ;;  %v1141_v2 = vpack.c.bf16 %v6496_v44, %v6479_v25  ;;  %v870_v51 = vpack.c.bf16 %v6335_v17, %v6321_v58 }
 0x1e4   : > { %3378 = vmatprep.mubr.bf16.mxu0 %v1267_v9  ;;  %4741 = vmatpush3.bf16.msra.mxu1 %v5379_v7  ;;  %v996_v9 = vpack.c.bf16 %v6597_v8, %v6595_v27  ;;  %v6611_v7 = vld [vmem:[#allocation2 + $0xe8] sm:$0xff]  ;;  %v871_v58 = vpack.c.bf16 %v6350_v35, %v6337_v6  ;;  %v872_v6 = vpack.c.bf16 %v6367_v47, %v6352_v26 }
 0x1e5   : > { %4742 = vmatprep.subr.bf16.mxu1 %v5380_v62  ;;  %v873_v26 = vpack.c.bf16 %v6383_v48, %v6369_v0  ;;  %v874_v0 = vpack.c.bf16 %v6398_v16, %v6385_v63  ;;  %v875_v63 = vpack.c.bf16 %v6413_v20, %v6400_v52  ;;  %v876_v52 = vpack.c.bf16 %v6428_v3, %v6415_v46 }
 0x1e6   : > { %v877_v46 = vpack.c.bf16 %v6445_v19, %v6430_v32  ;;  %v878_v32 = vpack.c.bf16 %v6464_v30, %v6447_v23  ;;  %v5381_v23 = vld [vmem:[%s5871_s20 + $0xcc] ss:$4 sps:$4 sm:$0xff]  }
 0x1e8   : > { %4743 = vmatpush3.bf16.msra.mxu1 %v5380_v62  ;;  %v997_v62 = vpack.c.bf16 %v6613_v31, %v6611_v7 }
 0x1e9   : > { %4744 = vmatprep.subr.bf16.mxu1 %v5384_v56 }
 0x1ea   : > { %2962 = vmatmul.mubr.bf16.gmra.mrb[44].mxu1 %v867_v13  ;;  %v6629_v13 = vld [vmem:[#allocation2 + $0x100] sm:$0xff] }
 0x1eb   : > { %3379 = vmatmul.mubr.bf16.gmra.mrb[108].mxu0 %v1139_v28  ;;  %2969 = vmatprep.mubr.bf16.mxu1 %v996_v9  ;;  %v6631_v28 = vld [vmem:[#allocation2 + $0x1fa] sm:$0xff] }
 0x1ec   : > { %3386 = vmatprep.mubr.bf16.mxu0 %v1268_v14  ;;  %4745 = vmatpush3.bf16.msra.mxu1 %v5384_v56  ;;  %v6627_v56 = vld [vmem:[#allocation2 + $0xf8] sm:$0xff]  ;;  %7434 = vst [vmem:[#allocation38_spill] sm:$0xff] %v6631_v28  ;;  %v1270_v9 = vpack.c.bf16 %v1237_v55, %v6631_v28 }
 0x1ed   : > { %v998_v21 = vpack.c.bf16 %v6629_v13, %v6627_v56  ;;  %v5388_v14 = vld [vmem:[#allocation9 + $0x238] sm:$0xff]  }
 0x1ee   : > { %4746 = vmatprep.subr.bf16.mxu1 %v5388_v14  ;;  %v1433_v28 = vld [vmem:[#allocation2 + $0x39] sm:$0xff] }
 0x1f0   : > { %4747 = vmatpush3.bf16.msra.mxu1 %v5388_v14  ;;  %v1496_v14 = vpack.c.bf16 %v1433_v28, %v1432_v36  ;;  %v1306_v28 = vld [vmem:[#allocation2 + $0x40] sm:$0xff] }
 0x1f2   : > { %2970 = vmatmul.mubr.bf16.gmra.mrb[48].mxu1 %v868_v61  ;;  %v1109_v61 = vld [vmem:[#allocation2 + $0x201] sm:$0xff] }
 0x1f3   : > { %3387 = vmatmul.mubr.bf16.gmra.mrb[112].mxu0 %v1140_v5  ;;  %2977 = vmatprep.mubr.bf16.mxu1 %v997_v62  ;;  %v6640_v5 = vld [vmem:[#allocation2 + $0x108] sm:$0xff]  ;;  %v6642_v62 = vld [vmem:[#allocation2 + $0x110] sm:$0xff]  ;;  %v1142_v25 = vpack.c.bf16 %v1109_v61, %v6498_v11 }
 0x1f4   : > { %3394 = vmatprep.mubr.bf16.mxu0 %v1269_v42  ;;  %v1238_v42 = vld [vmem:[#allocation2 + $0x20a] sm:$0xff]  ;;  %v999_v44 = vpack.c.bf16 %v6642_v62, %v6640_v5 }
 0x1f5   : > { %v1271_v55 = vpack.c.bf16 %v1239_v53, %v1238_v42  ;;  %v1304_v61 = vld [vmem:[#allocation2 + $0x30] sm:$0xff]  ;;  %v1305_v42 = vld [vmem:[#allocation2 + $0x38] sm:$0xff]  ;;  %v6657_v53 = vld [vmem:[#allocation2 + $0x128] sm:$0xff] }
 0x1f6   : > { %v1368_v35 = vpack.c.bf16 %v1305_v42, %v1304_v61  ;;  %v1308_v42 = vld [vmem:[#allocation2 + $0x50] sm:$0xff] }
 0x1fa   : > { %2978 = vmatmul.mubr.bf16.gmra.mrb[52].mxu1 %v869_v49  ;;  %v1110_v49 = vld [vmem:[#allocation2 + $0x209] sm:$0xff] }
 0x1fb   : > { %3395 = vmatmul.mubr.bf16.gmra.mrb[116].mxu0 %v1141_v2  ;;  %2985 = vmatprep.mubr.bf16.mxu1 %v998_v21  ;;  %v1111_v2 = vld [vmem:[#allocation2 + $0x211] sm:$0xff] }
 0x1fc   : > { %3402 = vmatprep.mubr.bf16.mxu0 %v1270_v9  ;;  %v6649_v21 = vld [vmem:[#allocation2 + $0x118] sm:$0xff]  ;;  %v6651_v9 = vld [vmem:[#allocation2 + $0x120] sm:$0xff]  ;;  %v1143_v17 = vpack.c.bf16 %v1111_v2, %v1110_v49  ;;  %v1307_v49 = vld [vmem:[#allocation2 + $0x48] sm:$0xff] }
 0x1fd   : > { %v1000_v11 = vpack.c.bf16 %v6651_v9, %v6649_v21  ;;  %v6665_v2 = vld [vmem:[#allocation2 + $0x138] sm:$0xff]  ;;  %v1369_v47 = vpack.c.bf16 %v1307_v49, %v1306_v28  ;;  %v1310_v49 = vld [vmem:[#allocation2 + $0x60] sm:$0xff] }
 0x202   : > { %2986 = vmatmul.mubr.bf16.gmra.mrb[56].mxu1 %v870_v51  ;;  %v6659_v51 = vld [vmem:[#allocation2 + $0x130] sm:$0xff] }
 0x203   : > { %3403 = vmatmul.mubr.bf16.gmra.mrb[120].mxu0 %v1142_v25  ;;  %2993 = vmatprep.mubr.bf16.mxu1 %v999_v44  ;;  %v1434_v25 = vld [vmem:[#allocation2 + $0x41] sm:$0xff]  ;;  %v1435_v44 = vld [vmem:[#allocation2 + $0x49] sm:$0xff] }
 0x204   : > { %3410 = vmatprep.mubr.bf16.mxu0 %v1271_v55  ;;  %v1001_v55 = vpack.c.bf16 %v6659_v51, %v6657_v53  ;;  %v1497_v36 = vpack.c.bf16 %v1435_v44, %v1434_v25  ;;  %v1309_v25 = vld [vmem:[#allocation2 + $0x58] sm:$0xff]  ;;  %v6673_v44 = vld [vmem:[#allocation2 + $0x148] sm:$0xff] }
 0x205   : > { %v1370_v48 = vpack.c.bf16 %v1309_v25, %v1308_v42  ;;  %v1312_v25 = vld [vmem:[#allocation2 + $0x70] sm:$0xff] }
 0x20a   : > { %2994 = vmatmul.mubr.bf16.gmra.mrb[60].mxu1 %v871_v58  ;;  %v6667_v58 = vld [vmem:[#allocation2 + $0x140] sm:$0xff] }
 0x20b   : > { %3411 = vmatmul.mubr.bf16.gmra.mrb[124].mxu0 %v1143_v17  ;;  %3001 = vmatprep.mubr.bf16.mxu1 %v1000_v11  ;;  %v1436_v17 = vld [vmem:[#allocation2 + $0x51] sm:$0xff]  ;;  %v1437_v11 = vld [vmem:[#allocation2 + $0x59] sm:$0xff] }
 0x20c   : > { %3451 = vmatprep.mubr.bf16.mxu0 %v1496_v14  ;;  %v1002_v14 = vpack.c.bf16 %v6667_v58, %v6665_v2  ;;  %v1498_v61 = vpack.c.bf16 %v1437_v11, %v1436_v17  ;;  %v1311_v17 = vld [vmem:[#allocation2 + $0x68] sm:$0xff]  ;;  %v6681_v11 = vld [vmem:[#allocation2 + $0x158] sm:$0xff] }
 0x20d   : > { %v1371_v16 = vpack.c.bf16 %v1311_v17, %v1310_v49  ;;  %v1314_v17 = vld [vmem:[#allocation2 + $0x80] sm:$0xff] }
 0x212   : > { %3002 = vmatmul.mubr.bf16.gmra.mrb[64].mxu1 %v872_v6  ;;  %v6675_v6 = vld [vmem:[#allocation2 + $0x150] sm:$0xff] }
 0x213   : > { %3452 = vmatmul.mubr.bf16.vlgmr.msra.gmra.mrb[0].mxu0 %v1368_v35  ;;  %3009 = vmatprep.mubr.bf16.mxu1 %v1001_v55  ;;  %v1438_v35 = vld [vmem:[#allocation2 + $0x61] sm:$0xff]  ;;  %v1439_v55 = vld [vmem:[#allocation2 + $0x69] sm:$0xff] }
 0x214   : > { %3459 = vmatprep.mubr.bf16.mxu0 %v1497_v36  ;;  %v1003_v36 = vpack.c.bf16 %v6675_v6, %v6673_v44  ;;  %v1499_v28 = vpack.c.bf16 %v1439_v55, %v1438_v35  ;;  %v1313_v35 = vld [vmem:[#allocation2 + $0x78] sm:$0xff]  ;;  %v6689_v55 = vld [vmem:[#allocation2 + $0x168] sm:$0xff] }
 0x215   : > { %v1372_v20 = vpack.c.bf16 %v1313_v35, %v1312_v25  ;;  %v1316_v35 = vld [vmem:[#allocation2 + $0x90] sm:$0xff] }
 0x216   : > { %v1374_v19 = vpack.c.bf16 %v6515_v37, %v1316_v35  ;;  %v1450_v37 = vld [vmem:[#allocation2 + $0xc1] sm:$0xff] }
 0x21a   : > { %3010 = vmatmul.mubr.bf16.gmra.mrb[68].mxu1 %v873_v26  ;;  %v6683_v26 = vld [vmem:[#allocation2 + $0x160] sm:$0xff] }
 0x21b   : > { %3460 = vmatmul.mubr.bf16.gmra.mrb[4].mxu0 %v1369_v47  ;;  %3017 = vmatprep.mubr.bf16.mxu1 %v1002_v14  ;;  %v1440_v47 = vld [vmem:[#allocation2 + $0x71] sm:$0xff]  ;;  %v1441_v14 = vld [vmem:[#allocation2 + $0x79] sm:$0xff] }
 0x21c   : > { %3467 = vmatprep.mubr.bf16.mxu0 %v1498_v61  ;;  %v1004_v61 = vpack.c.bf16 %v6683_v26, %v6681_v11  ;;  %v1500_v42 = vpack.c.bf16 %v1441_v14, %v1440_v47  ;;  %v1315_v47 = vld [vmem:[#allocation2 + $0x88] sm:$0xff]  ;;  %v6697_v14 = vld [vmem:[#allocation2 + $0x178] sm:$0xff] }
 0x21d   : > { %v1373_v3 = vpack.c.bf16 %v1315_v47, %v1314_v17  ;;  %v1448_v17 = vld [vmem:[#allocation2 + $0xb1] sm:$0xff]  ;;  %v1449_v47 = vld [vmem:[#allocation2 + $0xb9] sm:$0xff] }
 0x21e   : > { %v1504_v30 = vpack.c.bf16 %v1449_v47, %v1448_v17  ;;  %v1379_v17 = vpack.c.bf16 %v6611_v7, %v6597_v8  ;;  %v5386_v47 = vld [vmem:[%s5871_s20 + $0xec] ss:$4 sps:$4 sm:$0xff]   ;;  %v1461_v7 = vld [vmem:[#allocation2 + $0x119] sm:$0xff] }
 0x21f   : > { %v1460_v8 = vld [vmem:[#allocation2 + $0x111] sm:$0xff] }
 0x222   : > { %3018 = vmatmul.mubr.bf16.gmra.mrb[72].mxu1 %v874_v0  ;;  %v6691_v0 = vld [vmem:[#allocation2 + $0x170] sm:$0xff] }
 0x223   : > { %3468 = vmatmul.mubr.bf16.gmra.mrb[8].mxu0 %v1370_v48  ;;  %3025 = vmatprep.mubr.bf16.mxu1 %v1003_v36  ;;  %v1442_v48 = vld [vmem:[#allocation2 + $0x81] sm:$0xff]  ;;  %v1443_v36 = vld [vmem:[#allocation2 + $0x89] sm:$0xff] }
 0x224   : > { %3475 = vmatprep.mubr.bf16.mxu0 %v1499_v28  ;;  %v1005_v28 = vpack.c.bf16 %v6691_v0, %v6689_v55  ;;  %v1501_v49 = vpack.c.bf16 %v1443_v36, %v1442_v48  ;;  %v6705_v48 = vld [vmem:[#allocation2 + $0x188] sm:$0xff]  ;;  %v6707_v36 = vld [vmem:[#allocation2 + $0x190] sm:$0xff] }
 0x22a   : > { %3026 = vmatmul.mubr.bf16.gmra.mrb[76].mxu1 %v875_v63  ;;  %v6699_v63 = vld [vmem:[#allocation2 + $0x180] sm:$0xff] }
 0x22b   : > { %3476 = vmatmul.mubr.bf16.gmra.mrb[12].mxu0 %v1371_v16  ;;  %3033 = vmatprep.mubr.bf16.mxu1 %v1004_v61  ;;  %v1444_v16 = vld [vmem:[#allocation2 + $0x91] sm:$0xff]  ;;  %v1445_v61 = vld [vmem:[#allocation2 + $0x99] sm:$0xff] }
 0x22c   : > { %3483 = vmatprep.mubr.bf16.mxu0 %v1500_v42  ;;  %v1006_v42 = vpack.c.bf16 %v6699_v63, %v6697_v14  ;;  %v1502_v25 = vpack.c.bf16 %v1445_v61, %v1444_v16  ;;  %v879_v16 = vpack.c.bf16 %v6483_v29, %v6466_v10  ;;  %v1375_v61 = vpack.c.bf16 %v6534_v40, %v6517_v39  ;;  %v1452_v40 = vld [vmem:[#allocation2 + $0xd1] sm:$0xff]  ;;  %v1453_v29 = vld [vmem:[#allocation2 + $0xd9] sm:$0xff] }
 0x22d   : > { %v7435_v39 = vld [vmem:[#allocation27_spill] sm:$0xff] }
 0x22e   : > { %v881_v35 = vpack.c.bf16 %v6521_v33, %v7435_v39  ;;  %v1561_v39 = vld [vmem:[#allocation2 + $0x3a] sm:$0xff] }
 0x232   : > { %3034 = vmatmul.mubr.bf16.gmra.mrb[80].mxu1 %v876_v52  ;;  %v1446_v52 = vld [vmem:[#allocation2 + $0xa1] sm:$0xff] }
 0x233   : > { %3484 = vmatmul.mubr.bf16.gmra.mrb[16].mxu0 %v1372_v20  ;;  %3041 = vmatprep.mubr.bf16.mxu1 %v1005_v28  ;;  %v1447_v20 = vld [vmem:[#allocation2 + $0xa9] sm:$0xff]  ;;  %v1007_v28 = vpack.c.bf16 %v6707_v36, %v6705_v48 }
 0x234   : > { %3491 = vmatprep.mubr.bf16.mxu0 %v1501_v49  ;;  %v1503_v49 = vpack.c.bf16 %v1447_v20, %v1446_v52  ;;  %v1377_v52 = vpack.c.bf16 %v6575_v34, %v6557_v22  ;;  %v5383_v20 = vld [vmem:[%s5871_s20 + $0xdc] ss:$4 sps:$4 sm:$0xff]   ;;  %v1456_v22 = vld [vmem:[#allocation2 + $0xf1] sm:$0xff] }
 0x235   : > { %v1457_v34 = vld [vmem:[#allocation2 + $0xf9] sm:$0xff] }
 0x23a   : > { %3042 = vmatmul.mubr.bf16.gmra.mrb[84].mxu1 %v877_v46  ;;  %v1451_v46 = vld [vmem:[#allocation2 + $0xc9] sm:$0xff] }
 0x23b   : > { %3492 = vmatmul.mubr.bf16.gmra.mrb[20].mxu0 %v1373_v3  ;;  %3049 = vmatprep.mubr.bf16.mxu1 %v1006_v42  ;;  %v880_v3 = vpack.c.bf16 %v6502_v1, %v6485_v24  ;;  %v1376_v42 = vpack.c.bf16 %v6555_v57, %v6538_v15  ;;  %v1505_v10 = vpack.c.bf16 %v1451_v46, %v1450_v37  ;;  %v1454_v15 = vld [vmem:[#allocation2 + $0xe1] sm:$0xff]  ;;  %v1455_v1 = vld [vmem:[#allocation2 + $0xe9] sm:$0xff] }
 0x23c   : > { %3499 = vmatprep.mubr.bf16.mxu0 %v1502_v25  ;;  %v5382_v25 = vld [vmem:[%s5871_s20 + $0xd4] ss:$4 sps:$4 sm:$0xff]   ;;  %v1506_v24 = vpack.c.bf16 %v1453_v29, %v1452_v40  ;;  %v882_v57 = vpack.c.bf16 %v6540_v43, %v6523_v54  ;;  %v1507_v33 = vpack.c.bf16 %v1455_v1, %v1454_v15  ;;  %v1508_v54 = vpack.c.bf16 %v1457_v34, %v1456_v22  ;;  %v1458_v43 = vld [vmem:[#allocation2 + $0x101] sm:$0xff]  ;;  %v1563_v15 = vld [vmem:[#allocation2 + $0x4a] sm:$0xff] }
 0x23d   : > { %v1510_v46 = vpack.c.bf16 %v1461_v7, %v1460_v8  ;;  %v1560_v29 = vld [vmem:[#allocation2 + $0x32] sm:$0xff]  ;;  %v1384_v22 = vpack.c.bf16 %v6665_v2, %v6659_v51  ;;  %v1570_v51 = vld [vmem:[#allocation2 + $0x82] sm:$0xff]  ;;  %v1571_v2 = vld [vmem:[#allocation2 + $0x8a] sm:$0xff] }
 0x23e   : > { %v1564_v1 = vld [vmem:[#allocation2 + $0x52] sm:$0xff]  ;;  %v1471_v8 = vld [vmem:[#allocation2 + $0x169] sm:$0xff]  ;;  %v1629_v7 = vpack.c.bf16 %v1571_v2, %v1570_v51 }
 0x242   : > { %3050 = vmatmul.mubr.bf16.gmra.mrb[88].mxu1 %v878_v32  ;;  %v1378_v32 = vpack.c.bf16 %v6595_v27, %v6577_v18  ;;  %v1459_v18 = vld [vmem:[#allocation2 + $0x109] sm:$0xff]  ;;  %v884_v27 = vpack.c.bf16 %v6581_v59, %v6563_v45  ;;  %v1381_v45 = vpack.c.bf16 %v6640_v5, %v6629_v13  ;;  %v5391_v59 = vld [vmem:[#allocation2 + $0x1f8] sm:$0xff]  ;;  %v1382_v13 = vpack.c.bf16 %v6649_v21, %v6642_v62 }
 0x243   : > { %3500 = vmatmul.mubr.bf16.gmra.mrb[24].mxu0 %v1374_v19  ;;  %3057 = vmatprep.mubr.bf16.mxu1 %v1007_v28  ;;  %v5385_v19 = vld [vmem:[%s5871_s20 + $0xe4] ss:$4 sps:$4 sm:$0xff]  }
 0x244   : > { %3507 = vmatprep.mubr.bf16.mxu0 %v1503_v49  ;;  %v7436_v28 = vld [vmem:[#allocation32_spill] sm:$0xff] }
 0x245   : > { %v883_v49 = vpack.c.bf16 %v6561_v60, %v7436_v28  ;;  %v1509_v60 = vpack.c.bf16 %v1459_v18, %v1458_v43  ;;  %v5389_v5 = vld [vmem:[%s5879_s10 + $0x4] ss:$4 sps:$4 sm:$0xff]   ;;  %v1568_v28 = vld [vmem:[#allocation2 + $0x72] sm:$0xff]  ;;  %v1385_v43 = vpack.c.bf16 %v6673_v44, %v6667_v58 }
 0x246   : > { %v1562_v21 = vld [vmem:[#allocation2 + $0x42] sm:$0xff]  ;;  %v1575_v44 = vld [vmem:[#allocation2 + $0xaa] sm:$0xff] }
 0x247   : > { %v1574_v58 = vld [vmem:[#allocation2 + $0xa2] sm:$0xff] }
 0x24a   : > { %3058 = vmatmul.mubr.bf16.gmra.mrb[92].mxu1 %v879_v16  ;;  %v1380_v16 = vpack.c.bf16 %v6627_v56, %v6613_v31  ;;  %v5392_v31 = vld [vmem:[#allocation2 + $0x200] sm:$0xff] }
 0x24b   : > { %3508 = vmatmul.mubr.bf16.gmra.mrb[28].mxu0 %v1375_v61  ;;  %3065 = vmatprep.mubr.bf16.mxu1 %v5381_v23  ;;  %v5387_v61 = vld [vmem:[%s5871_s20 + $0xf4] ss:$4 sps:$4 sm:$0xff]   ;;  %v1014_v56 = vpack.c.bf16 %v5392_v31, %v5391_v59  ;;  %s5486_s20 = sshll.u32 %s5604_s13, 4  ;;  %s5487_s20 = int_to_ptr.vmem [resolvable:$false] %s5486_s20 }
 0x24c   : > { %3515 = vmatprep.mubr.bf16.mxu0 %v1504_v30  ;;  %v4690_v23 = vld [vmem:[%s5879_s10 + $0x10] sm:$0xff]   ;;  %v885_v30 = vpack.c.bf16 %v6599_v4, %v6583_v50  ;;  %v886_v50 = vpack.c.bf16 %v6615_v38, %v6601_v12  ;;  %v1383_v38 = vpack.c.bf16 %v6657_v53, %v6651_v9  ;;  %v1566_v9 = vld [vmem:[#allocation2 + $0x62] sm:$0xff]  ;;  %v1577_v59 = vld [vmem:[#allocation2 + $0xba] sm:$0xff]  ;;  %s5488_s0 = scalar_lea.vmem %s5487_s20, 16384  ;;  %p5489_p0 = scmp.lt.s32.totalorder %s7304_s8, %s5487_s20 }
 0x24d   : > { %v4652_v37 = vunpack.c.l.bf16 %v4690_v23  ;;  %v4653_v4 = vunpack.c.h.bf16 %v4690_v23  ;;  %v1567_v53 = vld [vmem:[#allocation2 + $0x6a] sm:$0xff]  ;;  %v1386_v23 = vpack.c.bf16 %v6681_v11, %v6675_v6  ;;  %v1387_v6 = vpack.c.bf16 %v6689_v55, %v6683_v26  ;;  %p5490_p2 = scmp.lt.s32.totalorder %s5488_s0, %s5482_s5 }
 0x24e   : > { %v1388_v26 = vpack.c.bf16 %v6697_v14, %v6691_v0  ;;  %v1389_v0 = vpack.c.bf16 %v6705_v48, %v6699_v63 }
 0x24f   : > { %532 = vst [vmem:[#allocation2 + $0x220] sm:$0xff] %v4652_v37  ;;  %533 = vst [vmem:[#allocation2 + $0x228] sm:$0xff] %v4653_v4  ;;  %p5491_p9 = por %p5490_p2, %p5489_p0 }
 0x251   : > { %p5492_p4 = pnand %p5491_p9, %p5485_p13 }
 0x252   : > { %3066 = vmatmul.mubr.bf16.gmra.mrb[96].mxu1 %v880_v3  ;;  %v1462_v3 = vld [vmem:[#allocation2 + $0x121] sm:$0xff] }
 0x253   : > { %3516 = vmatmul.mubr.bf16.gmra.mrb[32].mxu0 %v1376_v42  ;;  %3073 = vmatprep.mubr.bf16.mxu1 %v5382_v25  ;;  %v1463_v42 = vld [vmem:[#allocation2 + $0x129] sm:$0xff]  ;;  %v4691_v25 = vld [vmem:[%s5879_s10 + $0x18] sm:$0xff]  }
 0x254   : > { %3523 = vmatprep.mubr.bf16.mxu0 %v1505_v10  ;;  %v4656_v10 = vunpack.c.l.bf16 %v4691_v25  ;;  %v1511_v40 = vpack.c.bf16 %v1463_v42, %v1462_v3  ;;  %v1631_v42 = vpack.c.bf16 %v1575_v44, %v1574_v58  ;;  %v1480_v44 = vld [vmem:[#allocation2 + $0x1b1] sm:$0xff] }
 0x256   : > { %534 = vst [vmem:[#allocation2 + $0x230] sm:$0xff] %v4656_v10  ;;  %v1578_v10 = vld [vmem:[#allocation2 + $0xc2] sm:$0xff] }
 0x25a   : > { %3074 = vmatmul.mubr.bf16.gmra.mrb[100].mxu1 %v881_v35  ;;  %v1464_v35 = vld [vmem:[#allocation2 + $0x131] sm:$0xff] }
 0x25b   : > { %3524 = vmatmul.mubr.bf16.gmra.mrb[36].mxu0 %v1377_v52  ;;  %3081 = vmatprep.mubr.bf16.mxu1 %v5383_v20  ;;  %v1465_v52 = vld [vmem:[#allocation2 + $0x139] sm:$0xff]  ;;  %v7437_v20 = vld [vmem:[#allocation38_spill] sm:$0xff] }
 0x25c   : > { %3531 = vmatprep.mubr.bf16.mxu0 %v1506_v24  ;;  %v887_v12 = vpack.c.bf16 %v7437_v20, %v6617_v41  ;;  %v1624_v24 = vpack.c.bf16 %v1561_v39, %v1560_v29  ;;  %v1512_v62 = vpack.c.bf16 %v1465_v52, %v1464_v35  ;;  %v1474_v39 = vld [vmem:[#allocation2 + $0x181] sm:$0xff]  ;;  %v1475_v35 = vld [vmem:[#allocation2 + $0x189] sm:$0xff] }
 0x262   : > { %3082 = vmatmul.mubr.bf16.gmra.mrb[104].mxu1 %v882_v57  ;;  %v1565_v57 = vld [vmem:[#allocation2 + $0x5a] sm:$0xff] }
 0x263   : > { %3532 = vmatmul.mubr.bf16.gmra.mrb[40].mxu0 %v1378_v32  ;;  %3089 = vmatprep.mubr.bf16.mxu1 %v5385_v19  ;;  %v1466_v32 = vld [vmem:[#allocation2 + $0x141] sm:$0xff]  ;;  %v1467_v19 = vld [vmem:[#allocation2 + $0x149] sm:$0xff]  ;;  %v1626_v41 = vpack.c.bf16 %v1565_v57, %v1564_v1 }
 0x264   : > { %3539 = vmatprep.mubr.bf16.mxu0 %v1507_v33  ;;  %v1625_v33 = vpack.c.bf16 %v1563_v15, %v1562_v21  ;;  %v1513_v34 = vpack.c.bf16 %v1467_v19, %v1466_v32  ;;  %v1583_v21 = vld [vmem:[#allocation2 + $0xea] sm:$0xff]  ;;  %v1584_v15 = vld [vmem:[#allocation2 + $0xf2] sm:$0xff]  ;;  %v1585_v1 = vld [vmem:[#allocation2 + $0xfa] sm:$0xff] }
 0x265   : > { %v1476_v32 = vld [vmem:[#allocation2 + $0x191] sm:$0xff]  ;;  %v1477_v19 = vld [vmem:[#allocation2 + $0x199] sm:$0xff]  ;;  %v1636_v14 = vpack.c.bf16 %v1585_v1, %v1584_v15  ;;  %v1598_v15 = vld [vmem:[#allocation2 + $0x162] sm:$0xff] }
 0x266   : > { %v1599_v1 = vld [vmem:[#allocation2 + $0x16a] sm:$0xff] }
 0x26a   : > { %3090 = vmatmul.mubr.bf16.gmra.mrb[108].mxu1 %v883_v49  ;;  %v1569_v49 = vld [vmem:[#allocation2 + $0x7a] sm:$0xff] }
 0x26b   : > { %3540 = vmatmul.mubr.bf16.gmra.mrb[44].mxu0 %v1379_v17  ;;  %3097 = vmatprep.mubr.bf16.mxu1 %v5386_v47  ;;  %v1468_v17 = vld [vmem:[#allocation2 + $0x151] sm:$0xff]  ;;  %v1469_v47 = vld [vmem:[#allocation2 + $0x159] sm:$0xff]  ;;  %v1628_v18 = vpack.c.bf16 %v1569_v49, %v1568_v28 }
 0x26c   : > { %3547 = vmatprep.mubr.bf16.mxu0 %v1508_v54  ;;  %v1627_v54 = vpack.c.bf16 %v1567_v53, %v1566_v9  ;;  %v1518_v9 = vpack.c.bf16 %v1477_v19, %v1476_v32  ;;  %v1586_v53 = vld [vmem:[#allocation2 + $0x102] sm:$0xff]  ;;  %v1587_v28 = vld [vmem:[#allocation2 + $0x10a] sm:$0xff]  ;;  %v1349_v49 = vld [vmem:[#allocation2 + $0x198] sm:$0xff] }
 0x26d   : > { %v1637_v51 = vpack.c.bf16 %v1587_v28, %v1586_v53  ;;  %v1390_v63 = vpack.c.bf16 %v1349_v49, %v6707_v36  ;;  %v1355_v32 = vld [vmem:[#allocation2 + $0x1c8] sm:$0xff]  ;;  %v1600_v19 = vld [vmem:[#allocation2 + $0x172] sm:$0xff] }
 0x272   : > { %3098 = vmatmul.mubr.bf16.gmra.mrb[112].mxu1 %v884_v27  ;;  %v1514_v27 = vpack.c.bf16 %v1469_v47, %v1468_v17  ;;  %v1588_v17 = vld [vmem:[#allocation2 + $0x112] sm:$0xff]  ;;  %v1589_v47 = vld [vmem:[#allocation2 + $0x11a] sm:$0xff] }
 0x273   : > { %3548 = vmatmul.mubr.bf16.gmra.mrb[48].mxu0 %v1380_v16  ;;  %3105 = vmatprep.mubr.bf16.mxu1 %v5387_v61  ;;  %v1572_v16 = vld [vmem:[#allocation2 + $0x92] sm:$0xff]  ;;  %v1573_v61 = vld [vmem:[#allocation2 + $0x9a] sm:$0xff]  ;;  %v1638_v48 = vpack.c.bf16 %v1589_v47, %v1588_v17 }
 0x274   : > { %3555 = vmatprep.mubr.bf16.mxu0 %v1509_v60  ;;  %v1470_v60 = vld [vmem:[#allocation2 + $0x161] sm:$0xff] }
 0x275   : > { %v1515_v37 = vpack.c.bf16 %v1471_v8, %v1470_v60  ;;  %v1350_v60 = vld [vmem:[#allocation2 + $0x1a0] sm:$0xff] }
 0x276   : > { %v1590_v8 = vld [vmem:[#allocation2 + $0x122] sm:$0xff] }
 0x27a   : > { %3106 = vmatmul.mubr.bf16.gmra.mrb[116].mxu1 %v885_v30  ;;  %v1630_v30 = vpack.c.bf16 %v1573_v61, %v1572_v16 }
 0x27b   : > { %3556 = vmatmul.mubr.bf16.gmra.mrb[52].mxu0 %v1381_v45  ;;  %3113 = vmatprep.mubr.bf16.mxu1 %v1014_v56  ;;  %v1576_v45 = vld [vmem:[#allocation2 + $0xb2] sm:$0xff] }
 0x27c   : > { %3563 = vmatprep.mubr.bf16.mxu0 %v1510_v46  ;;  %v1472_v56 = vld [vmem:[#allocation2 + $0x171] sm:$0xff]  ;;  %v1473_v46 = vld [vmem:[#allocation2 + $0x179] sm:$0xff]  ;;  %v1632_v11 = vpack.c.bf16 %v1577_v59, %v1576_v45 }
 0x27d   : > { %v1516_v4 = vpack.c.bf16 %v1473_v46, %v1472_v56  ;;  %v1481_v45 = vld [vmem:[#allocation2 + $0x1b9] sm:$0xff] }
 0x282   : > { %3114 = vmatmul.mubr.bf16.gmra.mrb[120].mxu1 %v886_v50 }
 0x283   : > { %3564 = vmatmul.mubr.bf16.gmra.mrb[56].mxu0 %v1382_v13  ;;  %3121 = vmatprep.mubr.bf16.mxu1 %v5389_v5  ;;  %v1579_v13 = vld [vmem:[#allocation2 + $0xca] sm:$0xff]  ;;  %v1580_v5 = vld [vmem:[#allocation2 + $0xd2] sm:$0xff] }
 0x284   : > { %3571 = vmatprep.mubr.bf16.mxu0 %v1511_v40  ;;  %v1581_v40 = vld [vmem:[#allocation2 + $0xda] sm:$0xff]  ;;  %v1633_v20 = vpack.c.bf16 %v1579_v13, %v1578_v10  ;;  %v1596_v13 = vld [vmem:[#allocation2 + $0x152] sm:$0xff] }
 0x285   : > { %v1634_v55 = vpack.c.bf16 %v1581_v40, %v1580_v5  ;;  %v1353_v10 = vld [vmem:[#allocation2 + $0x1b8] sm:$0xff] }
 0x286   : > { %v1597_v5 = vld [vmem:[#allocation2 + $0x15a] sm:$0xff] }
 0x28a   : > { %3122 = vmatmul.mubr.bf16.gmra.mrb[124].mxu1 %v887_v12 }
 0x28b   : > { %3572 = vmatmul.mubr.bf16.gmra.mrb[60].mxu0 %v1383_v38  ;;  %4748 = vmatprep.mubr.bf16.mxu1 %v1624_v24  ;;  %v1517_v24 = vpack.c.bf16 %v1475_v35, %v1474_v39  ;;  %v1482_v39 = vld [vmem:[#allocation2 + $0x1c1] sm:$0xff]  ;;  %v1483_v35 = vld [vmem:[#allocation2 + $0x1c9] sm:$0xff] }
 0x28c   : > { %3579 = vmatprep.mubr.bf16.mxu0 %v1512_v62  ;;  %v1582_v62 = vld [vmem:[#allocation2 + $0xe2] sm:$0xff] }
 0x292   : > { %4749 = vmatmul.mubr.bf16.vlgmr.msra.gmra.mrb[128].mxu1 %v1625_v33 }
 0x293   : > { %3580 = vmatmul.mubr.bf16.gmra.mrb[64].mxu0 %v1384_v22  ;;  %4752 = vmatprep.mubr.bf16.mxu1 %v1626_v41  ;;  %v1635_v22 = vpack.c.bf16 %v1583_v21, %v1582_v62  ;;  %v1521_v62 = vpack.c.bf16 %v1483_v35, %v1482_v39  ;;  %v1354_v21 = vld [vmem:[#allocation2 + $0x1c0] sm:$0xff] }
 0x294   : > { %3587 = vmatprep.mubr.bf16.mxu0 %v1513_v34  ;;  %v1393_v28 = vpack.c.bf16 %v1355_v32, %v1354_v21  ;;  %v7438_v39 = vld [vmem:[#allocation20_spill] sm:$0xff] }
 0x29a   : > { %4753 = vmatmul.mubr.bf16.gmra.mrb[132].mxu1 %v1627_v54 }
 0x29b   : > { %3588 = vmatmul.mubr.bf16.gmra.mrb[68].mxu0 %v1385_v43  ;;  %4756 = vmatprep.mubr.bf16.mxu1 %v1628_v18  ;;  %v1478_v43 = vld [vmem:[#allocation2 + $0x1a1] sm:$0xff]  ;;  %v1479_v18 = vld [vmem:[#allocation2 + $0x1a9] sm:$0xff] }
 0x29c   : > { %3595 = vmatprep.mubr.bf16.mxu0 %v1514_v27  ;;  %v1519_v61 = vpack.c.bf16 %v1479_v18, %v1478_v43  ;;  %v1356_v43 = vld [vmem:[#allocation2 + $0x1d0] sm:$0xff]  ;;  %v1602_v18 = vld [vmem:[#allocation2 + $0x182] sm:$0xff] }
 0x2a2   : > { %4757 = vmatmul.mubr.bf16.gmra.mrb[136].mxu1 %v1629_v7  ;;  %v1591_v7 = vld [vmem:[#allocation2 + $0x12a] sm:$0xff] }
 0x2a3   : > { %3596 = vmatmul.mubr.bf16.gmra.mrb[72].mxu0 %v1386_v23  ;;  %4760 = vmatprep.mubr.bf16.mxu1 %v1630_v30  ;;  %v1351_v23 = vld [vmem:[#allocation2 + $0x1a8] sm:$0xff]  ;;  %v1592_v30 = vld [vmem:[#allocation2 + $0x132] sm:$0xff]  ;;  %v1639_v56 = vpack.c.bf16 %v1591_v7, %v1590_v8 }
 0x2a4   : > { %3603 = vmatprep.mubr.bf16.mxu0 %v1515_v37  ;;  %v1593_v37 = vld [vmem:[#allocation2 + $0x13a] sm:$0xff]  ;;  %v1391_v46 = vpack.c.bf16 %v1351_v23, %v1350_v60  ;;  %v1487_v60 = vld [vmem:[#allocation2 + $0x1e9] sm:$0xff] }
 0x2a5   : > { %v6765_v31 = vpop.f32.mrb[32].mxu1 }
 0x2a6   : > { %v2941_v3 = vpop.f32.mrb[33].mxu1 }
 0x2a7   : > { %v6767_v25 = vpop.f32.mrb[34].mxu1  ;;  %v1640_v3 = vpack.c.bf16 %v1593_v37, %v1592_v30 }
 0x2a8   : > { %v2944_v50 = vpop.f32.mrb[35].mxu1 }
 0x2a9   : > { %v1594_v50 = vld [vmem:[#allocation2 + $0x142] sm:$0xff] }
 0x2aa   : > { %4761 = vmatmul.mubr.bf16.gmra.mrb[140].mxu1 %v1631_v42 }
 0x2ab   : > { %3604 = vmatmul.mubr.bf16.gmra.mrb[76].mxu0 %v1387_v6  ;;  %4764 = vmatprep.mubr.bf16.mxu1 %v1632_v11  ;;  %v1520_v6 = vpack.c.bf16 %v1481_v45, %v1480_v44  ;;  %v1352_v11 = vld [vmem:[#allocation2 + $0x1b0] sm:$0xff] }
 0x2ac   : > { %3611 = vmatprep.mubr.bf16.mxu0 %v1516_v4  ;;  %v1595_v4 = vld [vmem:[#allocation2 + $0x14a] sm:$0xff] }
 0x2ad   : > { %v6771_v29 = vpop.f32.mrb[36].mxu1 }
 0x2ae   : > { %v2949_v52 = vpop.f32.mrb[37].mxu1 }
 0x2af   : > { %v6773_v12 = vpop.f32.mrb[38].mxu1 }
 0x2b0   : > { %v2952_v38 = vpop.f32.mrb[39].mxu1 }
 0x2b1   : > { %v1642_v38 = vpack.c.bf16 %v1597_v5, %v1596_v13 }
 0x2b2   : > { %4765 = vmatmul.mubr.bf16.gmra.mrb[144].mxu1 %v1633_v20  ;;  %v1641_v20 = vpack.c.bf16 %v1595_v4, %v1594_v50  ;;  %v1488_v50 = vld [vmem:[#allocation2 + $0x1f1] sm:$0xff]  ;;  %v1489_v4 = vld [vmem:[#allocation2 + $0x1f9] sm:$0xff] }
 0x2b3   : > { %3612 = vmatmul.mubr.bf16.gmra.mrb[80].mxu0 %v1388_v26  ;;  %4768 = vmatprep.mubr.bf16.mxu1 %v1634_v55  ;;  %v1392_v55 = vpack.c.bf16 %v1353_v10, %v1352_v11  ;;  %v1524_v21 = vpack.c.bf16 %v1489_v4, %v1488_v50  ;;  %v1492_v4 = vld [vmem:[#allocation2 + $0x211] sm:$0xff] }
 0x2b4   : > { %3619 = vmatprep.mubr.bf16.mxu0 %v1517_v24 }
 0x2b5   : > { %v6777_v57 = vpop.f32.mrb[40].mxu1 }
 0x2b6   : > { %v2957_v33 = vpop.f32.mrb[41].mxu1 }
 0x2b7   : > { %v6779_v41 = vpop.f32.mrb[42].mxu1  ;;  %v1601_v33 = vld [vmem:[#allocation2 + $0x17a] sm:$0xff] }
 0x2b8   : > { %v2960_v34 = vpop.f32.mrb[43].mxu1  ;;  %v1644_v49 = vpack.c.bf16 %v1601_v33, %v1600_v19  ;;  %v1360_v19 = vld [vmem:[#allocation2 + $0x1f0] sm:$0xff]  ;;  %v1610_v33 = vld [vmem:[#allocation2 + $0x1c2] sm:$0xff] }
 0x2ba   : > { %4769 = vmatmul.mubr.bf16.gmra.mrb[148].mxu1 %v1635_v22 }
 0x2bb   : > { %3620 = vmatmul.mubr.bf16.gmra.mrb[84].mxu0 %v1389_v0  ;;  %4772 = vmatprep.mubr.bf16.mxu1 %v1636_v14  ;;  %v1484_v0 = vld [vmem:[#allocation2 + $0x1d1] sm:$0xff]  ;;  %v1485_v14 = vld [vmem:[#allocation2 + $0x1d9] sm:$0xff] }
 0x2bc   : > { %3627 = vmatprep.mubr.bf16.mxu0 %v1518_v9  ;;  %v1643_v9 = vpack.c.bf16 %v1599_v1, %v1598_v15  ;;  %v1522_v47 = vpack.c.bf16 %v1485_v14, %v1484_v0  ;;  %v7439_v15 = vld [vmem:[#allocation21_spill] sm:$0xff]  ;;  %v1361_v14 = vld [vmem:[#allocation2 + $0x1f8] sm:$0xff] }
 0x2bd   : > { %v6783_v54 = vpop.f32.mrb[44].mxu1  ;;  %v1611_v0 = vld [vmem:[#allocation2 + $0x1ca] sm:$0xff] }
 0x2be   : > { %v2965_v27 = vpop.f32.mrb[45].mxu1 }
 0x2bf   : > { %v6785_v2 = vpop.f32.mrb[46].mxu1  ;;  %v1603_v27 = vld [vmem:[#allocation2 + $0x18a] sm:$0xff] }
 0x2c0   : > { %v2968_v16 = vpop.f32.mrb[47].mxu1  ;;  %v1645_v7 = vpack.c.bf16 %v1603_v27, %v1602_v18  ;;  %v1649_v18 = vpack.c.bf16 %v1611_v0, %v1610_v33  ;;  %v7440_v27 = vld [vmem:[#allocation22_spill] sm:$0xff]  ;;  %v7443_v33 = vld [vmem:[#allocation25_spill] sm:$0xff] }
 0x2c2   : > { %4773 = vmatmul.mubr.bf16.gmra.mrb[152].mxu1 %v1637_v51  ;;  %v1357_v51 = vld [vmem:[#allocation2 + $0x1d8] sm:$0xff] }
 0x2c3   : > { %3628 = vmatmul.mubr.bf16.gmra.mrb[88].mxu0 %v1390_v63  ;;  %4776 = vmatprep.mubr.bf16.mxu1 %v1638_v48  ;;  %v1604_v63 = vld [vmem:[#allocation2 + $0x192] sm:$0xff]  ;;  %v1605_v48 = vld [vmem:[#allocation2 + $0x19a] sm:$0xff]  ;;  %v1394_v30 = vpack.c.bf16 %v1357_v51, %v1356_v43 }
 0x2c4   : > { %3635 = vmatprep.mubr.bf16.mxu0 %v1519_v61  ;;  %v1486_v61 = vld [vmem:[#allocation2 + $0x1e1] sm:$0xff]  ;;  %v1646_v37 = vpack.c.bf16 %v1605_v48, %v1604_v63 }
 0x2c5   : > { %v6788_v58 = vpop.f32.mrb[48].mxu1  ;;  %v1523_v45 = vpack.c.bf16 %v1487_v60, %v1486_v61  ;;  %v1396_v61 = vpack.c.bf16 %v1361_v14, %v1360_v19 }
 0x2c6   : > { %v2973_v59 = vpop.f32.mrb[49].mxu1 }
 0x2c7   : > { %v6790_v36 = vpop.f32.mrb[50].mxu1  ;;  %v1358_v59 = vld [vmem:[#allocation2 + $0x1e0] sm:$0xff] }
 0x2c8   : > { %v2976_v42 = vpop.f32.mrb[51].mxu1 }
 0x2c9   : > { %v1608_v42 = vld [vmem:[#allocation2 + $0x1b2] sm:$0xff] }
 0x2ca   : > { %4777 = vmatmul.mubr.bf16.gmra.mrb[156].mxu1 %v1639_v56  ;;  %v1606_v56 = vld [vmem:[#allocation2 + $0x1a2] sm:$0xff] }
 0x2cb   : > { %3636 = vmatmul.mubr.bf16.gmra.mrb[92].mxu0 %v1391_v46  ;;  %4780 = vmatprep.mubr.bf16.mxu1 %v1640_v3  ;;  %v1607_v46 = vld [vmem:[#allocation2 + $0x1aa] sm:$0xff] }
 0x2cc   : > { %3643 = vmatprep.mubr.bf16.mxu0 %v1520_v6  ;;  %v1359_v3 = vld [vmem:[#allocation2 + $0x1e8] sm:$0xff]  ;;  %v1609_v6 = vld [vmem:[#allocation2 + $0x1ba] sm:$0xff]  ;;  %v1647_v5 = vpack.c.bf16 %v1607_v46, %v1606_v56 }
 0x2cd   : > { %v6792_v40 = vpop.f32.mrb[52].mxu1  ;;  %v1614_v56 = vld [vmem:[#allocation2 + $0x1e2] sm:$0xff]  ;;  %v1615_v46 = vld [vmem:[#allocation2 + $0x1ea] sm:$0xff] }
 0x2ce   : > { %v2981_v52 = vpop.f32.mrb[53].mxu1 }
 0x2cf   : > { %v6794_v26 = vpop.f32.mrb[54].mxu1 }
 0x2d0   : > { %v2984_v24 = vpop.f32.mrb[55].mxu1 }
 0x2d2   : > { %4781 = vmatmul.mubr.bf16.gmra.mrb[160].mxu1 %v1641_v20 }
 0x2d3   : > { %3644 = vmatmul.mubr.bf16.gmra.mrb[96].mxu0 %v1392_v55  ;;  %4784 = vmatprep.mubr.bf16.mxu1 %v1642_v38  ;;  %v1395_v55 = vpack.c.bf16 %v1359_v3, %v1358_v59  ;;  %v1648_v38 = vpack.c.bf16 %v1609_v6, %v1608_v42  ;;  %v1362_v59 = vld [vmem:[#allocation2 + $0x200] sm:$0xff]  ;;  %v1363_v3 = vld [vmem:[#allocation2 + $0x208] sm:$0xff]  ;;  %v1616_v42 = vld [vmem:[#allocation2 + $0x1f2] sm:$0xff] }
 0x2d4   : > { %3651 = vmatprep.mubr.bf16.mxu0 %v1521_v62  ;;  %v1617_v6 = vld [vmem:[#allocation2 + $0x1fa] sm:$0xff] }
 0x2d5   : > { %v6796_v22 = vpop.f32.mrb[56].mxu1 }
 0x2d6   : > { %v2989_v34 = vpop.f32.mrb[57].mxu1 }
 0x2d7   : > { %v6798_v53 = vpop.f32.mrb[58].mxu1  ;;  %v1612_v34 = vld [vmem:[#allocation2 + $0x1d2] sm:$0xff] }
 0x2d8   : > { %v2992_v17 = vpop.f32.mrb[59].mxu1 }
 0x2d9   : > { %v1491_v17 = vld [vmem:[#allocation2 + $0x209] sm:$0xff] }
 0x2da   : > { %4785 = vmatmul.mubr.bf16.gmra.mrb[164].mxu1 %v1643_v9  ;;  %v1613_v9 = vld [vmem:[#allocation2 + $0x1da] sm:$0xff] }
 0x2db   : > { %3652 = vmatmul.mubr.bf16.gmra.mrb[100].mxu0 %v1393_v28  ;;  %4788 = vmatprep.mubr.bf16.mxu1 %v1644_v49  ;;  %v1490_v49 = vld [vmem:[#allocation2 + $0x201] sm:$0xff]  ;;  %v1650_v60 = vpack.c.bf16 %v1613_v9, %v1612_v34  ;;  %v1364_v34 = vld [vmem:[#allocation2 + $0x210] sm:$0xff] }
 0x2dc   : > { %3659 = vmatprep.mubr.bf16.mxu0 %v1522_v47  ;;  %v1618_v9 = vld [vmem:[#allocation2 + $0x202] sm:$0xff] }
 0x2dd   : > { %v6800_v16 = vpop.f32.mrb[60].mxu1 }
 0x2de   : > { %v2997_v8 = vpop.f32.mrb[61].mxu1 }
 0x2df   : > { %v6802_v23 = vpop.f32.mrb[62].mxu1 }
 0x2e0   : > { %v3000_v44 = vpop.f32.mrb[63].mxu1 }
 0x2e2   : > { %4789 = vmatmul.mubr.bf16.gmra.mrb[168].mxu1 %v1645_v7 }
 0x2e3   : > { %3660 = vmatmul.mubr.bf16.gmra.mrb[104].mxu0 %v1394_v30  ;;  %4792 = vmatprep.mubr.bf16.mxu1 %v1646_v37  ;;  %v1525_v30 = vpack.c.bf16 %v1491_v17, %v1490_v49  ;;  %v7441_v37 = vld [vmem:[#allocation23_spill] sm:$0xff]  ;;  %v1619_v49 = vld [vmem:[#allocation2 + $0x20a] sm:$0xff] }
 0x2e4   : > { %3667 = vmatprep.mubr.bf16.mxu0 %v1523_v45  ;;  %v1365_v17 = vld [vmem:[#allocation2 + $0x218] sm:$0xff] }
 0x2e5   : > { %v6804_v11 = vpop.f32.mrb[64].mxu1 }
 0x2e6   : > { %v3453_v10 = vpop.f32.mrb[0].mxu0  ;;  %v3005_v13 = vpop.f32.mrb[65].mxu1 }
 0x2e7   : > { %v6807_v35 = vadd.f32 %v3453_v10, %v7438_v39  ;;  %v3455_v52 = vpop.f32.mrb[1].mxu0  ;;  %v6809_v20 = vpop.f32.mrb[66].mxu1  ;;  %v1493_v10 = vld [vmem:[#allocation2 + $0x219] sm:$0xff]  ;;  %v1651_v39 = vpack.c.bf16 %v1615_v46, %v1614_v56 }
 0x2e8   : > { %v3456_v24 = vpop.f32.mrb[2].mxu0  ;;  %v3008_v62 = vpop.f32.mrb[67].mxu1  ;;  %v7442_v52 = vld [vmem:[#allocation24_spill] sm:$0xff]  ;;  %v1526_v19 = vpack.c.bf16 %v1493_v10, %v1492_v4 }
 0x2e9   : > { %v6812_v1 = vadd.f32 %v3456_v24, %v7439_v15  ;;  %v3458_v32 = vpop.f32.mrb[3].mxu0  ;;  %v1397_v62 = vpack.c.bf16 %v1363_v3, %v1362_v59  ;;  %v1398_v59 = vpack.c.bf16 %v1365_v17, %v1364_v34 }
 0x2ea   : > { %4793 = vmatmul.mubr.bf16.gmra.mrb[172].mxu1 %v1647_v5 }
 0x2eb   : > { %3668 = vmatmul.mubr.bf16.gmra.mrb[108].mxu0 %v1395_v55  ;;  %4796 = vmatprep.mubr.bf16.mxu1 %v1648_v38 }
 0x2ec   : > { %3675 = vmatprep.mubr.bf16.mxu0 %v1524_v21  ;;  %v1652_v21 = vpack.c.bf16 %v1617_v6, %v1616_v42  ;;  %v7445_v6 = vld [vmem:[#allocation28_spill] sm:$0xff] }
 0x2ed   : > { %v6814_v28 = vpop.f32.mrb[68].mxu1 }
 0x2ee   : > { %v3461_v47 = vpop.f32.mrb[4].mxu0  ;;  %v3013_v43 = vpop.f32.mrb[69].mxu1 }
 0x2ef   : > { %v6817_v51 = vadd.f32 %v3461_v47, %v7440_v27  ;;  %v3463_v63 = vpop.f32.mrb[5].mxu0  ;;  %v6819_v48 = vpop.f32.mrb[70].mxu1  ;;  %v1620_v47 = vld [vmem:[#allocation2 + $0x212] sm:$0xff]  ;;  %v1621_v43 = vld [vmem:[#allocation2 + $0x21a] sm:$0xff] }
 0x2f0   : > { %v3464_v8 = vpop.f32.mrb[6].mxu0  ;;  %v3016_v7 = vpop.f32.mrb[71].mxu1  ;;  %v1494_v27 = vld [vmem:[#allocation2 + $0x221] sm:$0xff]  ;;  %v1495_v63 = vld [vmem:[#allocation2 + $0x229] sm:$0xff]  ;;  %v1654_v56 = vpack.c.bf16 %v1621_v43, %v1620_v47 }
 0x2f1   : > { %v6822_v44 = vadd.f32 %v3464_v8, %v7441_v37  ;;  %v3466_v45 = vpop.f32.mrb[7].mxu0  ;;  %v1653_v8 = vpack.c.bf16 %v1619_v49, %v1618_v9  ;;  %v7444_v7 = vld [vmem:[#allocation26_spill] sm:$0xff]  ;;  %v1527_v42 = vpack.c.bf16 %v1495_v63, %v1494_v27  ;;  %v7448_v63 = vld [vmem:[#allocation31_spill] sm:$0xff] }
 0x2f2   : > { %4797 = vmatmul.mubr.bf16.gmra.mrb[176].mxu1 %v1649_v18  ;;  %v7447_v9 = vld [vmem:[#allocation30_spill] sm:$0xff] }
 0x2f3   : > { %3676 = vmatmul.mubr.bf16.gmra.mrb[112].mxu0 %v1396_v61  ;;  %4800 = vmatprep.mubr.bf16.mxu1 %v1650_v60 }
 0x2f4   : > { %3683 = vmatprep.mubr.bf16.mxu0 %v1525_v30 }
 0x2f5   : > { %v6824_v50 = vpop.f32.mrb[72].mxu1 }
 0x2f6   : > { %v3469_v13 = vpop.f32.mrb[8].mxu0  ;;  %v3021_v5 = vpop.f32.mrb[73].mxu1 }
 0x2f7   : > { %v6827_v55 = vadd.f32 %v3469_v13, %v7442_v52  ;;  %v3471_v38 = vpop.f32.mrb[9].mxu0  ;;  %v6829_v24 = vpop.f32.mrb[74].mxu1  ;;  %v1622_v13 = vld [vmem:[#allocation2 + $0x222] sm:$0xff]  ;;  %v1623_v5 = vld [vmem:[#allocation2 + $0x22a] sm:$0xff] }
 0x2f8   : > { %v3472_v15 = vpop.f32.mrb[10].mxu0  ;;  %v3024_v32 = vpop.f32.mrb[75].mxu1 }
 0x2f9   : > { %v6832_v0 = vadd.f32 %v3472_v15, %v7443_v33  ;;  %v3474_v14 = vpop.f32.mrb[11].mxu0  ;;  %v5390_v33 = vld [vmem:[%s5879_s10 + $0x10] sm:$0xff] }
 0x2fa   : > { %4801 = vmatmul.mubr.bf16.gmra.mrb[180].mxu1 %v1651_v39 }
 0x2fb   : > { %3684 = vmatmul.mubr.bf16.gmra.mrb[116].mxu0 %v1397_v62  ;;  %4804 = vmatprep.mubr.bf16.mxu1 %v1652_v21  ;;  %v1655_v62 = vpack.c.bf16 %v1623_v5, %v1622_v13  ;;  %v7446_v21 = vld [vmem:[#allocation29_spill] sm:$0xff] }
 0x2fc   : > { %3691 = vmatprep.mubr.bf16.mxu0 %v1526_v19 }
 0x2fd   : > { %v6834_v18 = vpop.f32.mrb[76].mxu1 }
 0x2fe   : > { %v3477_v61 = vpop.f32.mrb[12].mxu0  ;;  %v3029_v60 = vpop.f32.mrb[77].mxu1 }
 0x2ff   : > { %v6837_v30 = vadd.f32 %v3477_v61, %v7444_v7  ;;  %v3479_v37 = vpop.f32.mrb[13].mxu0  ;;  %v6839_v45 = vpop.f32.mrb[78].mxu1 }
 0x300   : > { %v3480_v46 = vpop.f32.mrb[14].mxu0  ;;  %v3032_v3 = vpop.f32.mrb[79].mxu1 }
 0x301   : > { %v6842_v4 = vadd.f32 %v3480_v46, %v7445_v6  ;;  %v3482_v10 = vpop.f32.mrb[15].mxu0 }
 0x302   : > { %4805 = vmatmul.mubr.bf16.gmra.mrb[184].mxu1 %v1653_v8  ;;  %v7450_v10 = vld [vmem:[#allocation34_spill] sm:$0xff] }
 0x303   : > { %3692 = vmatmul.mubr.bf16.gmra.mrb[120].mxu0 %v1398_v59  ;;  %4808 = vmatprep.mubr.bf16.mxu1 %v1654_v56  ;;  %v7449_v59 = vld [vmem:[#allocation33_spill] sm:$0xff] }
 0x304   : > { %3699 = vmatprep.mubr.bf16.mxu0 %v1527_v42 }
 0x305   : > { %v6844_v39 = vpop.f32.mrb[80].mxu1 }
 0x306   : > { %v3485_v52 = vpop.f32.mrb[16].mxu0  ;;  %v3037_v38 = vpop.f32.mrb[81].mxu1 }
 0x307   : > { %v6847_v15 = vadd.f32 %v3485_v52, %v7446_v21  ;;  %v3487_v32 = vpop.f32.mrb[17].mxu0  ;;  %v6849_v19 = vpop.f32.mrb[82].mxu1  ;;  %v7451_v21 = vld [vmem:[#allocation35_spill] sm:$0xff] }
 0x308   : > { %v3488_v14 = vpop.f32.mrb[18].mxu0  ;;  %v3040_v34 = vpop.f32.mrb[83].mxu1 }
 0x309   : > { %v6853_v49 = vadd.f32 %v3488_v14, %v7447_v9  ;;  %v3490_v17 = vpop.f32.mrb[19].mxu0 }
 0x30a   : > { %4809 = vmatmul.mubr.bf16.gmra.mrb[188].mxu1 %v1655_v62  ;;  %v7452_v17 = vld [vmem:[#allocation36_spill] sm:$0xff] }
 0x30b   : > { %3700 = vmatmul.mubr.bf16.gmra.mrb[124].mxu0 %v5390_v33 }
 0x30d   : > { %v6855_v47 = vpop.f32.mrb[84].mxu1 }
 0x30e   : > { %v3493_v43 = vpop.f32.mrb[20].mxu0  ;;  %v3045_v27 = vpop.f32.mrb[85].mxu1 }
 0x30f   : > { %v6858_v61 = vadd.f32 %v3493_v43, %v7448_v63  ;;  %v3495_v60 = vpop.f32.mrb[21].mxu0  ;;  %v6860_v8 = vpop.f32.mrb[86].mxu1 }
 0x310   : > { %v3496_v7 = vpop.f32.mrb[22].mxu0  ;;  %v3048_v37 = vpop.f32.mrb[87].mxu1 }
 0x311   : > { %v6863_v56 = vadd.f32 %v3496_v7, %v7449_v59  ;;  %v3498_v46 = vpop.f32.mrb[23].mxu0  ;;  %v7453_v37 = vld [vmem:[#allocation37_spill] sm:$0xff] }
 0x315   : > { %v6865_v3 = vpop.f32.mrb[88].mxu1 }
 0x316   : > { %v3501_v42 = vpop.f32.mrb[24].mxu0  ;;  %v3053_v6 = vpop.f32.mrb[89].mxu1 }
 0x317   : > { %v6868_v13 = vadd.f32 %v3501_v42, %v7450_v10  ;;  %v3503_v5 = vpop.f32.mrb[25].mxu0  ;;  %v6870_v52 = vpop.f32.mrb[90].mxu1 }
 0x318   : > { %v3504_v38 = vpop.f32.mrb[26].mxu0  ;;  %v3056_v62 = vpop.f32.mrb[91].mxu1 }
 0x319   : > { %v6873_v32 = vadd.f32 %v3504_v38, %v7451_v21  ;;  %v3506_v33 = vpop.f32.mrb[27].mxu0 }
 0x31d   : > { %v6875_v14 = vpop.f32.mrb[92].mxu1 }
 0x31e   : > { %v3509_v34 = vpop.f32.mrb[28].mxu0  ;;  %v3061_v9 = vpop.f32.mrb[93].mxu1 }
 0x31f   : > { %v6878_v43 = vadd.f32 %v3509_v34, %v7452_v17  ;;  %v3511_v27 = vpop.f32.mrb[29].mxu0  ;;  %v6880_v63 = vpop.f32.mrb[94].mxu1 }
 0x320   : > { %v3512_v60 = vpop.f32.mrb[30].mxu0  ;;  %v3064_v7 = vpop.f32.mrb[95].mxu1 }
 0x321   : > { %v6883_v59 = vadd.f32 %v3512_v60, %v7453_v37  ;;  %v3514_v46 = vpop.f32.mrb[31].mxu0 }
 0x325   : > { %v6885_v42 = vpop.f32.mrb[96].mxu1 }
 0x326   : > { %v3517_v6 = vpop.f32.mrb[32].mxu0  ;;  %v3069_v10 = vpop.f32.mrb[97].mxu1 }
 0x327   : > { %v6888_v5 = vadd.f32 %v3517_v6, %v6765_v31  ;;  %v3519_v38 = vpop.f32.mrb[33].mxu0  ;;  %v6890_v62 = vpop.f32.mrb[98].mxu1 }
 0x328   : > { %7454 = vst [vmem:[#allocation27_spill] sm:$0xff] %v6890_v62  ;;  %v3520_v21 = vpop.f32.mrb[34].mxu0  ;;  %v3072_v33 = vpop.f32.mrb[99].mxu1 }
 0x329   : > { %v6893_v34 = vadd.f32 %v3520_v21, %v6767_v25  ;;  %v3522_v9 = vpop.f32.mrb[35].mxu0 }
 0x32d   : > { %v6895_v17 = vpop.f32.mrb[100].mxu1 }
 0x32e   : > { %7455 = vst [vmem:[#allocation32_spill] sm:$0xff] %v6895_v17  ;;  %v3525_v27 = vpop.f32.mrb[36].mxu0  ;;  %v3077_v60 = vpop.f32.mrb[101].mxu1 }
 0x32f   : > { %v6898_v7 = vadd.f32 %v3525_v27, %v6771_v29  ;;  %v3527_v37 = vpop.f32.mrb[37].mxu0  ;;  %v6900_v46 = vpop.f32.mrb[102].mxu1 }
 0x330   : > { %7456 = vst [vmem:[#allocation38_spill] sm:$0xff] %v6900_v46  ;;  %v3528_v31 = vpop.f32.mrb[38].mxu0  ;;  %v3080_v6 = vpop.f32.mrb[103].mxu1 }
 0x331   : > { %v6903_v10 = vadd.f32 %v3528_v31, %v6773_v12  ;;  %v3530_v38 = vpop.f32.mrb[39].mxu0 }
 0x335   : > { %v6905_v33 = vpop.f32.mrb[104].mxu1 }
 0x336   : > { %7457 = vst [vmem:[#allocation20_spill] sm:$0xff] %v6905_v33  ;;  %v3533_v25 = vpop.f32.mrb[40].mxu0  ;;  %v3085_v21 = vpop.f32.mrb[105].mxu1 }
 0x337   : > { %v6908_v9 = vadd.f32 %v3533_v25, %v6777_v57  ;;  %v3535_v60 = vpop.f32.mrb[41].mxu0  ;;  %v6910_v17 = vpop.f32.mrb[106].mxu1 }
 0x338   : > { %7458 = vst [vmem:[#allocation21_spill] sm:$0xff] %v6910_v17  ;;  %v3536_v29 = vpop.f32.mrb[42].mxu0  ;;  %v3088_v27 = vpop.f32.mrb[107].mxu1 }
 0x339   : > { %v6913_v37 = vadd.f32 %v3536_v29, %v6779_v41  ;;  %v3538_v6 = vpop.f32.mrb[43].mxu0 }
 0x33d   : > { %v6915_v46 = vpop.f32.mrb[108].mxu1 }
 0x33e   : > { %7459 = vst [vmem:[#allocation22_spill] sm:$0xff] %v6915_v46  ;;  %v3541_v12 = vpop.f32.mrb[44].mxu0  ;;  %v3093_v31 = vpop.f32.mrb[109].mxu1 }
 0x33f   : > { %v6918_v38 = vadd.f32 %v3541_v12, %v6783_v54  ;;  %v3543_v21 = vpop.f32.mrb[45].mxu0  ;;  %v6920_v33 = vpop.f32.mrb[110].mxu1 }
 0x340   : > { %7460 = vst [vmem:[#allocation23_spill] sm:$0xff] %v6920_v33  ;;  %v3544_v57 = vpop.f32.mrb[46].mxu0  ;;  %v3096_v25 = vpop.f32.mrb[111].mxu1 }
 0x341   : > { %v6923_v60 = vadd.f32 %v3544_v57, %v6785_v2  ;;  %v3546_v27 = vpop.f32.mrb[47].mxu0 }
 0x345   : > { %v6925_v17 = vpop.f32.mrb[112].mxu1 }
 0x346   : > { %7461 = vst [vmem:[#allocation24_spill] sm:$0xff] %v6925_v17  ;;  %v3549_v41 = vpop.f32.mrb[48].mxu0  ;;  %v3101_v29 = vpop.f32.mrb[113].mxu1 }
 0x347   : > { %v6928_v6 = vadd.f32 %v3549_v41, %v6788_v58  ;;  %v3551_v31 = vpop.f32.mrb[49].mxu0  ;;  %v6930_v46 = vpop.f32.mrb[114].mxu1 }
 0x348   : > { %7462 = vst [vmem:[#allocation25_spill] sm:$0xff] %v6930_v46  ;;  %v3552_v54 = vpop.f32.mrb[50].mxu0  ;;  %v3104_v12 = vpop.f32.mrb[115].mxu1 }
 0x349   : > { %v6933_v21 = vadd.f32 %v3552_v54, %v6790_v36  ;;  %v3554_v25 = vpop.f32.mrb[51].mxu0 }
 0x34d   : > { %v6935_v33 = vpop.f32.mrb[116].mxu1 }
 0x34e   : > { %7463 = vst [vmem:[#allocation26_spill] sm:$0xff] %v6935_v33  ;;  %v3557_v2 = vpop.f32.mrb[52].mxu0  ;;  %v3109_v57 = vpop.f32.mrb[117].mxu1 }
 0x34f   : > { %v6938_v27 = vadd.f32 %v3557_v2, %v6792_v40  ;;  %v3559_v29 = vpop.f32.mrb[53].mxu0  ;;  %v6940_v17 = vpop.f32.mrb[118].mxu1 }
 0x350   : > { %7464 = vst [vmem:[#allocation28_spill] sm:$0xff] %v6940_v17  ;;  %v3560_v58 = vpop.f32.mrb[54].mxu0  ;;  %v3112_v41 = vpop.f32.mrb[119].mxu1 }
 0x351   : > { %v6943_v31 = vadd.f32 %v3560_v58, %v6794_v26  ;;  %v3562_v12 = vpop.f32.mrb[55].mxu0 }
 0x355   : > { %v6945_v46 = vpop.f32.mrb[120].mxu1 }
 0x356   : > { %7465 = vst [vmem:[#allocation29_spill] sm:$0xff] %v6945_v46  ;;  %v3565_v36 = vpop.f32.mrb[56].mxu0  ;;  %v3117_v54 = vpop.f32.mrb[121].mxu1 }
 0x357   : > { %v6948_v25 = vadd.f32 %v3565_v36, %v6796_v22  ;;  %v3567_v57 = vpop.f32.mrb[57].mxu0  ;;  %v6950_v33 = vpop.f32.mrb[122].mxu1 }
 0x358   : > { %7466 = vst [vmem:[#allocation30_spill] sm:$0xff] %v6950_v33  ;;  %v3568_v40 = vpop.f32.mrb[58].mxu0  ;;  %v3120_v2 = vpop.f32.mrb[123].mxu1 }
 0x359   : > { %v6953_v29 = vadd.f32 %v3568_v40, %v6798_v53  ;;  %v3570_v41 = vpop.f32.mrb[59].mxu0  ;;  %v6968_v40 = vld [vmem:[%s7368_s3] ss:$0 sm:$0xff] }
 0x35d   : > { %v6955_v17 = vpop.f32.mrb[124].mxu1 }
 0x35e   : > { %7467 = vst [vmem:[#allocation31_spill] sm:$0xff] %v6955_v17  ;;  %v3573_v26 = vpop.f32.mrb[60].mxu0  ;;  %v3125_v58 = vpop.f32.mrb[125].mxu1 }
 0x35f   : > { %v6958_v12 = vadd.f32 %v3573_v26, %v6800_v16  ;;  %v3575_v54 = vpop.f32.mrb[61].mxu0  ;;  %v6960_v22 = vpop.f32.mrb[126].mxu1 }
 0x360   : > { %7468 = vst [vmem:[#allocation33_spill] sm:$0xff] %v6960_v22  ;;  %v3576_v36 = vpop.f32.mrb[62].mxu0  ;;  %v3128_v57 = vpop.f32.mrb[127].mxu1  ;;  %v6977_v54 = vld [vmem:[%s7368_s3 + $0x1] ss:$0 sm:$0xff] }
 0x361   : > { %v6963_v33 = vadd.f32 %v3576_v36, %v6802_v23  ;;  %v3578_v2 = vpop.f32.mrb[63].mxu0 }
 0x365   : > { %v4750_v53 = vpop.f32.mrb[128].mxu1 }
 0x366   : > { %v3581_v41 = vpop.f32.mrb[64].mxu0  ;;  %v3751_v16 = vadd.f32 %v6817_v51, %v4750_v53  ;;  %v3742_v26 = vpop.f32.mrb[129].mxu1 }
 0x367   : > { %v6972_v58 = vadd.f32 %v3581_v41, %v6804_v11  ;;  %v3583_v23 = vpop.f32.mrb[65].mxu0  ;;  %v3743_v36 = vadd.f32 %v6807_v35, %v3742_v26  ;;  %v4751_v57 = vpop.f32.mrb[130].mxu1 }
 0x368   : > { %v4004_v2 = vmul.f32 %v6968_v40, %v3751_v16  ;;  %v3584_v22 = vpop.f32.mrb[66].mxu0  ;;  %v3754_v17 = vadd.f32 %v6822_v44, %v4751_v57  ;;  %v3745_v51 = vpop.f32.mrb[131].mxu1 }
 0x369   : > { %7469 = vst [vmem:[#allocation34_spill] sm:$0xff] %v6972_v58  ;;  %v4002_v53 = vmul.f32 %v6968_v40, %v3743_v36  ;;  %v6985_v11 = vadd.f32 %v3584_v22, %v6809_v20  ;;  %v3586_v41 = vpop.f32.mrb[67].mxu0  ;;  %v3746_v46 = vadd.f32 %v6812_v1, %v3745_v51 }
 0x36a   : > { %v4073_v23 = vadd.f32 %v6977_v54, %v4004_v2  ;;  %v4005_v35 = vmul.f32 %v6968_v40, %v3754_v17 }
 0x36b   : > { %v4071_v26 = vadd.f32 %v6977_v54, %v4002_v53  ;;  %v4003_v16 = vmul.f32 %v6968_v40, %v3746_v46 }
 0x36c   : > { %v4137_v62 = vmax.f32 %v4073_v23, 0.0  ;;  %v4074_v44 = vadd.f32 %v6977_v54, %v4005_v35 }
 0x36d   : > { %v4135_v57 = vmax.f32 %v4071_v26, 0.0  ;;  %v4072_v36 = vadd.f32 %v6977_v54, %v4003_v16  ;;  %v4754_v58 = vpop.f32.mrb[132].mxu1 }
 0x36e   : > { %4201 = vst [vmem:[%s6994_s12 + $0x10] sm:$0xff] %v4137_v62  ;;  %v4138_v20 = vmax.f32 %v4074_v44, 0.0  ;;  %v3589_v1 = vpop.f32.mrb[68].mxu0  ;;  %v3767_v17 = vadd.f32 %v6837_v30, %v4754_v58  ;;  %v3758_v22 = vpop.f32.mrb[133].mxu1 }
 0x36f   : > { %4199 = vst [vmem:[%s6994_s12] sm:$0xff] %v4135_v57  ;;  %v4136_v46 = vmax.f32 %v4072_v36, 0.0  ;;  %v7000_v2 = vadd.f32 %v3589_v1, %v6814_v28  ;;  %v3591_v51 = vpop.f32.mrb[69].mxu0  ;;  %v3759_v53 = vadd.f32 %v6827_v55, %v3758_v22  ;;  %v4755_v41 = vpop.f32.mrb[134].mxu1 }
 0x370   : > { %4202 = vst [vmem:[%s6994_s12 + $0x18] sm:$0xff] %v4138_v20  ;;  %v4008_v23 = vmul.f32 %v6968_v40, %v3767_v17  ;;  %v3592_v35 = vpop.f32.mrb[70].mxu0  ;;  %v3770_v62 = vadd.f32 %v6842_v4, %v4755_v41  ;;  %v3761_v26 = vpop.f32.mrb[135].mxu1 }
 0x371   : > { %4200 = vst [vmem:[%s6994_s12 + $0x8] sm:$0xff] %v4136_v46  ;;  %v4006_v30 = vmul.f32 %v6968_v40, %v3759_v53  ;;  %v7009_v58 = vadd.f32 %v3592_v35, %v6819_v48  ;;  %v3594_v28 = vpop.f32.mrb[71].mxu0  ;;  %v3762_v16 = vadd.f32 %v6832_v0, %v3761_v26 }
 0x372   : > { %v4077_v55 = vadd.f32 %v6977_v54, %v4008_v23  ;;  %v4009_v44 = vmul.f32 %v6968_v40, %v3770_v62 }
 0x373   : > { %v4075_v57 = vadd.f32 %v6977_v54, %v4006_v30  ;;  %v4007_v4 = vmul.f32 %v6968_v40, %v3762_v16 }
 0x374   : > { %v4141_v36 = vmax.f32 %v4077_v55, 0.0  ;;  %v4078_v20 = vadd.f32 %v6977_v54, %v4009_v44 }
 0x375   : > { %v4139_v1 = vmax.f32 %v4075_v57, 0.0  ;;  %v4076_v48 = vadd.f32 %v6977_v54, %v4007_v4  ;;  %v4758_v17 = vpop.f32.mrb[136].mxu1 }
 0x376   : > { %4205 = vst [vmem:[%s6994_s12 + $0x30] sm:$0xff] %v4141_v36  ;;  %v4142_v22 = vmax.f32 %v4078_v20, 0.0  ;;  %v3597_v0 = vpop.f32.mrb[72].mxu0  ;;  %v3783_v46 = vadd.f32 %v6858_v61, %v4758_v17  ;;  %v3774_v51 = vpop.f32.mrb[137].mxu1 }
 0x377   : > { %4203 = vst [vmem:[%s6994_s12 + $0x20] sm:$0xff] %v4139_v1  ;;  %v4140_v53 = vmax.f32 %v4076_v48, 0.0  ;;  %v7022_v41 = vadd.f32 %v3597_v0, %v6824_v50  ;;  %v3599_v23 = vpop.f32.mrb[73].mxu0  ;;  %v3775_v35 = vadd.f32 %v6847_v15, %v3774_v51  ;;  %v4759_v62 = vpop.f32.mrb[138].mxu1 }
 0x378   : > { %4206 = vst [vmem:[%s6994_s12 + $0x38] sm:$0xff] %v4142_v22  ;;  %v4012_v26 = vmul.f32 %v6968_v40, %v3783_v46  ;;  %v3600_v30 = vpop.f32.mrb[74].mxu0  ;;  %v3786_v28 = vadd.f32 %v6863_v56, %v4759_v62  ;;  %v3777_v16 = vpop.f32.mrb[139].mxu1 }
 0x379   : > { %4204 = vst [vmem:[%s6994_s12 + $0x28] sm:$0xff] %v4140_v53  ;;  %v4010_v61 = vmul.f32 %v6968_v40, %v3775_v35  ;;  %v7031_v55 = vadd.f32 %v3600_v30, %v6829_v24  ;;  %v3602_v50 = vpop.f32.mrb[75].mxu0  ;;  %v3778_v44 = vadd.f32 %v6853_v49, %v3777_v16 }
 0x37a   : > { %v4081_v15 = vadd.f32 %v6977_v54, %v4012_v26  ;;  %v4013_v57 = vmul.f32 %v6968_v40, %v3786_v28 }
 0x37b   : > { %v4079_v4 = vadd.f32 %v6977_v54, %v4010_v61  ;;  %v4011_v56 = vmul.f32 %v6968_v40, %v3778_v44 }
 0x37c   : > { %v4145_v36 = vmax.f32 %v4081_v15, 0.0  ;;  %v4082_v20 = vadd.f32 %v6977_v54, %v4013_v57 }
 0x37d   : > { %v4143_v1 = vmax.f32 %v4079_v4, 0.0  ;;  %v4080_v24 = vadd.f32 %v6977_v54, %v4011_v56  ;;  %v4762_v48 = vpop.f32.mrb[140].mxu1 }
 0x37e   : > { %4209 = vst [vmem:[%s6994_s12 + $0x50] sm:$0xff] %v4145_v36  ;;  %v4146_v17 = vmax.f32 %v4082_v20, 0.0  ;;  %v3605_v49 = vpop.f32.mrb[76].mxu0  ;;  %v3799_v22 = vadd.f32 %v6878_v43, %v4762_v48  ;;  %v3790_v0 = vpop.f32.mrb[141].mxu1 }
 0x37f   : > { %4207 = vst [vmem:[%s6994_s12 + $0x40] sm:$0xff] %v4143_v1  ;;  %v4144_v46 = vmax.f32 %v4080_v24, 0.0  ;;  %v7044_v51 = vadd.f32 %v3605_v49, %v6834_v18  ;;  %v3607_v53 = vpop.f32.mrb[77].mxu0  ;;  %v3791_v23 = vadd.f32 %v6868_v13, %v3790_v0  ;;  %v4763_v35 = vpop.f32.mrb[142].mxu1 }
 0x380   : > { %4210 = vst [vmem:[%s6994_s12 + $0x58] sm:$0xff] %v4146_v17  ;;  %v4016_v62 = vmul.f32 %v6968_v40, %v3799_v22  ;;  %v3608_v26 = vpop.f32.mrb[78].mxu0  ;;  %v3802_v30 = vadd.f32 %v6883_v59, %v4763_v35  ;;  %v3793_v28 = vpop.f32.mrb[143].mxu1 }
 0x381   : > { %4208 = vst [vmem:[%s6994_s12 + $0x48] sm:$0xff] %v4144_v46  ;;  %v4014_v43 = vmul.f32 %v6968_v40, %v3791_v23  ;;  %v7053_v16 = vadd.f32 %v3608_v26, %v6839_v45  ;;  %v3610_v18 = vpop.f32.mrb[79].mxu0  ;;  %v3794_v61 = vadd.f32 %v6873_v32, %v3793_v28 }
 0x382   : > { %v4085_v13 = vadd.f32 %v6977_v54, %v4016_v62  ;;  %v4017_v50 = vmul.f32 %v6968_v40, %v3802_v30 }
 0x383   : > { %v4083_v44 = vadd.f32 %v6977_v54, %v4014_v43  ;;  %v4015_v59 = vmul.f32 %v6968_v40, %v3794_v61 }
 0x384   : > { %v4149_v15 = vmax.f32 %v4085_v13, 0.0  ;;  %v4086_v57 = vadd.f32 %v6977_v54, %v4017_v50 }
 0x385   : > { %v4147_v4 = vmax.f32 %v4083_v44, 0.0  ;;  %v4084_v45 = vadd.f32 %v6977_v54, %v4015_v59  ;;  %v4766_v56 = vpop.f32.mrb[144].mxu1 }
 0x386   : > { %4213 = vst [vmem:[%s6994_s12 + $0x70] sm:$0xff] %v4149_v15  ;;  %v4150_v36 = vmax.f32 %v4086_v57, 0.0  ;;  %v3613_v32 = vpop.f32.mrb[80].mxu0  ;;  %v3815_v20 = vadd.f32 %v6898_v7, %v4766_v56  ;;  %v3806_v1 = vpop.f32.mrb[145].mxu1 }
 0x387   : > { %4211 = vst [vmem:[%s6994_s12 + $0x60] sm:$0xff] %v4147_v4  ;;  %v4148_v24 = vmax.f32 %v4084_v45, 0.0  ;;  %v7066_v48 = vadd.f32 %v3613_v32, %v6844_v39  ;;  %v3615_v17 = vpop.f32.mrb[81].mxu0  ;;  %v3807_v49 = vadd.f32 %v6888_v5, %v3806_v1  ;;  %v4767_v22 = vpop.f32.mrb[146].mxu1 }
 0x388   : > { %4214 = vst [vmem:[%s6994_s12 + $0x78] sm:$0xff] %v4150_v36  ;;  %v4020_v0 = vmul.f32 %v6968_v40, %v3815_v20  ;;  %v3616_v46 = vpop.f32.mrb[82].mxu0  ;;  %v3818_v53 = vadd.f32 %v6903_v10, %v4767_v22  ;;  %v3809_v23 = vpop.f32.mrb[147].mxu1 }
 0x389   : > { %4212 = vst [vmem:[%s6994_s12 + $0x68] sm:$0xff] %v4148_v24  ;;  %v4018_v7 = vmul.f32 %v6968_v40, %v3807_v49  ;;  %v7075_v35 = vadd.f32 %v3616_v46, %v6849_v19  ;;  %v3618_v39 = vpop.f32.mrb[83].mxu0  ;;  %v3810_v62 = vadd.f32 %v6893_v34, %v3809_v23 }
 0x38a   : > { %v4089_v5 = vadd.f32 %v6977_v54, %v4020_v0  ;;  %v4021_v26 = vmul.f32 %v6968_v40, %v3818_v53 }
 0x38b   : > { %v4087_v30 = vadd.f32 %v6977_v54, %v4018_v7  ;;  %v4019_v10 = vmul.f32 %v6968_v40, %v3810_v62 }
 0x38c   : > { %v4153_v28 = vmax.f32 %v4089_v5, 0.0  ;;  %v4090_v43 = vadd.f32 %v6977_v54, %v4021_v26 }
 0x38d   : > { %v4151_v18 = vmax.f32 %v4087_v30, 0.0  ;;  %v4088_v19 = vadd.f32 %v6977_v54, %v4019_v10  ;;  %v4770_v61 = vpop.f32.mrb[148].mxu1 }
 0x38e   : > { %4217 = vst [vmem:[%s6994_s12 + $0x90] sm:$0xff] %v4153_v28  ;;  %v4154_v13 = vmax.f32 %v4090_v43, 0.0  ;;  %v3621_v34 = vpop.f32.mrb[84].mxu0  ;;  %v3831_v50 = vadd.f32 %v6918_v38, %v4770_v61  ;;  %v3822_v44 = vpop.f32.mrb[149].mxu1 }
 0x38f   : > { %4215 = vst [vmem:[%s6994_s12 + $0x80] sm:$0xff] %v4151_v18  ;;  %v4152_v59 = vmax.f32 %v4088_v19, 0.0  ;;  %v7088_v15 = vadd.f32 %v3621_v34, %v6855_v47  ;;  %v3623_v57 = vpop.f32.mrb[85].mxu0  ;;  %v3823_v4 = vadd.f32 %v6908_v9, %v3822_v44  ;;  %v4771_v45 = vpop.f32.mrb[150].mxu1 }
 0x390   : > { %4218 = vst [vmem:[%s6994_s12 + $0x98] sm:$0xff] %v4154_v13  ;;  %v4024_v56 = vmul.f32 %v6968_v40, %v3831_v50  ;;  %v3624_v36 = vpop.f32.mrb[86].mxu0  ;;  %v3834_v32 = vadd.f32 %v6923_v60, %v4771_v45  ;;  %v3825_v20 = vpop.f32.mrb[151].mxu1 }
 0x391   : > { %4216 = vst [vmem:[%s6994_s12 + $0x88] sm:$0xff] %v4152_v59  ;;  %v4022_v38 = vmul.f32 %v6968_v40, %v3823_v4  ;;  %v7097_v1 = vadd.f32 %v3624_v36, %v6860_v8  ;;  %v3626_v47 = vpop.f32.mrb[87].mxu0  ;;  %v3826_v24 = vadd.f32 %v6913_v37, %v3825_v20 }
 0x392   : > { %v4093_v9 = vadd.f32 %v6977_v54, %v4024_v56  ;;  %v4025_v17 = vmul.f32 %v6968_v40, %v3834_v32 }
 0x393   : > { %v4091_v49 = vadd.f32 %v6977_v54, %v4022_v38  ;;  %v4023_v60 = vmul.f32 %v6968_v40, %v3826_v24 }
 0x394   : > { %v4157_v22 = vmax.f32 %v4093_v9, 0.0  ;;  %v4094_v0 = vadd.f32 %v6977_v54, %v4025_v17 }
 0x395   : > { %v4155_v46 = vmax.f32 %v4091_v49, 0.0  ;;  %v4092_v8 = vadd.f32 %v6977_v54, %v4023_v60  ;;  %v4774_v53 = vpop.f32.mrb[152].mxu1 }
 0x396   : > { %4221 = vst [vmem:[%s6994_s12 + $0xb0] sm:$0xff] %v4157_v22  ;;  %v4158_v23 = vmax.f32 %v4094_v0, 0.0  ;;  %v3629_v37 = vpop.f32.mrb[88].mxu0  ;;  %v3847_v7 = vadd.f32 %v6938_v27, %v4774_v53  ;;  %v3838_v39 = vpop.f32.mrb[153].mxu1 }
 0x397   : > { %4219 = vst [vmem:[%s6994_s12 + $0xa0] sm:$0xff] %v4155_v46  ;;  %v4156_v62 = vmax.f32 %v4092_v8, 0.0  ;;  %v7110_v5 = vadd.f32 %v3629_v37, %v6865_v3  ;;  %v3631_v26 = vpop.f32.mrb[89].mxu0  ;;  %v3839_v30 = vadd.f32 %v6928_v6, %v3838_v39  ;;  %v4775_v10 = vpop.f32.mrb[154].mxu1 }
 0x398   : > { %4222 = vst [vmem:[%s6994_s12 + $0xb8] sm:$0xff] %v4158_v23  ;;  %v4028_v28 = vmul.f32 %v6968_v40, %v3847_v7  ;;  %v3632_v43 = vpop.f32.mrb[90].mxu0  ;;  %v3850_v18 = vadd.f32 %v6943_v31, %v4775_v10  ;;  %v3841_v19 = vpop.f32.mrb[155].mxu1 }
 0x399   : > { %4220 = vst [vmem:[%s6994_s12 + $0xa8] sm:$0xff] %v4156_v62  ;;  %v4026_v27 = vmul.f32 %v6968_v40, %v3839_v30  ;;  %v7119_v61 = vadd.f32 %v3632_v43, %v6870_v52  ;;  %v3634_v3 = vpop.f32.mrb[91].mxu0  ;;  %v3842_v13 = vadd.f32 %v6933_v21, %v3841_v19  ;;  %v7470_v43 = vld [vmem:[#allocation34_spill] sm:$0xff] }
 0x39a   : > { %v4097_v6 = vadd.f32 %v6977_v54, %v4028_v28  ;;  %v4029_v34 = vmul.f32 %v6968_v40, %v3850_v18 }
 0x39b   : > { %v4095_v50 = vadd.f32 %v6977_v54, %v4026_v27  ;;  %v4027_v31 = vmul.f32 %v6968_v40, %v3842_v13 }
 0x39c   : > { %v4161_v44 = vmax.f32 %v4097_v6, 0.0  ;;  %v4098_v59 = vadd.f32 %v6977_v54, %v4029_v34  ;;  %v7471_v34 = vld [vmem:[#allocation27_spill] sm:$0xff] }
 0x39d   : > { %v4159_v57 = vmax.f32 %v4095_v50, 0.0  ;;  %v4096_v52 = vadd.f32 %v6977_v54, %v4027_v31  ;;  %v4778_v4 = vpop.f32.mrb[156].mxu1 }
 0x39e   : > { %4225 = vst [vmem:[%s6994_s12 + $0xd0] sm:$0xff] %v4161_v44  ;;  %v4162_v45 = vmax.f32 %v4098_v59, 0.0  ;;  %v3637_v21 = vpop.f32.mrb[92].mxu0  ;;  %v3863_v56 = vadd.f32 %v6958_v12, %v4778_v4  ;;  %v3854_v36 = vpop.f32.mrb[157].mxu1 }
 0x39f   : > { %4223 = vst [vmem:[%s6994_s12 + $0xc0] sm:$0xff] %v4159_v57  ;;  %v4160_v32 = vmax.f32 %v4096_v52, 0.0  ;;  %v7132_v20 = vadd.f32 %v3637_v21, %v6875_v14  ;;  %v3639_v38 = vpop.f32.mrb[93].mxu0  ;;  %v3855_v47 = vadd.f32 %v6948_v25, %v3854_v36  ;;  %v4779_v24 = vpop.f32.mrb[158].mxu1 }
 0x3a0   : > { %4226 = vst [vmem:[%s6994_s12 + $0xd8] sm:$0xff] %v4162_v45  ;;  %v4032_v9 = vmul.f32 %v6968_v40, %v3863_v56  ;;  %v3640_v17 = vpop.f32.mrb[94].mxu0  ;;  %v3866_v49 = vadd.f32 %v6963_v33, %v4779_v24  ;;  %v3857_v60 = vpop.f32.mrb[159].mxu1  ;;  %v7472_v24 = vld [vmem:[#allocation32_spill] sm:$0xff] }
 0x3a1   : > { %4224 = vst [vmem:[%s6994_s12 + $0xc8] sm:$0xff] %v4160_v32  ;;  %v4030_v12 = vmul.f32 %v6968_v40, %v3855_v47  ;;  %v7141_v22 = vadd.f32 %v3640_v17, %v6880_v63  ;;  %v3642_v14 = vpop.f32.mrb[95].mxu0  ;;  %v3858_v0 = vadd.f32 %v6953_v29, %v3857_v60 }
 0x3a2   : > { %v4101_v25 = vadd.f32 %v6977_v54, %v4032_v9  ;;  %v4033_v46 = vmul.f32 %v6968_v40, %v3866_v49 }
 0x3a3   : > { %v4099_v8 = vadd.f32 %v6977_v54, %v4030_v12  ;;  %v4031_v33 = vmul.f32 %v6968_v40, %v3858_v0 }
 0x3a4   : > { %v4165_v53 = vmax.f32 %v4101_v25, 0.0  ;;  %v4102_v23 = vadd.f32 %v6977_v54, %v4033_v46  ;;  %v7473_v46 = vld [vmem:[#allocation38_spill] sm:$0xff] }
 0x3a5   : > { %v4163_v37 = vmax.f32 %v4099_v8, 0.0  ;;  %v4100_v63 = vadd.f32 %v6977_v54, %v4031_v33  ;;  %v4782_v7 = vpop.f32.mrb[160].mxu1 }
 0x3a6   : > { %4229 = vst [vmem:[%s6994_s12 + $0xf0] sm:$0xff] %v4165_v53  ;;  %v4166_v39 = vmax.f32 %v4102_v23, 0.0  ;;  %v3645_v29 = vpop.f32.mrb[96].mxu0  ;;  %v3879_v62 = vadd.f32 %v7000_v2, %v4782_v7  ;;  %v3870_v26 = vpop.f32.mrb[161].mxu1 }
 0x3a7   : > { %4227 = vst [vmem:[%s6994_s12 + $0xe0] sm:$0xff] %v4163_v37  ;;  %v4164_v30 = vmax.f32 %v4100_v63, 0.0  ;;  %v7154_v10 = vadd.f32 %v3645_v29, %v6885_v42  ;;  %v3647_v28 = vpop.f32.mrb[97].mxu0  ;;  %v3871_v18 = vadd.f32 %v7470_v43, %v3870_v26  ;;  %v4783_v19 = vpop.f32.mrb[162].mxu1 }
 0x3a8   : > { %4230 = vst [vmem:[%s6994_s12 + $0xf8] sm:$0xff] %v4166_v39  ;;  %v4036_v27 = vmul.f32 %v6968_v40, %v3879_v62  ;;  %v3648_v3 = vpop.f32.mrb[98].mxu0  ;;  %v3882_v13 = vadd.f32 %v7009_v58, %v4783_v19  ;;  %v3873_v6 = vpop.f32.mrb[163].mxu1 }
 0x3a9   : > { %4228 = vst [vmem:[%s6994_s12 + $0xe8] sm:$0xff] %v4164_v30  ;;  %v4034_v2 = vmul.f32 %v6968_v40, %v3871_v18  ;;  %v7163_v50 = vadd.f32 %v3648_v3, %v7471_v34  ;;  %v3650_v42 = vpop.f32.mrb[99].mxu0  ;;  %v3874_v31 = vadd.f32 %v6985_v11, %v3873_v6  ;;  %v7474_v18 = vld [vmem:[#allocation20_spill] sm:$0xff] }
 0x3aa   : > { %v4105_v44 = vadd.f32 %v6977_v54, %v4036_v27  ;;  %v4037_v59 = vmul.f32 %v6968_v40, %v3882_v13 }
 0x3ab   : > { %v4103_v57 = vadd.f32 %v6977_v54, %v4034_v2  ;;  %v4035_v58 = vmul.f32 %v6968_v40, %v3874_v31  ;;  %v7475_v31 = vld [vmem:[#allocation21_spill] sm:$0xff] }
 0x3ac   : > { %v4169_v52 = vmax.f32 %v4105_v44, 0.0  ;;  %v4106_v4 = vadd.f32 %v6977_v54, %v4037_v59 }
 0x3ad   : > { %v4167_v45 = vmax.f32 %v4103_v57, 0.0  ;;  %v4104_v21 = vadd.f32 %v6977_v54, %v4035_v58  ;;  %v4786_v56 = vpop.f32.mrb[164].mxu1 }
 0x3ae   : > { %4233 = vst [vmem:[%s6994_s12 + $0x110] sm:$0xff] %v4169_v52  ;;  %v4170_v36 = vmax.f32 %v4106_v4, 0.0  ;;  %v3653_v11 = vpop.f32.mrb[100].mxu0  ;;  %v3895_v32 = vadd.f32 %v7044_v51, %v4786_v56  ;;  %v3886_v38 = vpop.f32.mrb[165].mxu1 }
 0x3af   : > { %4231 = vst [vmem:[%s6994_s12 + $0x100] sm:$0xff] %v4167_v45  ;;  %v4168_v47 = vmax.f32 %v4104_v21, 0.0  ;;  %v7176_v9 = vadd.f32 %v3653_v11, %v7472_v24  ;;  %v3655_v17 = vpop.f32.mrb[101].mxu0  ;;  %v3887_v49 = vadd.f32 %v7022_v41, %v3886_v38  ;;  %v4787_v60 = vpop.f32.mrb[166].mxu1  ;;  %v7476_v24 = vld [vmem:[#allocation22_spill] sm:$0xff] }
 0x3b0   : > { %4234 = vst [vmem:[%s6994_s12 + $0x118] sm:$0xff] %v4170_v36  ;;  %v4040_v12 = vmul.f32 %v6968_v40, %v3895_v32  ;;  %v3656_v14 = vpop.f32.mrb[102].mxu0  ;;  %v3898_v0 = vadd.f32 %v7053_v16, %v4787_v60  ;;  %v3889_v25 = vpop.f32.mrb[167].mxu1 }
 0x3b1   : > { %4232 = vst [vmem:[%s6994_s12 + $0x108] sm:$0xff] %v4168_v47  ;;  %v4038_v51 = vmul.f32 %v6968_v40, %v3887_v49  ;;  %v7185_v8 = vadd.f32 %v3656_v14, %v7473_v46  ;;  %v3658_v33 = vpop.f32.mrb[103].mxu0  ;;  %v3890_v53 = vadd.f32 %v7031_v55, %v3889_v25  ;;  %v7477_v46 = vld [vmem:[#allocation23_spill] sm:$0xff] }
 0x3b2   : > { %v4109_v41 = vadd.f32 %v6977_v54, %v4040_v12  ;;  %v4041_v23 = vmul.f32 %v6968_v40, %v3898_v0 }
 0x3b3   : > { %v4107_v37 = vadd.f32 %v6977_v54, %v4038_v51  ;;  %v4039_v16 = vmul.f32 %v6968_v40, %v3890_v53 }
 0x3b4   : > { %v4173_v63 = vmax.f32 %v4109_v41, 0.0  ;;  %v4110_v7 = vadd.f32 %v6977_v54, %v4041_v23 }
 0x3b5   : > { %v4171_v39 = vmax.f32 %v4107_v37, 0.0  ;;  %v4108_v29 = vadd.f32 %v6977_v54, %v4039_v16  ;;  %v4790_v62 = vpop.f32.mrb[168].mxu1 }
 0x3b6   : > { %4237 = vst [vmem:[%s6994_s12 + $0x130] sm:$0xff] %v4173_v63  ;;  %v4174_v26 = vmax.f32 %v4110_v7, 0.0  ;;  %v3661_v55 = vpop.f32.mrb[104].mxu0  ;;  %v3911_v30 = vadd.f32 %v7088_v15, %v4790_v62  ;;  %v3902_v28 = vpop.f32.mrb[169].mxu1 }
 0x3b7   : > { %4235 = vst [vmem:[%s6994_s12 + $0x120] sm:$0xff] %v4171_v39  ;;  %v4172_v43 = vmax.f32 %v4108_v29, 0.0  ;;  %v7198_v19 = vadd.f32 %v3661_v55, %v7474_v18  ;;  %v3663_v27 = vpop.f32.mrb[105].mxu0  ;;  %v3903_v3 = vadd.f32 %v7066_v48, %v3902_v28  ;;  %v4791_v13 = vpop.f32.mrb[170].mxu1  ;;  %v7478_v28 = vld [vmem:[#allocation24_spill] sm:$0xff] }
 0x3b8   : > { %4238 = vst [vmem:[%s6994_s12 + $0x138] sm:$0xff] %v4174_v26  ;;  %v4044_v6 = vmul.f32 %v6968_v40, %v3911_v30  ;;  %v3664_v2 = vpop.f32.mrb[106].mxu0  ;;  %v3914_v34 = vadd.f32 %v7097_v1, %v4791_v13  ;;  %v3905_v42 = vpop.f32.mrb[171].mxu1 }
 0x3b9   : > { %4236 = vst [vmem:[%s6994_s12 + $0x128] sm:$0xff] %v4172_v43  ;;  %v4042_v15 = vmul.f32 %v6968_v40, %v3903_v3  ;;  %v7207_v44 = vadd.f32 %v3664_v2, %v7475_v31  ;;  %v3666_v59 = vpop.f32.mrb[107].mxu0  ;;  %v3906_v57 = vadd.f32 %v7075_v35, %v3905_v42  ;;  %v7479_v42 = vld [vmem:[#allocation25_spill] sm:$0xff] }
 0x3ba   : > { %v4113_v48 = vadd.f32 %v6977_v54, %v4044_v6  ;;  %v4045_v58 = vmul.f32 %v6968_v40, %v3914_v34 }
 0x3bb   : > { %v4111_v52 = vadd.f32 %v6977_v54, %v4042_v15  ;;  %v4043_v1 = vmul.f32 %v6968_v40, %v3906_v57 }
 0x3bc   : > { %v4177_v4 = vmax.f32 %v4113_v48, 0.0  ;;  %v4114_v45 = vadd.f32 %v6977_v54, %v4045_v58 }
 0x3bd   : > { %v4175_v21 = vmax.f32 %v4111_v52, 0.0  ;;  %v4112_v56 = vadd.f32 %v6977_v54, %v4043_v1  ;;  %v4794_v36 = vpop.f32.mrb[172].mxu1 }
 0x3be   : > { %4241 = vst [vmem:[%s6994_s12 + $0x150] sm:$0xff] %v4177_v4  ;;  %v4178_v11 = vmax.f32 %v4114_v45, 0.0  ;;  %v3669_v35 = vpop.f32.mrb[108].mxu0  ;;  %v3927_v32 = vadd.f32 %v7132_v20, %v4794_v36  ;;  %v3918_v38 = vpop.f32.mrb[173].mxu1 }
 0x3bf   : > { %4239 = vst [vmem:[%s6994_s12 + $0x140] sm:$0xff] %v4175_v21  ;;  %v4176_v47 = vmax.f32 %v4112_v56, 0.0  ;;  %v4898_v17 = vadd.f32 %v3669_v35, %v7476_v24  ;;  %v3671_v49 = vpop.f32.mrb[109].mxu0  ;;  %v3919_v60 = vadd.f32 %v7110_v5, %v3918_v38  ;;  %v4795_v12 = vpop.f32.mrb[174].mxu1  ;;  %v7480_v35 = vld [vmem:[#allocation26_spill] sm:$0xff] }
 0x3c0   : > { %4242 = vst [vmem:[%s6994_s12 + $0x158] sm:$0xff] %v4178_v11  ;;  %v4048_v14 = vmul.f32 %v6968_v40, %v3927_v32  ;;  %v3672_v0 = vpop.f32.mrb[110].mxu0  ;;  %v3930_v25 = vadd.f32 %v7141_v22, %v4795_v12  ;;  %v3921_v51 = vpop.f32.mrb[175].mxu1 }
 0x3c1   : > { %4240 = vst [vmem:[%s6994_s12 + $0x148] sm:$0xff] %v4176_v47  ;;  %v4046_v20 = vmul.f32 %v6968_v40, %v3919_v60  ;;  %v4899_v33 = vadd.f32 %v3672_v0, %v7477_v46  ;;  %v3674_v53 = vpop.f32.mrb[111].mxu0  ;;  %v3922_v41 = vadd.f32 %v7119_v61, %v3921_v51 }
 0x3c2   : > { %v4117_v5 = vadd.f32 %v6977_v54, %v4048_v14  ;;  %v4049_v23 = vmul.f32 %v6968_v40, %v3930_v25 }
 0x3c3   : > { %v4115_v37 = vadd.f32 %v6977_v54, %v4046_v20  ;;  %v4047_v16 = vmul.f32 %v6968_v40, %v3922_v41 }
 0x3c4   : > { %v4181_v22 = vmax.f32 %v4117_v5, 0.0  ;;  %v4118_v63 = vadd.f32 %v6977_v54, %v4049_v23 }
 0x3c5   : > { %v4179_v7 = vmax.f32 %v4115_v37, 0.0  ;;  %v4116_v39 = vadd.f32 %v6977_v54, %v4047_v16  ;;  %v4798_v29 = vpop.f32.mrb[176].mxu1 }
 0x3c6   : > { %4245 = vst [vmem:[%s6994_s12 + $0x170] sm:$0xff] %v4181_v22  ;;  %v4182_v62 = vmax.f32 %v4118_v63, 0.0  ;;  %v3677_v61 = vpop.f32.mrb[112].mxu0  ;;  %v3943_v26 = vadd.f32 %v7176_v9, %v4798_v29  ;;  %v3934_v55 = vpop.f32.mrb[177].mxu1  ;;  %v7482_v29 = vld [vmem:[#allocation29_spill] sm:$0xff] }
 0x3c7   : > { %4243 = vst [vmem:[%s6994_s12 + $0x160] sm:$0xff] %v4179_v7  ;;  %v4180_v30 = vmax.f32 %v4116_v39, 0.0  ;;  %v4900_v43 = vadd.f32 %v3677_v61, %v7478_v28  ;;  %v3679_v18 = vpop.f32.mrb[113].mxu0  ;;  %v3935_v27 = vadd.f32 %v7154_v10, %v3934_v55  ;;  %v4799_v3 = vpop.f32.mrb[178].mxu1 }
 0x3c8   : > { %4246 = vst [vmem:[%s6994_s12 + $0x178] sm:$0xff] %v4182_v62  ;;  %v4052_v13 = vmul.f32 %v6968_v40, %v3943_v26  ;;  %v3680_v6 = vpop.f32.mrb[114].mxu0  ;;  %v3946_v2 = vadd.f32 %v7185_v8, %v4799_v3  ;;  %v3937_v34 = vpop.f32.mrb[179].mxu1 }
 0x3c9   : > { %4244 = vst [vmem:[%s6994_s12 + $0x168] sm:$0xff] %v4180_v30  ;;  %v4050_v9 = vmul.f32 %v6968_v40, %v3935_v27  ;;  %v4901_v15 = vadd.f32 %v3680_v6, %v7479_v42  ;;  %v3682_v31 = vpop.f32.mrb[115].mxu0  ;;  %v3938_v59 = vadd.f32 %v7163_v50, %v3937_v34 }
 0x3ca   : > { %v4121_v10 = vadd.f32 %v6977_v54, %v4052_v13  ;;  %v4053_v57 = vmul.f32 %v6968_v40, %v3946_v2  ;;  %v7483_v13 = vld [vmem:[#allocation30_spill] sm:$0xff] }
 0x3cb   : > { %v4119_v48 = vadd.f32 %v6977_v54, %v4050_v9  ;;  %v4051_v58 = vmul.f32 %v6968_v40, %v3938_v59 }
 0x3cc   : > { %v4185_v8 = vmax.f32 %v4121_v10, 0.0  ;;  %v4122_v52 = vadd.f32 %v6977_v54, %v4053_v57 }
 0x3cd   : > { %v4183_v1 = vmax.f32 %v4119_v48, 0.0  ;;  %v4120_v4 = vadd.f32 %v6977_v54, %v4051_v58  ;;  %v4802_v45 = vpop.f32.mrb[180].mxu1 }
 0x3ce   : > { %4249 = vst [vmem:[%s6994_s12 + $0x190] sm:$0xff] %v4185_v8  ;;  %v4186_v21 = vmax.f32 %v4122_v52, 0.0  ;;  %v3685_v50 = vpop.f32.mrb[116].mxu0  ;;  %v3959_v56 = vadd.f32 %v4898_v17, %v4802_v45  ;;  %v3950_v36 = vpop.f32.mrb[181].mxu1  ;;  %v7481_v17 = vld [vmem:[#allocation28_spill] sm:$0xff] }
 0x3cf   : > { %4247 = vst [vmem:[%s6994_s12 + $0x180] sm:$0xff] %v4183_v1  ;;  %v4184_v11 = vmax.f32 %v4120_v4, 0.0  ;;  %v4902_v32 = vadd.f32 %v3685_v50, %v7480_v35  ;;  %v3687_v38 = vpop.f32.mrb[117].mxu0  ;;  %v3951_v47 = vadd.f32 %v7198_v19, %v3950_v36  ;;  %v4803_v24 = vpop.f32.mrb[182].mxu1  ;;  %v7484_v4 = vld [vmem:[#allocation31_spill] sm:$0xff] }
 0x3d0   : > { %4250 = vst [vmem:[%s6994_s12 + $0x198] sm:$0xff] %v4186_v21  ;;  %v4056_v49 = vmul.f32 %v6968_v40, %v3959_v56  ;;  %v3688_v60 = vpop.f32.mrb[118].mxu0  ;;  %v3962_v12 = vadd.f32 %v4899_v33, %v4803_v24  ;;  %v3953_v14 = vpop.f32.mrb[183].mxu1  ;;  %v7485_v38 = vld [vmem:[#allocation33_spill] sm:$0xff] }
 0x3d1   : > { %4248 = vst [vmem:[%s6994_s12 + $0x188] sm:$0xff] %v4184_v11  ;;  %v4054_v0 = vmul.f32 %v6968_v40, %v3951_v47  ;;  %v4903_v25 = vadd.f32 %v3688_v60, %v7481_v17  ;;  %v3690_v51 = vpop.f32.mrb[119].mxu0  ;;  %v3954_v20 = vadd.f32 %v7207_v44, %v3953_v14 }
 0x3d2   : > { %v4125_v46 = vadd.f32 %v6977_v54, %v4056_v49  ;;  %v4057_v19 = vmul.f32 %v6968_v40, %v3962_v12 }
 0x3d3   : > { %v4123_v53 = vadd.f32 %v6977_v54, %v4054_v0  ;;  %v4055_v41 = vmul.f32 %v6968_v40, %v3954_v20 }
 0x3d4   : > { %v4189_v33 = vmax.f32 %v4125_v46, 0.0  ;;  %v4126_v5 = vadd.f32 %v6977_v54, %v4057_v19 }
 0x3d5   : > { %v4187_v23 = vmax.f32 %v4123_v53, 0.0  ;;  %v4124_v37 = vadd.f32 %v6977_v54, %v4055_v41  ;;  %v4806_v16 = vpop.f32.mrb[184].mxu1 }
 0x3d6   : > { %4253 = vst [vmem:[%s6994_s12 + $0x1b0] sm:$0xff] %v4189_v33  ;;  %v4190_v22 = vmax.f32 %v4126_v5, 0.0  ;;  %v3693_v44 = vpop.f32.mrb[120].mxu0  ;;  %v3975_v63 = vadd.f32 %v4902_v32, %v4806_v16  ;;  %v3966_v7 = vpop.f32.mrb[185].mxu1 }
 0x3d7   : > { %4251 = vst [vmem:[%s6994_s12 + $0x1a0] sm:$0xff] %v4187_v23  ;;  %v4188_v39 = vmax.f32 %v4124_v37, 0.0  ;;  %v4904_v62 = vadd.f32 %v3693_v44, %v7482_v29  ;;  %v3695_v61 = vpop.f32.mrb[121].mxu0  ;;  %v3967_v26 = vadd.f32 %v4900_v43, %v3966_v7  ;;  %v4807_v55 = vpop.f32.mrb[186].mxu1 }
 0x3d8   : > { %4254 = vst [vmem:[%s6994_s12 + $0x1b8] sm:$0xff] %v4190_v22  ;;  %v4060_v30 = vmul.f32 %v6968_v40, %v3975_v63  ;;  %v3696_v28 = vpop.f32.mrb[122].mxu0  ;;  %v3978_v18 = vadd.f32 %v4903_v25, %v4807_v55  ;;  %v3969_v27 = vpop.f32.mrb[187].mxu1 }
 0x3d9   : > { %4252 = vst [vmem:[%s6994_s12 + $0x1a8] sm:$0xff] %v4188_v39  ;;  %v4058_v3 = vmul.f32 %v6968_v40, %v3967_v26  ;;  %v4905_v6 = vadd.f32 %v3696_v28, %v7483_v13  ;;  %v3698_v2 = vpop.f32.mrb[123].mxu0  ;;  %v3970_v34 = vadd.f32 %v4901_v15, %v3969_v27 }
 0x3da   : > { %v4129_v9 = vadd.f32 %v6977_v54, %v4060_v30  ;;  %v4061_v43 = vmul.f32 %v6968_v40, %v3978_v18 }
 0x3db   : > { %v4127_v42 = vadd.f32 %v6977_v54, %v4058_v3  ;;  %v4059_v31 = vmul.f32 %v6968_v40, %v3970_v34 }
 0x3dc   : > { %v4193_v59 = vmax.f32 %v4129_v9, 0.0  ;;  %v4130_v10 = vadd.f32 %v6977_v54, %v4061_v43 }
 0x3dd   : > { %v4191_v57 = vmax.f32 %v4127_v42, 0.0  ;;  %v4128_v48 = vadd.f32 %v6977_v54, %v4059_v31  ;;  %v4810_v58 = vpop.f32.mrb[188].mxu1 }
 0x3de   : > { %4257 = vst [vmem:[%s6994_s12 + $0x1d0] sm:$0xff] %v4193_v59  ;;  %v4194_v8 = vmax.f32 %v4130_v10, 0.0  ;;  %v3701_v15 = vpop.f32.mrb[124].mxu0  ;;  %v3982_v52 = vpop.f32.mrb[189].mxu1 }
 0x3df   : > { %4255 = vst [vmem:[%s6994_s12 + $0x1c0] sm:$0xff] %v4191_v57  ;;  %v4192_v1 = vmax.f32 %v4128_v48, 0.0  ;;  %v4906_v45 = vadd.f32 %v3701_v15, %v7484_v4  ;;  %v3703_v21 = vpop.f32.mrb[125].mxu0  ;;  %v3983_v50 = vadd.f32 %v4904_v62, %v3982_v52  ;;  %v4811_v56 = vpop.f32.mrb[190].mxu1 }
 0x3e0   : > { %4258 = vst [vmem:[%s6994_s12 + $0x1d8] sm:$0xff] %v4194_v8  ;;  %v3704_v36 = vpop.f32.mrb[126].mxu0  ;;  %v3985_v11 = vpop.f32.mrb[191].mxu1 }
 0x3e1   : > { %4256 = vst [vmem:[%s6994_s12 + $0x1c8] sm:$0xff] %v4192_v1  ;;  %v3991_v35 = vadd.f32 %v4906_v45, %v4810_v58  ;;  %v4062_v32 = vmul.f32 %v6968_v40, %v3983_v50  ;;  %v4907_v47 = vadd.f32 %v3704_v36, %v7485_v38  ;;  %v3706_v24 = vpop.f32.mrb[127].mxu0  ;;  %v3986_v49 = vadd.f32 %v4905_v6, %v3985_v11 }
 0x3e3   : > { %v4064_v60 = vmul.f32 %v6968_v40, %v3991_v35  ;;  %v4131_v12 = vadd.f32 %v6977_v54, %v4062_v32  ;;  %v3994_v14 = vadd.f32 %v4907_v47, %v4811_v56  ;;  %v4063_v0 = vmul.f32 %v6968_v40, %v3986_v49 }
 0x3e5   : > { %v4133_v17 = vadd.f32 %v6977_v54, %v4064_v60  ;;  %v4195_v25 = vmax.f32 %v4131_v12, 0.0  ;;  %v4065_v51 = vmul.f32 %v6968_v40, %v3994_v14  ;;  %v4132_v20 = vadd.f32 %v6977_v54, %v4063_v0 }
 0x3e7   : > { %v4197_v46 = vmax.f32 %v4133_v17, 0.0  ;;  %4259 = vst [vmem:[%s6994_s12 + $0x1e0] sm:$0xff] %v4195_v25  ;;  %v4134_v19 = vadd.f32 %v6977_v54, %v4065_v51  ;;  %v4196_v53 = vmax.f32 %v4132_v20, 0.0 }
 0x3e9   : > { %4261 = vst [vmem:[%s6994_s12 + $0x1f0] sm:$0xff] %v4197_v46  ;;  %v4198_v40 = vmax.f32 %v4134_v19, 0.0  ;;  %4260 = vst [vmem:[%s6994_s12 + $0x1e8] sm:$0xff] %v4196_v53 }
 0x3eb   : > { %4262 = vst [vmem:[%s6994_s12 + $0x1f8] sm:$0xff] %v4198_v40 }
 0x3ec   : > { %5495 = shalt.err (!%p5492_p4)
}
 0x3ed   : > { %s5496_s29 = scalar_lea.hbm %s7302_s22, 8192  ;;  %s5500_s10 = scalar_lea.hbm %s7369_s4, 16384 }
 0x3ee   : > { %p5497_p8 = scmp.ne.s32.totalorder %s7302_s22, %s5496_s29  ;;  %p5501_p6 = scmp.lt.u32.totalorder %s7302_s22, %s7369_s4 }
 0x3ef   : > { %p5502_p1 = scmp.lt.u32.totalorder %s5500_s10, %s5496_s29  ;;  %p5504_p5 = scmp.lt.u32.totalorder %s5496_s29, %s7302_s22 }
 0x3f0   : > { %p5498_p10 = pnand %p5497_p8, %p7486_p7 }
 0x3f1   : > { %p5503_p3 = por %p5502_p1, %p5501_p6 }
 0x3f2   : > { %p5499_p12 = pneg %p5498_p10 }
 0x3f3   : > { %p5505_p11 = por %p5504_p5, %p5503_p3 }
 0x3f5   : > { %p5506_p13 = pnand %p5505_p11, %p5499_p12 }
 0x3f7   : > { %5509 = shalt.err (!%p5506_p13)
}
 0x3f8   : > { %s5605_s27 = smov 128   ;;  %s5606_s2 = smov 8  }
 0x3f9   : > { %5172 = dma.vmem_to_hbm [thread:$0]  (%p7486_p7), %s7304_s8, 8192, %s7302_s22, %s4264_s21, %s5605_s27, %s5605_s27, %s5606_s2  }
 0x3fa PF: > { %s4293_s6 = sand.u32 1, %s5576_s18   ;;  %p7487_p0 = scmp.ne.s32.totalorder %s7394_s28, 0 }
 0x3fb   : > { %p7488_p2 = scmp.ge.s32.totalorder %s5596_s23, 2  ;;  %s4294_s12 = scalar_lea.sflag [#allocation6], %s4293_s6 }
 0x3fd   : > { %p5186_p9 = pnand %p7488_p2, %p7487_p0 }
 0x3ff   : > { %5559 = dma.done.wait (!%p5186_p9), %s4294_s12, 8192  }
 0x400   : > { %5561 = vsyncadd (!%p5186_p9), %s4294_s12, 4294959104  ;;  %s23_s23 = sadd.s32 1, %s5596_s23   ;;  %s7489_s9 = sld [smem:[#allocation19_spill]] }
 0x401   : > { %p20_p4 = scmp.ge.s32.totalorder %s23_s23, 4   ;;  %s7490_s14 = sld [smem:[#allocation15_spill]] }
 0x402   : > { %s7491_s20 = sld [smem:[#allocation18_spill]]  ;;  %s7492_s21 = sld [smem:[#allocation16_spill]] }
 0x403   : > { %s7493_s22 = sld [smem:[#allocation17_spill]]  ;;  %s7494_s15 = smov %s5568_s16 }
 0x404   : > { %s7495_s16 = smov %s5572_s17  ;;  %s7497_s18 = smov %s5580_s19 }
 0x405   :  { %22 = sbr.rel (!%p20_p4) target bundleno = 13 (0xd), region = 102 }
 0x406   : > { %s7496_s17 = smov %s7489_s9 }
 0x407   : > { %s7498_s19 = smov %s7490_s14 }
 0x40c   :  { %4299 = vsyncpa [#allocation5], 1 }
 0x40d   :  { %4301 = vsyncpa [#allocation5 + $0x1], 1 }
 0x40e   :  { %4302 = vsyncpa [#allocation8], 1 }
 0x40f   :  { %4304 = vsyncpa [#allocation8 + $0x1], 1 }
 0x410   :  { %4305 = vsyncpa [#allocation6], 1 }
 0x411   :  { %4307 = vsyncpa [#allocation6 + $0x1], 1 }

</bundles_post_ra>
